<compile_context>
chip_gen: v6e
topology: v6e:2x2x1
jax: 0.10.0
libtpu: 0.0.40
codegen_flags: <defaults>
</compile_context>

<pallas_src>
import functools

import jax
import jax.numpy as jnp
from jax.experimental import pallas as pl
from jax.experimental.pallas import tpu as pltpu

NEG_SLOPE = 0.2        # GATConv default negative_slope
NEG_INF = -1e30        # finite mask value (load-bearing, see header comment)
LANE = 128
VMEM_LIMIT = 40 * 1024 * 1024   # headroom under v7x's 64 MiB physical VMEM


# ---------------------------------------------------------------------------
# helpers
# ---------------------------------------------------------------------------
def _rup(v):
    return ((v + LANE - 1) // LANE) * LANE


def _pick_tiles(n):
    """Row tile size and padded node count.  Never falls back to tile=N."""
    if n >= 2048:
        t = 512
    elif n >= 512:
        t = 256
    else:
        t = 128
    n_pad = ((n + t - 1) // t) * t
    return n_pad, t


def _pad2(a, rows, cols, dtype=jnp.float32):
    a = jnp.asarray(a, jnp.float32)
    a = jnp.pad(a, ((0, rows - a.shape[0]), (0, cols - a.shape[1])))
    return a.astype(dtype)


def _proj_params():
    return pltpu.CompilerParams(
        dimension_semantics=("parallel",),
        vmem_limit_bytes=VMEM_LIMIT,
    )


def _agg_params():
    return pltpu.CompilerParams(
        dimension_semantics=("parallel", "arbitrary"),
        vmem_limit_bytes=VMEM_LIMIT,
    )


def _stream_spec(shape, index_map, ksteps, tk):
    # Deeper buffering hides the per-step grid overhead when source tiles are
    # small; only worthwhile for tk=128 with enough source steps to pipeline.
    if tk <= 128 and ksteps >= 4:
        return pl.BlockSpec(shape, index_map, pipeline_mode=pl.Buffered(3))
    return pl.BlockSpec(shape, index_map)


# ---------------------------------------------------------------------------
# prologue kernels (projections, row-tiled, single grid axis)
# ---------------------------------------------------------------------------
def _proj_kernel(x_ref, w_ref, z_ref):
    """Z = X @ W (no bias / activation)."""
    z_ref[...] = jnp.dot(x_ref[...], w_ref[...],
                         preferred_element_type=jnp.float32).astype(z_ref.dtype)


def _gat_proj_kernel(h_ref, w_ref, asrc_ref, adst_ref,
                     z_ref, asrcv_ref, adstv_ref):
    """Z = H @ W, a_src[i] = sum(Z_i * att_src), a_dst[i] = sum(Z_i * att_dst)."""
    z = jnp.dot(h_ref[...], w_ref[...], preferred_element_type=jnp.float32)
    z_ref[...] = z.astype(z_ref.dtype)
    asrcv_ref[...] = jnp.sum(z * asrc_ref[...], axis=-1, keepdims=True)
    adstv_ref[...] = jnp.sum(z * adst_ref[...], axis=-1, keepdims=True)


def _qkv_kernel(h_ref, wq_ref, bq_ref, wk_ref, bk_ref, wv_ref, bv_ref,
                q_ref, k_ref, v_ref):
    """Q/K/V = H @ W{q,k,v} + b{q,k,v}."""
    h = h_ref[...]
    q_ref[...] = (jnp.dot(h, wq_ref[...], preferred_element_type=jnp.float32)
                  + bq_ref[...]).astype(q_ref.dtype)
    k_ref[...] = (jnp.dot(h, wk_ref[...], preferred_element_type=jnp.float32)
                  + bk_ref[...]).astype(k_ref.dtype)
    v_ref[...] = (jnp.dot(h, wv_ref[...], preferred_element_type=jnp.float32)
                  + bv_ref[...]).astype(v_ref.dtype)


# ---------------------------------------------------------------------------
# aggregation kernels (grid = (dest-row tiles [parallel], src tiles [arbitrary]))
# ---------------------------------------------------------------------------
def _gcn_agg_kernel(adj_ref, z_ref, b_ref, out_ref, acc_ref):
    """out = relu( Â @ Z + b ), Â streamed tile-by-tile."""
    k = pl.program_id(1)

    @pl.when(k == 0)
    def _():
        acc_ref[...] = jnp.zeros_like(acc_ref)

    acc_ref[...] += jnp.dot(adj_ref[...], z_ref[...],
                            preferred_element_type=jnp.float32)

    @pl.when(k == pl.num_programs(1) - 1)
    def _():
        out_ref[...] = jnp.maximum(acc_ref[...] + b_ref[...],
                                   0.0).astype(out_ref.dtype)


def _gat_agg_kernel(mask_ref, adst_ref, asrc_ref, z_ref, b_ref, out_ref,
                    m_sc, l_sc, acc_sc):
    """GAT (1 head): masked online softmax over source tiles, then bias+ReLU."""
    k = pl.program_id(1)

    @pl.when(k == 0)
    def _():
        m_sc[...] = jnp.full_like(m_sc, NEG_INF)
        l_sc[...] = jnp.zeros_like(l_sc)
        acc_sc[...] = jnp.zeros_like(acc_sc)

    # e_ij = LeakyReLU(a_dst[i] + a_src[j]) on edges, NEG_INF elsewhere.
    e = adst_ref[...] + asrc_ref[...]                         # (tm,1)+(1,tk)
    e = jnp.where(mask_ref[...] != 0,
                  jnp.maximum(e, NEG_SLOPE * e), NEG_INF)

    # online softmax over sources j
    m_new = jnp.maximum(m_sc[...], jnp.max(e, axis=-1, keepdims=True))
    alpha = jnp.exp(m_sc[...] - m_new)
    p = jnp.exp(e - m_new)
    l_sc[...] = alpha * l_sc[...] + jnp.sum(p, axis=-1, keepdims=True)
    acc_sc[...] = alpha * acc_sc[...] + jnp.dot(
        p.astype(jnp.bfloat16), z_ref[...], preferred_element_type=jnp.float32)
    m_sc[...] = m_new

    @pl.when(k == pl.num_programs(1) - 1)
    def _():
        h = acc_sc[...] * pl.reciprocal(l_sc[...], approx=True) + b_ref[...]
        out_ref[...] = jnp.maximum(h, 0.0).astype(out_ref.dtype)


def _spatial_agg_kernel(scale, q_ref, k_ref, v_ref, kb_ref, wl_ref, bl_ref,
                        out_ref, m_sc, l_sc, acc_sc):
    """Flash-style SpatialAttentionLayer fused with the final Linear."""
    k = pl.program_id(1)

    @pl.when(k == 0)
    def _():
        m_sc[...] = jnp.full_like(m_sc, NEG_INF)
        l_sc[...] = jnp.zeros_like(l_sc)
        acc_sc[...] = jnp.zeros_like(acc_sc)

    s = jax.lax.dot_general(q_ref[...], k_ref[...],
                            (((1,), (1,)), ((), ())),
                            preferred_element_type=jnp.float32)
    s = s * scale + kb_ref[...]          # kb masks padded key rows (exact)

    m_new = jnp.maximum(m_sc[...], jnp.max(s, axis=-1, keepdims=True))
    alpha = jnp.exp(m_sc[...] - m_new)
    p = jnp.exp(s - m_new)
    l_sc[...] = alpha * l_sc[...] + jnp.sum(p, axis=-1, keepdims=True)
    acc_sc[...] = alpha * acc_sc[...] + jnp.dot(
        p.astype(jnp.bfloat16), v_ref[...], preferred_element_type=jnp.float32)
    m_sc[...] = m_new

    @pl.when(k == pl.num_programs(1) - 1)
    def _():
        h = acc_sc[...] * pl.reciprocal(l_sc[...], approx=True)
        out_ref[...] = (jnp.dot(h.astype(jnp.bfloat16), wl_ref[...],
                                preferred_element_type=jnp.float32)
                        + bl_ref[...])


# ---------------------------------------------------------------------------
# pallas_call wrappers
# ---------------------------------------------------------------------------
def _proj(x, w, *, tm):
    n, fin = x.shape
    hp = w.shape[1]
    return pl.pallas_call(
        _proj_kernel,
        out_shape=jax.ShapeDtypeStruct((n, hp), jnp.bfloat16),
        grid_spec=pltpu.PrefetchScalarGridSpec(
            num_scalar_prefetch=0,
            grid=(n // tm,),
            in_specs=[pl.BlockSpec((tm, fin), lambda i: (i, 0)),
                      pl.BlockSpec(w.shape, lambda i: (0, 0))],
            out_specs=pl.BlockSpec((tm, hp), lambda i: (i, 0)),
        ),
        compiler_params=_proj_params(),
    )(x, w)


def _gat_proj(h, w, asrc, adst_row, *, tm):
    n, hin = h.shape
    hp = w.shape[1]
    return pl.pallas_call(
        _gat_proj_kernel,
        out_shape=(jax.ShapeDtypeStruct((n, hp), jnp.bfloat16),
                   jax.ShapeDtypeStruct((n, 1), jnp.float32),
                   jax.ShapeDtypeStruct((n, 1), jnp.float32)),
        grid_spec=pltpu.PrefetchScalarGridSpec(
            num_scalar_prefetch=0,
            grid=(n // tm,),
            in_specs=[pl.BlockSpec((tm, hin), lambda i: (i, 0)),
                      pl.BlockSpec(w.shape, lambda i: (0, 0)),
                      pl.BlockSpec(asrc.shape, lambda i: (0, 0)),
                      pl.BlockSpec(adst_row.shape, lambda i: (0, 0))],
            out_specs=(pl.BlockSpec((tm, hp), lambda i: (i, 0)),
                       pl.BlockSpec((tm, 1), lambda i: (i, 0)),
                       pl.BlockSpec((tm, 1), lambda i: (i, 0))),
        ),
        compiler_params=_proj_params(),
    )(h, w, asrc, adst_row)


def _qkv_proj(h, wq, bq, wk, bk, wv, bv, *, tm):
    n, hin = h.shape
    hp = wq.shape[1]
    w_specs = [pl.BlockSpec(p.shape, lambda i: (0, 0))
               for p in (wq, bq, wk, bk, wv, bv)]
    return pl.pallas_call(
        _qkv_kernel,
        out_shape=tuple(jax.ShapeDtypeStruct((n, hp), jnp.bfloat16)
                        for _ in range(3)),
        grid_spec=pltpu.PrefetchScalarGridSpec(
            num_scalar_prefetch=0,
            grid=(n // tm,),
            in_specs=[pl.BlockSpec((tm, hin), lambda i: (i, 0))] + w_specs,
            out_specs=tuple(pl.BlockSpec((tm, hp), lambda i: (i, 0))
                            for _ in range(3)),
        ),
        compiler_params=_proj_params(),
    )(h, wq, bq, wk, bk, wv, bv)


def _gcn_agg(adj, z, b, *, tm, tk):
    n = adj.shape[0]
    hp = z.shape[1]
    ksteps = n // tk
    return pl.pallas_call(
        _gcn_agg_kernel,
        out_shape=jax.ShapeDtypeStruct((n, hp), jnp.bfloat16),
        grid_spec=pltpu.PrefetchScalarGridSpec(
            num_scalar_prefetch=0,
            grid=(n // tm, ksteps),
            in_specs=[_stream_spec((tm, tk), lambda i, k: (i, k), ksteps, tk),
                      _stream_spec((tk, hp), lambda i, k: (k, 0), ksteps, tk),
                      pl.BlockSpec(b.shape, lambda i, k: (0, 0))],
            out_specs=pl.BlockSpec((tm, hp), lambda i, k: (i, 0)),
            scratch_shapes=[pltpu.VMEM((tm, hp), jnp.float32)],
        ),
        compiler_params=_agg_params(),
    )(adj, z, b)


def _gat_agg(mask, adst_col, asrc_row, z, b, *, tm, tk):
    n = mask.shape[0]
    hp = z.shape[1]
    ksteps = n // tk
    return pl.pallas_call(
        _gat_agg_kernel,
        out_shape=jax.ShapeDtypeStruct((n, hp), jnp.bfloat16),
        grid_spec=pltpu.PrefetchScalarGridSpec(
            num_scalar_prefetch=0,
            grid=(n // tm, ksteps),
            in_specs=[
                _stream_spec((tm, tk), lambda i, k: (i, k), ksteps, tk),  # mask
                pl.BlockSpec((tm, 1), lambda i, k: (i, 0)),               # a_dst
                pl.BlockSpec((1, tk), lambda i, k: (0, k)),               # a_src
                _stream_spec((tk, hp), lambda i, k: (k, 0), ksteps, tk),  # Z rows
                pl.BlockSpec(b.shape, lambda i, k: (0, 0)),
            ],
            out_specs=pl.BlockSpec((tm, hp), lambda i, k: (i, 0)),
            scratch_shapes=[pltpu.VMEM((tm, 1), jnp.float32),   # running max
                            pltpu.VMEM((tm, 1), jnp.float32),   # running sum
                            pltpu.VMEM((tm, hp), jnp.float32)], # accumulator
        ),
        compiler_params=_agg_params(),
    )(mask, adst_col, asrc_row, z, b)


def _spatial_agg(q, k, v, kbias, wl, bl, scale, *, tm, tk):
    n, hp = q.shape
    cp = wl.shape[1]
    ksteps = n // tk
    kern = functools.partial(_spatial_agg_kernel, scale)
    return pl.pallas_call(
        kern,
        out_shape=jax.ShapeDtypeStruct((n, cp), jnp.float32),
        grid_spec=pltpu.PrefetchScalarGridSpec(
            num_scalar_prefetch=0,
            grid=(n // tm, ksteps),
            in_specs=[
                pl.BlockSpec((tm, hp), lambda i, kk: (i, 0)),             # Q rows
                _stream_spec((tk, hp), lambda i, kk: (kk, 0), ksteps, tk),  # K
                _stream_spec((tk, hp), lambda i, kk: (kk, 0), ksteps, tk),  # V
                pl.BlockSpec((1, tk), lambda i, kk: (0, kk)),             # key bias
                pl.BlockSpec(wl.shape, lambda i, kk: (0, 0)),
                pl.BlockSpec(bl.shape, lambda i, kk: (0, 0)),
            ],
            out_specs=pl.BlockSpec((tm, cp), lambda i, kk: (i, 0)),
            scratch_shapes=[pltpu.VMEM((tm, 1), jnp.float32),
                            pltpu.VMEM((tm, 1), jnp.float32),
                            pltpu.VMEM((tm, hp), jnp.float32)],
        ),
        compiler_params=_agg_params(),
    )(q, k, v, kbias, wl, bl)


# ---------------------------------------------------------------------------
# forward pass
# ---------------------------------------------------------------------------
def configurable_gnn_forward(x, edge_index, params):
    n, f_in = x.shape
    (gw1, gb1, gw2, gb2,
     aw1, asrc1, adst1, ab1,
     aw2, asrc2, adst2, ab2,
     wq, bq, wk, bk, wv, bv,
     wl, bl) = params
    hidden = gw1.shape[1]
    num_classes = wl.shape[1]

    n_pad, t = _pick_tiles(n)
    tm = tk = t

    # Dense GCN-normalized adjacency (with self loops) built once at padded
    # size; the int8 GAT edge mask is derived from the same scatter pass
    # (halves the N^2 HBM bytes of the two GAT layers vs bf16 adjacency).
    src, dst = edge_index[0], edge_index[1]
    a = jnp.zeros((n_pad, n_pad), jnp.float32).at[dst, src].set(1.0)
    diag = jnp.arange(n)
    a = a.at[diag, diag].set(1.0)
    deg = jnp.sum(a, axis=1)
    dinv = jnp.where(deg > 0, jax.lax.rsqrt(deg), 0.0)
    adj = (dinv[:, None] * a * dinv[None, :]).astype(jnp.bfloat16)
    mask = (a > 0).astype(jnp.int8)

    # Additive key bias for the (unmasked) spatial attention so padded nodes
    # never contribute to real nodes' softmax.  Padded output rows are sliced.
    kbias = jnp.where(jnp.arange(n_pad) < n, 0.0, NEG_INF)
    kbias = kbias.astype(jnp.float32).reshape(1, n_pad)

    # zero-pad feature dims to 128 lanes (mathematically exact)
    fp, hp, cp = _rup(f_in), _rup(hidden), _rup(num_classes)
    bf = jnp.bfloat16

    xw = _pad2(x, n_pad, fp, bf)
    gw1p, gb1p = _pad2(gw1, fp, hp, bf), _pad2(gb1, 1, hp)
    gw2p, gb2p = _pad2(gw2, hp, hp, bf), _pad2(gb2, 1, hp)
    aw1p, asrc1p = _pad2(aw1, hp, hp, bf), _pad2(asrc1, 1, hp)
    adst1p, ab1p = _pad2(adst1.T, 1, hp), _pad2(ab1, 1, hp)
    aw2p, asrc2p = _pad2(aw2, hp, hp, bf), _pad2(asrc2, 1, hp)
    adst2p, ab2p = _pad2(adst2.T, 1, hp), _pad2(ab2, 1, hp)
    wqp, bqp = _pad2(wq, hp, hp, bf), _pad2(bq, 1, hp)
    wkp, bkp = _pad2(wk, hp, hp, bf), _pad2(bk, 1, hp)
    wvp, bvp = _pad2(wv, hp, hp, bf), _pad2(bv, 1, hp)
    wlp, blp = _pad2(wl, hp, cp, bf), _pad2(bl, 1, cp)

    # --- GCN layers: projection hoisted, adjacency streamed once per layer ---
    z = _proj(xw, gw1p, tm=tm)
    h = _gcn_agg(adj, z, gb1p, tm=tm, tk=tk)
    z = _proj(h, gw2p, tm=tm)
    h = _gcn_agg(adj, z, gb2p, tm=tm, tk=tk)

    # --- GAT layers: Z / a_src / a_dst hoisted, int8 mask streamed ---
    z, asrc_v, adst_v = _gat_proj(h, aw1p, asrc1p, adst1p, tm=tm)
    h = _gat_agg(mask, adst_v, asrc_v.reshape(1, n_pad), z, ab1p, tm=tm, tk=tk)
    z, asrc_v, adst_v = _gat_proj(h, aw2p, asrc2p, adst2p, tm=tm)
    h = _gat_agg(mask, adst_v, asrc_v.reshape(1, n_pad), z, ab2p, tm=tm, tk=tk)

    # --- Spatial attention + final Linear: Q/K/V hoisted ---
    q, kk, v = _qkv_proj(h, wqp, bqp, wkp, bkp, wvp, bvp, tm=tm)
    scale = float(hidden) ** -0.5   # true (unpadded) hidden width
    out = _spatial_agg(q, kk, v, kbias, wlp, blp, scale, tm=tm, tk=tk)
    return out[:n, :num_classes]


# ---------------------------------------------------------------------------
# parameter init (true, unpadded model sizes)
# ---------------------------------------------------------------------------
def init_params(key, num_features, hidden, num_classes):
    keys = iter(jax.random.split(key, 32))

    def w(fan_in, fan_out):
        return (jax.random.normal(next(keys), (fan_in, fan_out), jnp.float32)
                * (1.0 / jnp.sqrt(jnp.float32(fan_in))))

    def b(fan_out):
        return jax.random.normal(next(keys), (1, fan_out), jnp.float32) * 0.05

    params = []
    # GCN layers: weight (in, hidden), bias (1, hidden)
    params += [w(num_features, hidden), b(hidden)]
    params += [w(hidden, hidden), b(hidden)]
    # GAT layers: weight, att_src (1, hidden), att_dst (hidden, 1), bias
    for _ in range(2):
        params += [w(hidden, hidden),
                   jax.random.normal(next(keys), (1, hidden), jnp.float32) * 0.1,
                   jax.random.normal(next(keys), (hidden, 1), jnp.float32) * 0.1,
                   b(hidden)]
    # Spatial attention: query / key / value Linear(hidden, hidden)
    for _ in range(3):
        params += [w(hidden, hidden), b(hidden)]
    # Final Linear(hidden, num_classes)
    params += [w(hidden, num_classes), b(num_classes)]
    return tuple(params)


if __name__ == "__main__":
    N, F_IN, HIDDEN, CLASSES = 16, 8, 32, 4

    key = jax.random.PRNGKey(0)
    k_x, k_p = jax.random.split(key)

    x = jax.random.normal(k_x, (N, F_IN), jnp.float32)

    # Bidirectional ring graph: edge_index (2, 2N), row0 = src, row1 = dst.
    idx = jnp.arange(N, dtype=jnp.int32)
    src = jnp.concatenate([idx, (idx + 1) % N])
    dst = jnp.concatenate([(idx + 1) % N, idx])
    edge_index = jnp.stack([src, dst])

    params = init_params(k_p, F_IN, HIDDEN, CLASSES)

    fwd = jax.jit(configurable_gnn_forward)
    out = fwd(x, edge_index, params)
    out = jax.block_until_ready(out)
    assert out.shape == (N, CLASSES)
    print("KERNEL_OK")
</pallas_src>

<mosaic_0001>
module attributes {stable_mosaic.version = 11 : i64} {
  func.func @_gcn_agg_kernel(%arg0: i32, %arg1: i32, %arg2: memref<128x128xbf16, #tpu.memory_space<vmem>>, %arg3: memref<128x128xbf16, #tpu.memory_space<vmem>>, %arg4: memref<1x128xf32, #tpu.memory_space<vmem>>, %arg5: memref<128x128xbf16, #tpu.memory_space<vmem>>, %arg6: memref<128x128xf32, #tpu.memory_space<vmem>>) attributes {dimension_semantics = [#tpu.dimension_semantics<parallel>, #tpu.dimension_semantics<arbitrary>], iteration_bounds = array<i64: 1, 1>, scalar_prefetch = 0 : i64, scratch_operands = 1 : i64, tpu.core_type = #tpu.core_type<tc>, window_params = [{transform_indices = @transform_0, window_bounds = array<i64: 128, 128>}, {transform_indices = @transform_1, window_bounds = array<i64: 128, 128>}, {pipeline_mode = #tpu.pipeline_mode<synchronous>, transform_indices = @transform_2, window_bounds = array<i64: 1, 128>}, {transform_indices = @transform_3, window_bounds = array<i64: 128, 128>}]} {
    %c0_i32 = arith.constant 0 : i32
    %0 = arith.cmpi eq, %arg1, %c0_i32 : i32
    %1 = arith.extui %0 : i1 to i32
    %c0_i32_0 = arith.constant 0 : i32
    %2 = arith.cmpi ne, %1, %c0_i32_0 : i32
    scf.if %2 {
      %cst_10 = arith.constant 0.000000e+00 : f32
      %12 = vector.broadcast %cst_10 : f32 to vector<128x128xf32>
      %c0_11 = arith.constant 0 : index
      %c0_12 = arith.constant 0 : index
      %13 = vector.load %arg6[%c0_11, %c0_12] : memref<128x128xf32, #tpu.memory_space<vmem>>, vector<128x128xf32>
      tpu.vector_store %arg6[%c0_11, %c0_12], %12 {strides = array<i32>} : memref<128x128xf32, #tpu.memory_space<vmem>>, vector<128x128xf32>,
    } else {
    }
    %c0 = arith.constant 0 : index
    %c0_1 = arith.constant 0 : index
    %3 = vector.load %arg6[%c0, %c0_1] : memref<128x128xf32, #tpu.memory_space<vmem>>, vector<128x128xf32>
    %c0_2 = arith.constant 0 : index
    %c0_3 = arith.constant 0 : index
    %4 = vector.load %arg2[%c0_2, %c0_3] : memref<128x128xbf16, #tpu.memory_space<vmem>>, vector<128x128xbf16>
    %c0_4 = arith.constant 0 : index
    %c0_5 = arith.constant 0 : index
    %5 = vector.load %arg3[%c0_4, %c0_5] : memref<128x128xbf16, #tpu.memory_space<vmem>>, vector<128x128xbf16>
    %cst = arith.constant dense<0.000000e+00> : vector<128x128xf32>
    %6 = tpu.matmul %4, %5, %cst {dimension_numbers = #tpu.dot_dimension_numbers<[1], [0], [0], [1], [0, 0, 1, 1], [], []>} : vector<128x128xbf16>, vector<128x128xbf16>, vector<128x128xf32> -> vector<128x128xf32>
    %7 = arith.addf %3, %6 : vector<128x128xf32>
    %c0_6 = arith.constant 0 : index
    %c0_7 = arith.constant 0 : index
    %8 = vector.load %arg6[%c0_6, %c0_7] : memref<128x128xf32, #tpu.memory_space<vmem>>, vector<128x128xf32>
    tpu.vector_store %arg6[%c0_6, %c0_7], %7 {strides = array<i32>} : memref<128x128xf32, #tpu.memory_space<vmem>>, vector<128x128xf32>,
    %c0_i32_8 = arith.constant 0 : i32
    %9 = arith.cmpi eq, %arg1, %c0_i32_8 : i32
    %10 = arith.extui %9 : i1 to i32
    %c0_i32_9 = arith.constant 0 : i32
    %11 = arith.cmpi ne, %10, %c0_i32_9 : i32
    scf.if %11 {
      %c0_10 = arith.constant 0 : index
      %c0_11 = arith.constant 0 : index
      %12 = vector.load %arg6[%c0_10, %c0_11] : memref<128x128xf32, #tpu.memory_space<vmem>>, vector<128x128xf32>
      %c0_12 = arith.constant 0 : index
      %c0_13 = arith.constant 0 : index
      %13 = vector.load %arg4[%c0_12, %c0_13] : memref<1x128xf32, #tpu.memory_space<vmem>>, vector<1x128xf32>
      %14 = vector.broadcast %13 : vector<1x128xf32> to vector<128x128xf32>
      %15 = arith.addf %12, %14 : vector<128x128xf32>
      %cst_14 = arith.constant 0.000000e+00 : f32
      %16 = vector.broadcast %cst_14 : f32 to vector<128x128xf32>
      %17 = arith.maximumf %15, %16 : vector<128x128xf32>
      %18 = arith.truncf %17 : vector<128x128xf32> to vector<128x128xbf16>
      %c0_15 = arith.constant 0 : index
      %c0_16 = arith.constant 0 : index
      %19 = vector.load %arg5[%c0_15, %c0_16] : memref<128x128xbf16, #tpu.memory_space<vmem>>, vector<128x128xbf16>
      tpu.vector_store %arg5[%c0_15, %c0_16], %18 {strides = array<i32>} : memref<128x128xbf16, #tpu.memory_space<vmem>>, vector<128x128xbf16>,
    } else {
    }
    return
  }
  func.func @transform_0(%arg0: i32, %arg1: i32) -> (i32, i32) {
    %c0_i32 = arith.constant 0 : i32
    return %arg0, %arg1 : i32, i32
  }
  func.func @transform_1(%arg0: i32, %arg1: i32) -> (i32, i32) {
    %c0_i32 = arith.constant 0 : i32
    %c0_i32_0 = arith.constant 0 : i32
    return %arg1, %c0_i32 : i32, i32
  }
  func.func @transform_2(%arg0: i32, %arg1: i32) -> (i32, i32) {
    %c0_i32 = arith.constant 0 : i32
    %c0_i32_0 = arith.constant 0 : i32
    %c0_i32_1 = arith.constant 0 : i32
    return %c0_i32, %c0_i32_0 : i32, i32
  }
  func.func @transform_3(%arg0: i32, %arg1: i32) -> (i32, i32) {
    %c0_i32 = arith.constant 0 : i32
    %c0_i32_0 = arith.constant 0 : i32
    return %arg0, %c0_i32 : i32, i32
  }
}

module attributes {stable_mosaic.version = 11 : i64} {
  func.func @_proj_kernel(%arg0: i32, %arg1: memref<128x128xbf16, #tpu.memory_space<vmem>>, %arg2: memref<128x128xbf16, #tpu.memory_space<vmem>>, %arg3: memref<128x128xbf16, #tpu.memory_space<vmem>>) attributes {dimension_semantics = [#tpu.dimension_semantics<parallel>], iteration_bounds = array<i64: 1>, scalar_prefetch = 0 : i64, scratch_operands = 0 : i64, tpu.core_type = #tpu.core_type<tc>, window_params = [{transform_indices = @transform_0, window_bounds = array<i64: 128, 128>}, {pipeline_mode = #tpu.pipeline_mode<synchronous>, transform_indices = @transform_1, window_bounds = array<i64: 128, 128>}, {transform_indices = @transform_2, window_bounds = array<i64: 128, 128>}]} {
    %c0 = arith.constant 0 : index
    %c0_0 = arith.constant 0 : index
    %0 = vector.load %arg1[%c0, %c0_0] : memref<128x128xbf16, #tpu.memory_space<vmem>>, vector<128x128xbf16>
    %c0_1 = arith.constant 0 : index
    %c0_2 = arith.constant 0 : index
    %1 = vector.load %arg2[%c0_1, %c0_2] : memref<128x128xbf16, #tpu.memory_space<vmem>>, vector<128x128xbf16>
    %cst = arith.constant dense<0.000000e+00> : vector<128x128xf32>
    %2 = tpu.matmul %0, %1, %cst {dimension_numbers = #tpu.dot_dimension_numbers<[1], [0], [0], [1], [0, 0, 1, 1], [], []>} : vector<128x128xbf16>, vector<128x128xbf16>, vector<128x128xf32> -> vector<128x128xf32>
    %3 = arith.truncf %2 : vector<128x128xf32> to vector<128x128xbf16>
    %c0_3 = arith.constant 0 : index
    %c0_4 = arith.constant 0 : index
    %4 = vector.load %arg3[%c0_3, %c0_4] : memref<128x128xbf16, #tpu.memory_space<vmem>>, vector<128x128xbf16>
    tpu.vector_store %arg3[%c0_3, %c0_4], %3 {strides = array<i32>} : memref<128x128xbf16, #tpu.memory_space<vmem>>, vector<128x128xbf16>,
    return
  }
  func.func @transform_0(%arg0: i32) -> (i32, i32) {
    %c0_i32 = arith.constant 0 : i32
    %c0_i32_0 = arith.constant 0 : i32
    return %arg0, %c0_i32 : i32, i32
  }
  func.func @transform_1(%arg0: i32) -> (i32, i32) {
    %c0_i32 = arith.constant 0 : i32
    %c0_i32_0 = arith.constant 0 : i32
    %c0_i32_1 = arith.constant 0 : i32
    return %c0_i32, %c0_i32_0 : i32, i32
  }
  func.func @transform_2(%arg0: i32) -> (i32, i32) {
    %c0_i32 = arith.constant 0 : i32
    %c0_i32_0 = arith.constant 0 : i32
    return %arg0, %c0_i32 : i32, i32
  }
}

module attributes {stable_mosaic.version = 11 : i64} {
  func.func @_gat_agg_kernel(%arg0: i32, %arg1: i32, %arg2: memref<128x128xi8, #tpu.memory_space<vmem>>, %arg3: memref<128x1xf32, #tpu.memory_space<vmem>>, %arg4: memref<1x128xf32, #tpu.memory_space<vmem>>, %arg5: memref<128x128xbf16, #tpu.memory_space<vmem>>, %arg6: memref<1x128xf32, #tpu.memory_space<vmem>>, %arg7: memref<128x128xbf16, #tpu.memory_space<vmem>>, %arg8: memref<128x1xf32, #tpu.memory_space<vmem>>, %arg9: memref<128x1xf32, #tpu.memory_space<vmem>>, %arg10: memref<128x128xf32, #tpu.memory_space<vmem>>) attributes {dimension_semantics = [#tpu.dimension_semantics<parallel>, #tpu.dimension_semantics<arbitrary>], iteration_bounds = array<i64: 1, 1>, scalar_prefetch = 0 : i64, scratch_operands = 3 : i64, tpu.core_type = #tpu.core_type<tc>, window_params = [{transform_indices = @transform_0, window_bounds = array<i64: 128, 128>}, {transform_indices = @transform_1, window_bounds = array<i64: 128, 1>}, {transform_indices = @transform_2, window_bounds = array<i64: 1, 128>}, {transform_indices = @transform_3, window_bounds = array<i64: 128, 128>}, {pipeline_mode = #tpu.pipeline_mode<synchronous>, transform_indices = @transform_4, window_bounds = array<i64: 1, 128>}, {transform_indices = @transform_5, window_bounds = array<i64: 128, 128>}]} {
    %c0_i32 = arith.constant 0 : i32
    %0 = arith.cmpi eq, %arg1, %c0_i32 : i32
    %1 = arith.extui %0 : i1 to i32
    %c0_i32_0 = arith.constant 0 : i32
    %2 = arith.cmpi ne, %1, %c0_i32_0 : i32
    scf.if %2 {
      %cst_28 = arith.constant -1.000000e+30 : f32
      %44 = vector.broadcast %cst_28 : f32 to vector<128x1xf32>
      %c0_29 = arith.constant 0 : index
      %c0_30 = arith.constant 0 : index
      %45 = vector.load %arg8[%c0_29, %c0_30] : memref<128x1xf32, #tpu.memory_space<vmem>>, vector<128x1xf32>
      tpu.vector_store %arg8[%c0_29, %c0_30], %44 {strides = array<i32>} : memref<128x1xf32, #tpu.memory_space<vmem>>, vector<128x1xf32>,
      %cst_31 = arith.constant 0.000000e+00 : f32
      %46 = vector.broadcast %cst_31 : f32 to vector<128x1xf32>
      %c0_32 = arith.constant 0 : index
      %c0_33 = arith.constant 0 : index
      %47 = vector.load %arg9[%c0_32, %c0_33] : memref<128x1xf32, #tpu.memory_space<vmem>>, vector<128x1xf32>
      tpu.vector_store %arg9[%c0_32, %c0_33], %46 {strides = array<i32>} : memref<128x1xf32, #tpu.memory_space<vmem>>, vector<128x1xf32>,
      %cst_34 = arith.constant 0.000000e+00 : f32
      %48 = vector.broadcast %cst_34 : f32 to vector<128x128xf32>
      %c0_35 = arith.constant 0 : index
      %c0_36 = arith.constant 0 : index
      %49 = vector.load %arg10[%c0_35, %c0_36] : memref<128x128xf32, #tpu.memory_space<vmem>>, vector<128x128xf32>
      tpu.vector_store %arg10[%c0_35, %c0_36], %48 {strides = array<i32>} : memref<128x128xf32, #tpu.memory_space<vmem>>, vector<128x128xf32>,
    } else {
    }
    %c0 = arith.constant 0 : index
    %c0_1 = arith.constant 0 : index
    %3 = vector.load %arg3[%c0, %c0_1] : memref<128x1xf32, #tpu.memory_space<vmem>>, vector<128x1xf32>
    %c0_2 = arith.constant 0 : index
    %c0_3 = arith.constant 0 : index
    %4 = vector.load %arg4[%c0_2, %c0_3] : memref<1x128xf32, #tpu.memory_space<vmem>>, vector<1x128xf32>
    %5 = vector.broadcast %3 : vector<128x1xf32> to vector<128x128xf32>
    %6 = vector.broadcast %4 : vector<1x128xf32> to vector<128x128xf32>
    %7 = arith.addf %5, %6 : vector<128x128xf32>
    %c0_4 = arith.constant 0 : index
    %c0_5 = arith.constant 0 : index
    %8 = vector.load %arg2[%c0_4, %c0_5] : memref<128x128xi8, #tpu.memory_space<vmem>>, vector<128x128xi8>
    %c0_i8 = arith.constant 0 : i8
    %9 = vector.broadcast %c0_i8 : i8 to vector<128x128xi8>
    %10 = arith.cmpi ne, %8, %9 : vector<128x128xi8>
    %cst = arith.constant 2.000000e-01 : f32
    %11 = vector.broadcast %cst : f32 to vector<128x128xf32>
    %12 = arith.mulf %11, %7 : vector<128x128xf32>
    %13 = arith.maximumf %7, %12 : vector<128x128xf32>
    %cst_6 = arith.constant -1.000000e+30 : f32
    %14 = vector.broadcast %cst_6 : f32 to vector<128x128xf32>
    %15 = arith.select %10, %13, %14 : vector<128x128xi1>, vector<128x128xf32>
    %c0_7 = arith.constant 0 : index
    %c0_8 = arith.constant 0 : index
    %16 = vector.load %arg8[%c0_7, %c0_8] : memref<128x1xf32, #tpu.memory_space<vmem>>, vector<128x1xf32>
    %cst_9 = arith.constant dense<0xFF800000> : vector<128xf32>
    %17 = vector.multi_reduction <maximumf>, %15, %cst_9 [1] : vector<128x128xf32> to vector<128xf32>
    %18 = vector.shape_cast %17 : vector<128xf32> to vector<128x1xf32>
    %19 = arith.maximumf %16, %18 : vector<128x1xf32>
    %c0_10 = arith.constant 0 : index
    %c0_11 = arith.constant 0 : index
    %20 = vector.load %arg8[%c0_10, %c0_11] : memref<128x1xf32, #tpu.memory_space<vmem>>, vector<128x1xf32>
    %21 = arith.subf %20, %19 : vector<128x1xf32>
    %22 = math.exp %21 : vector<128x1xf32>
    %23 = vector.broadcast %19 : vector<128x1xf32> to vector<128x128xf32>
    %24 = arith.subf %15, %23 : vector<128x128xf32>
    %25 = math.exp %24 : vector<128x128xf32>
    %c0_12 = arith.constant 0 : index
    %c0_13 = arith.constant 0 : index
    %26 = vector.load %arg9[%c0_12, %c0_13] : memref<128x1xf32, #tpu.memory_space<vmem>>, vector<128x1xf32>
    %27 = arith.mulf %22, %26 : vector<128x1xf32>
    %cst_14 = arith.constant dense<0.000000e+00> : vector<128xf32>
    %28 = vector.multi_reduction <add>, %25, %cst_14 [1] : vector<128x128xf32> to vector<128xf32>
    %29 = vector.shape_cast %28 : vector<128xf32> to vector<128x1xf32>
    %30 = arith.addf %27, %29 : vector<128x1xf32>
    %c0_15 = arith.constant 0 : index
    %c0_16 = arith.constant 0 : index
    %31 = vector.load %arg9[%c0_15, %c0_16] : memref<128x1xf32, #tpu.memory_space<vmem>>, vector<128x1xf32>
    tpu.vector_store %arg9[%c0_15, %c0_16], %30 {strides = array<i32>} : memref<128x1xf32, #tpu.memory_space<vmem>>, vector<128x1xf32>,
    %c0_17 = arith.constant 0 : index
    %c0_18 = arith.constant 0 : index
    %32 = vector.load %arg10[%c0_17, %c0_18] : memref<128x128xf32, #tpu.memory_space<vmem>>, vector<128x128xf32>
    %33 = vector.broadcast %22 : vector<128x1xf32> to vector<128x128xf32>
    %34 = arith.mulf %33, %32 : vector<128x128xf32>
    %35 = arith.truncf %25 : vector<128x128xf32> to vector<128x128xbf16>
    %c0_19 = arith.constant 0 : index
    %c0_20 = arith.constant 0 : index
    %36 = vector.load %arg5[%c0_19, %c0_20] : memref<128x128xbf16, #tpu.memory_space<vmem>>, vector<128x128xbf16>
    %cst_21 = arith.constant dense<0.000000e+00> : vector<128x128xf32>
    %37 = tpu.matmul %35, %36, %cst_21 {dimension_numbers = #tpu.dot_dimension_numbers<[1], [0], [0], [1], [0, 0, 1, 1], [], []>} : vector<128x128xbf16>, vector<128x128xbf16>, vector<128x128xf32> -> vector<128x128xf32>
    %38 = arith.addf %34, %37 : vector<128x128xf32>
    %c0_22 = arith.constant 0 : index
    %c0_23 = arith.constant 0 : index
    %39 = vector.load %arg10[%c0_22, %c0_23] : memref<128x128xf32, #tpu.memory_space<vmem>>, vector<128x128xf32>
    tpu.vector_store %arg10[%c0_22, %c0_23], %38 {strides = array<i32>} : memref<128x128xf32, #tpu.memory_space<vmem>>, vector<128x128xf32>,
    %c0_24 = arith.constant 0 : index
    %c0_25 = arith.constant 0 : index
    %40 = vector.load %arg8[%c0_24, %c0_25] : memref<128x1xf32, #tpu.memory_space<vmem>>, vector<128x1xf32>
    tpu.vector_store %arg8[%c0_24, %c0_25], %19 {strides = array<i32>} : memref<128x1xf32, #tpu.memory_space<vmem>>, vector<128x1xf32>,
    %c0_i32_26 = arith.constant 0 : i32
    %41 = arith.cmpi eq, %arg1, %c0_i32_26 : i32
    %42 = arith.extui %41 : i1 to i32
    %c0_i32_27 = arith.constant 0 : i32
    %43 = arith.cmpi ne, %42, %c0_i32_27 : i32
    scf.if %43 {
      %c0_28 = arith.constant 0 : index
      %c0_29 = arith.constant 0 : index
      %44 = vector.load %arg10[%c0_28, %c0_29] : memref<128x128xf32, #tpu.memory_space<vmem>>, vector<128x128xf32>
      %c0_30 = arith.constant 0 : index
      %c0_31 = arith.constant 0 : index
      %45 = vector.load %arg9[%c0_30, %c0_31] : memref<128x1xf32, #tpu.memory_space<vmem>>, vector<128x1xf32>
      %46 = tpu.reciprocal %45 {approx = true} : vector<128x1xf32> -> vector<128x1xf32>
      %47 = vector.broadcast %46 : vector<128x1xf32> to vector<128x128xf32>
      %48 = arith.mulf %44, %47 : vector<128x128xf32>
      %c0_32 = arith.constant 0 : index
      %c0_33 = arith.constant 0 : index
      %49 = vector.load %arg6[%c0_32, %c0_33] : memref<1x128xf32, #tpu.memory_space<vmem>>, vector<1x128xf32>
      %50 = vector.broadcast %49 : vector<1x128xf32> to vector<128x128xf32>
      %51 = arith.addf %48, %50 : vector<128x128xf32>
      %cst_34 = arith.constant 0.000000e+00 : f32
      %52 = vector.broadcast %cst_34 : f32 to vector<128x128xf32>
      %53 = arith.maximumf %51, %52 : vector<128x128xf32>
      %54 = arith.truncf %53 : vector<128x128xf32> to vector<128x128xbf16>
      %c0_35 = arith.constant 0 : index
      %c0_36 = arith.constant 0 : index
      %55 = vector.load %arg7[%c0_35, %c0_36] : memref<128x128xbf16, #tpu.memory_space<vmem>>, vector<128x128xbf16>
      tpu.vector_store %arg7[%c0_35, %c0_36], %54 {strides = array<i32>} : memref<128x128xbf16, #tpu.memory_space<vmem>>, vector<128x128xbf16>,
    } else {
    }
    return
  }
  func.func @transform_0(%arg0: i32, %arg1: i32) -> (i32, i32) {
    %c0_i32 = arith.constant 0 : i32
    return %arg0, %arg1 : i32, i32
  }
  func.func @transform_1(%arg0: i32, %arg1: i32) -> (i32, i32) {
    %c0_i32 = arith.constant 0 : i32
    %c0_i32_0 = arith.constant 0 : i32
    return %arg0, %c0_i32 : i32, i32
  }
  func.func @transform_2(%arg0: i32, %arg1: i32) -> (i32, i32) {
    %c0_i32 = arith.constant 0 : i32
    %c0_i32_0 = arith.constant 0 : i32
    return %c0_i32, %arg1 : i32, i32
  }
  func.func @transform_3(%arg0: i32, %arg1: i32) -> (i32, i32) {
    %c0_i32 = arith.constant 0 : i32
    %c0_i32_0 = arith.constant 0 : i32
    return %arg1, %c0_i32 : i32, i32
  }
  func.func @transform_4(%arg0: i32, %arg1: i32) -> (i32, i32) {
    %c0_i32 = arith.constant 0 : i32
    %c0_i32_0 = arith.constant 0 : i32
    %c0_i32_1 = arith.constant 0 : i32
    return %c0_i32, %c0_i32_0 : i32, i32
  }
  func.func @transform_5(%arg0: i32, %arg1: i32) -> (i32, i32) {
    %c0_i32 = arith.constant 0 : i32
    %c0_i32_0 = arith.constant 0 : i32
    return %arg0, %c0_i32 : i32, i32
  }
}

module attributes {stable_mosaic.version = 11 : i64} {
  func.func @_qkv_kernel(%arg0: i32, %arg1: memref<128x128xbf16, #tpu.memory_space<vmem>>, %arg2: memref<128x128xbf16, #tpu.memory_space<vmem>>, %arg3: memref<1x128xf32, #tpu.memory_space<vmem>>, %arg4: memref<128x128xbf16, #tpu.memory_space<vmem>>, %arg5: memref<1x128xf32, #tpu.memory_space<vmem>>, %arg6: memref<128x128xbf16, #tpu.memory_space<vmem>>, %arg7: memref<1x128xf32, #tpu.memory_space<vmem>>, %arg8: memref<128x128xbf16, #tpu.memory_space<vmem>>, %arg9: memref<128x128xbf16, #tpu.memory_space<vmem>>, %arg10: memref<128x128xbf16, #tpu.memory_space<vmem>>) attributes {dimension_semantics = [#tpu.dimension_semantics<parallel>], iteration_bounds = array<i64: 1>, scalar_prefetch = 0 : i64, scratch_operands = 0 : i64, tpu.core_type = #tpu.core_type<tc>, window_params = [{transform_indices = @transform_0, window_bounds = array<i64: 128, 128>}, {pipeline_mode = #tpu.pipeline_mode<synchronous>, transform_indices = @transform_1, window_bounds = array<i64: 128, 128>}, {pipeline_mode = #tpu.pipeline_mode<synchronous>, transform_indices = @transform_2, window_bounds = array<i64: 1, 128>}, {pipeline_mode = #tpu.pipeline_mode<synchronous>, transform_indices = @transform_3, window_bounds = array<i64: 128, 128>}, {pipeline_mode = #tpu.pipeline_mode<synchronous>, transform_indices = @transform_4, window_bounds = array<i64: 1, 128>}, {pipeline_mode = #tpu.pipeline_mode<synchronous>, transform_indices = @transform_5, window_bounds = array<i64: 128, 128>}, {pipeline_mode = #tpu.pipeline_mode<synchronous>, transform_indices = @transform_6, window_bounds = array<i64: 1, 128>}, {transform_indices = @transform_7, window_bounds = array<i64: 128, 128>}, {transform_indices = @transform_8, window_bounds = array<i64: 128, 128>}, {transform_indices = @transform_9, window_bounds = array<i64: 128, 128>}]} {
    %c0 = arith.constant 0 : index
    %c0_0 = arith.constant 0 : index
    %0 = vector.load %arg1[%c0, %c0_0] : memref<128x128xbf16, #tpu.memory_space<vmem>>, vector<128x128xbf16>
    %c0_1 = arith.constant 0 : index
    %c0_2 = arith.constant 0 : index
    %1 = vector.load %arg2[%c0_1, %c0_2] : memref<128x128xbf16, #tpu.memory_space<vmem>>, vector<128x128xbf16>
    %cst = arith.constant dense<0.000000e+00> : vector<128x128xf32>
    %2 = tpu.matmul %0, %1, %cst {dimension_numbers = #tpu.dot_dimension_numbers<[1], [0], [0], [1], [0, 0, 1, 1], [], []>} : vector<128x128xbf16>, vector<128x128xbf16>, vector<128x128xf32> -> vector<128x128xf32>
    %c0_3 = arith.constant 0 : index
    %c0_4 = arith.constant 0 : index
    %3 = vector.load %arg3[%c0_3, %c0_4] : memref<1x128xf32, #tpu.memory_space<vmem>>, vector<1x128xf32>
    %4 = vector.broadcast %3 : vector<1x128xf32> to vector<128x128xf32>
    %5 = arith.addf %2, %4 : vector<128x128xf32>
    %6 = arith.truncf %5 : vector<128x128xf32> to vector<128x128xbf16>
    %c0_5 = arith.constant 0 : index
    %c0_6 = arith.constant 0 : index
    %7 = vector.load %arg8[%c0_5, %c0_6] : memref<128x128xbf16, #tpu.memory_space<vmem>>, vector<128x128xbf16>
    tpu.vector_store %arg8[%c0_5, %c0_6], %6 {strides = array<i32>} : memref<128x128xbf16, #tpu.memory_space<vmem>>, vector<128x128xbf16>,
    %c0_7 = arith.constant 0 : index
    %c0_8 = arith.constant 0 : index
    %8 = vector.load %arg4[%c0_7, %c0_8] : memref<128x128xbf16, #tpu.memory_space<vmem>>, vector<128x128xbf16>
    %cst_9 = arith.constant dense<0.000000e+00> : vector<128x128xf32>
    %9 = tpu.matmul %0, %8, %cst_9 {dimension_numbers = #tpu.dot_dimension_numbers<[1], [0], [0], [1], [0, 0, 1, 1], [], []>} : vector<128x128xbf16>, vector<128x128xbf16>, vector<128x128xf32> -> vector<128x128xf32>
    %c0_10 = arith.constant 0 : index
    %c0_11 = arith.constant 0 : index
    %10 = vector.load %arg5[%c0_10, %c0_11] : memref<1x128xf32, #tpu.memory_space<vmem>>, vector<1x128xf32>
    %11 = vector.broadcast %10 : vector<1x128xf32> to vector<128x128xf32>
    %12 = arith.addf %9, %11 : vector<128x128xf32>
    %13 = arith.truncf %12 : vector<128x128xf32> to vector<128x128xbf16>
    %c0_12 = arith.constant 0 : index
    %c0_13 = arith.constant 0 : index
    %14 = vector.load %arg9[%c0_12, %c0_13] : memref<128x128xbf16, #tpu.memory_space<vmem>>, vector<128x128xbf16>
    tpu.vector_store %arg9[%c0_12, %c0_13], %13 {strides = array<i32>} : memref<128x128xbf16, #tpu.memory_space<vmem>>, vector<128x128xbf16>,
    %c0_14 = arith.constant 0 : index
    %c0_15 = arith.constant 0 : index
    %15 = vector.load %arg6[%c0_14, %c0_15] : memref<128x128xbf16, #tpu.memory_space<vmem>>, vector<128x128xbf16>
    %cst_16 = arith.constant dense<0.000000e+00> : vector<128x128xf32>
    %16 = tpu.matmul %0, %15, %cst_16 {dimension_numbers = #tpu.dot_dimension_numbers<[1], [0], [0], [1], [0, 0, 1, 1], [], []>} : vector<128x128xbf16>, vector<128x128xbf16>, vector<128x128xf32> -> vector<128x128xf32>
    %c0_17 = arith.constant 0 : index
    %c0_18 = arith.constant 0 : index
    %17 = vector.load %arg7[%c0_17, %c0_18] : memref<1x128xf32, #tpu.memory_space<vmem>>, vector<1x128xf32>
    %18 = vector.broadcast %17 : vector<1x128xf32> to vector<128x128xf32>
    %19 = arith.addf %16, %18 : vector<128x128xf32>
    %20 = arith.truncf %19 : vector<128x128xf32> to vector<128x128xbf16>
    %c0_19 = arith.constant 0 : index
    %c0_20 = arith.constant 0 : index
    %21 = vector.load %arg10[%c0_19, %c0_20] : memref<128x128xbf16, #tpu.memory_space<vmem>>, vector<128x128xbf16>
    tpu.vector_store %arg10[%c0_19, %c0_20], %20 {strides = array<i32>} : memref<128x128xbf16, #tpu.memory_space<vmem>>, vector<128x128xbf16>,
    return
  }
  func.func @transform_0(%arg0: i32) -> (i32, i32) {
    %c0_i32 = arith.constant 0 : i32
    %c0_i32_0 = arith.constant 0 : i32
    return %arg0, %c0_i32 : i32, i32
  }
  func.func @transform_1(%arg0: i32) -> (i32, i32) {
    %c0_i32 = arith.constant 0 : i32
    %c0_i32_0 = arith.constant 0 : i32
    %c0_i32_1 = arith.constant 0 : i32
    return %c0_i32, %c0_i32_0 : i32, i32
  }
  func.func @transform_2(%arg0: i32) -> (i32, i32) {
    %c0_i32 = arith.constant 0 : i32
    %c0_i32_0 = arith.constant 0 : i32
    %c0_i32_1 = arith.constant 0 : i32
    return %c0_i32, %c0_i32_0 : i32, i32
  }
  func.func @transform_3(%arg0: i32) -> (i32, i32) {
    %c0_i32 = arith.constant 0 : i32
    %c0_i32_0 = arith.constant 0 : i32
    %c0_i32_1 = arith.constant 0 : i32
    return %c0_i32, %c0_i32_0 : i32, i32
  }
  func.func @transform_4(%arg0: i32) -> (i32, i32) {
    %c0_i32 = arith.constant 0 : i32
    %c0_i32_0 = arith.constant 0 : i32
    %c0_i32_1 = arith.constant 0 : i32
    return %c0_i32, %c0_i32_0 : i32, i32
  }
  func.func @transform_5(%arg0: i32) -> (i32, i32) {
    %c0_i32 = arith.constant 0 : i32
    %c0_i32_0 = arith.constant 0 : i32
    %c0_i32_1 = arith.constant 0 : i32
    return %c0_i32, %c0_i32_0 : i32, i32
  }
  func.func @transform_6(%arg0: i32) -> (i32, i32) {
    %c0_i32 = arith.constant 0 : i32
    %c0_i32_0 = arith.constant 0 : i32
    %c0_i32_1 = arith.constant 0 : i32
    return %c0_i32, %c0_i32_0 : i32, i32
  }
  func.func @transform_7(%arg0: i32) -> (i32, i32) {
    %c0_i32 = arith.constant 0 : i32
    %c0_i32_0 = arith.constant 0 : i32
    return %arg0, %c0_i32 : i32, i32
  }
  func.func @transform_8(%arg0: i32) -> (i32, i32) {
    %c0_i32 = arith.constant 0 : i32
    %c0_i32_0 = arith.constant 0 : i32
    return %arg0, %c0_i32 : i32, i32
  }
  func.func @transform_9(%arg0: i32) -> (i32, i32) {
    %c0_i32 = arith.constant 0 : i32
    %c0_i32_0 = arith.constant 0 : i32
    return %arg0, %c0_i32 : i32, i32
  }
}

module attributes {stable_mosaic.version = 11 : i64} {
  func.func @_gat_proj_kernel(%arg0: i32, %arg1: memref<128x128xbf16, #tpu.memory_space<vmem>>, %arg2: memref<128x128xbf16, #tpu.memory_space<vmem>>, %arg3: memref<1x128xf32, #tpu.memory_space<vmem>>, %arg4: memref<1x128xf32, #tpu.memory_space<vmem>>, %arg5: memref<128x128xbf16, #tpu.memory_space<vmem>>, %arg6: memref<128x1xf32, #tpu.memory_space<vmem>>, %arg7: memref<128x1xf32, #tpu.memory_space<vmem>>) attributes {dimension_semantics = [#tpu.dimension_semantics<parallel>], iteration_bounds = array<i64: 1>, scalar_prefetch = 0 : i64, scratch_operands = 0 : i64, tpu.core_type = #tpu.core_type<tc>, window_params = [{transform_indices = @transform_0, window_bounds = array<i64: 128, 128>}, {pipeline_mode = #tpu.pipeline_mode<synchronous>, transform_indices = @transform_1, window_bounds = array<i64: 128, 128>}, {pipeline_mode = #tpu.pipeline_mode<synchronous>, transform_indices = @transform_2, window_bounds = array<i64: 1, 128>}, {pipeline_mode = #tpu.pipeline_mode<synchronous>, transform_indices = @transform_3, window_bounds = array<i64: 1, 128>}, {transform_indices = @transform_4, window_bounds = array<i64: 128, 128>}, {transform_indices = @transform_5, window_bounds = array<i64: 128, 1>}, {transform_indices = @transform_6, window_bounds = array<i64: 128, 1>}]} {
    %c0 = arith.constant 0 : index
    %c0_0 = arith.constant 0 : index
    %0 = vector.load %arg1[%c0, %c0_0] : memref<128x128xbf16, #tpu.memory_space<vmem>>, vector<128x128xbf16>
    %c0_1 = arith.constant 0 : index
    %c0_2 = arith.constant 0 : index
    %1 = vector.load %arg2[%c0_1, %c0_2] : memref<128x128xbf16, #tpu.memory_space<vmem>>, vector<128x128xbf16>
    %cst = arith.constant dense<0.000000e+00> : vector<128x128xf32>
    %2 = tpu.matmul %0, %1, %cst {dimension_numbers = #tpu.dot_dimension_numbers<[1], [0], [0], [1], [0, 0, 1, 1], [], []>} : vector<128x128xbf16>, vector<128x128xbf16>, vector<128x128xf32> -> vector<128x128xf32>
    %3 = arith.truncf %2 : vector<128x128xf32> to vector<128x128xbf16>
    %c0_3 = arith.constant 0 : index
    %c0_4 = arith.constant 0 : index
    %4 = vector.load %arg5[%c0_3, %c0_4] : memref<128x128xbf16, #tpu.memory_space<vmem>>, vector<128x128xbf16>
    tpu.vector_store %arg5[%c0_3, %c0_4], %3 {strides = array<i32>} : memref<128x128xbf16, #tpu.memory_space<vmem>>, vector<128x128xbf16>,
    %c0_5 = arith.constant 0 : index
    %c0_6 = arith.constant 0 : index
    %5 = vector.load %arg3[%c0_5, %c0_6] : memref<1x128xf32, #tpu.memory_space<vmem>>, vector<1x128xf32>
    %6 = vector.broadcast %5 : vector<1x128xf32> to vector<128x128xf32>
    %7 = arith.mulf %2, %6 : vector<128x128xf32>
    %cst_7 = arith.constant dense<0.000000e+00> : vector<128xf32>
    %8 = vector.multi_reduction <add>, %7, %cst_7 [1] : vector<128x128xf32> to vector<128xf32>
    %9 = vector.shape_cast %8 : vector<128xf32> to vector<128x1xf32>
    %c0_8 = arith.constant 0 : index
    %c0_9 = arith.constant 0 : index
    %10 = vector.load %arg6[%c0_8, %c0_9] : memref<128x1xf32, #tpu.memory_space<vmem>>, vector<128x1xf32>
    tpu.vector_store %arg6[%c0_8, %c0_9], %9 {strides = array<i32>} : memref<128x1xf32, #tpu.memory_space<vmem>>, vector<128x1xf32>,
    %c0_10 = arith.constant 0 : index
    %c0_11 = arith.constant 0 : index
    %11 = vector.load %arg4[%c0_10, %c0_11] : memref<1x128xf32, #tpu.memory_space<vmem>>, vector<1x128xf32>
    %12 = vector.broadcast %11 : vector<1x128xf32> to vector<128x128xf32>
    %13 = arith.mulf %2, %12 : vector<128x128xf32>
    %cst_12 = arith.constant dense<0.000000e+00> : vector<128xf32>
    %14 = vector.multi_reduction <add>, %13, %cst_12 [1] : vector<128x128xf32> to vector<128xf32>
    %15 = vector.shape_cast %14 : vector<128xf32> to vector<128x1xf32>
    %c0_13 = arith.constant 0 : index
    %c0_14 = arith.constant 0 : index
    %16 = vector.load %arg7[%c0_13, %c0_14] : memref<128x1xf32, #tpu.memory_space<vmem>>, vector<128x1xf32>
    tpu.vector_store %arg7[%c0_13, %c0_14], %15 {strides = array<i32>} : memref<128x1xf32, #tpu.memory_space<vmem>>, vector<128x1xf32>,
    return
  }
  func.func @transform_0(%arg0: i32) -> (i32, i32) {
    %c0_i32 = arith.constant 0 : i32
    %c0_i32_0 = arith.constant 0 : i32
    return %arg0, %c0_i32 : i32, i32
  }
  func.func @transform_1(%arg0: i32) -> (i32, i32) {
    %c0_i32 = arith.constant 0 : i32
    %c0_i32_0 = arith.constant 0 : i32
    %c0_i32_1 = arith.constant 0 : i32
    return %c0_i32, %c0_i32_0 : i32, i32
  }
  func.func @transform_2(%arg0: i32) -> (i32, i32) {
    %c0_i32 = arith.constant 0 : i32
    %c0_i32_0 = arith.constant 0 : i32
    %c0_i32_1 = arith.constant 0 : i32
    return %c0_i32, %c0_i32_0 : i32, i32
  }
  func.func @transform_3(%arg0: i32) -> (i32, i32) {
    %c0_i32 = arith.constant 0 : i32
    %c0_i32_0 = arith.constant 0 : i32
    %c0_i32_1 = arith.constant 0 : i32
    return %c0_i32, %c0_i32_0 : i32, i32
  }
  func.func @transform_4(%arg0: i32) -> (i32, i32) {
    %c0_i32 = arith.constant 0 : i32
    %c0_i32_0 = arith.constant 0 : i32
    return %arg0, %c0_i32 : i32, i32
  }
  func.func @transform_5(%arg0: i32) -> (i32, i32) {
    %c0_i32 = arith.constant 0 : i32
    %c0_i32_0 = arith.constant 0 : i32
    return %arg0, %c0_i32 : i32, i32
  }
  func.func @transform_6(%arg0: i32) -> (i32, i32) {
    %c0_i32 = arith.constant 0 : i32
    %c0_i32_0 = arith.constant 0 : i32
    return %arg0, %c0_i32 : i32, i32
  }
}

module attributes {stable_mosaic.version = 11 : i64} {
  func.func @_spatial_agg_kernel(%arg0: i32, %arg1: i32, %arg2: memref<128x128xbf16, #tpu.memory_space<vmem>>, %arg3: memref<128x128xbf16, #tpu.memory_space<vmem>>, %arg4: memref<128x128xbf16, #tpu.memory_space<vmem>>, %arg5: memref<1x128xf32, #tpu.memory_space<vmem>>, %arg6: memref<128x128xbf16, #tpu.memory_space<vmem>>, %arg7: memref<1x128xf32, #tpu.memory_space<vmem>>, %arg8: memref<128x128xf32, #tpu.memory_space<vmem>>, %arg9: memref<128x1xf32, #tpu.memory_space<vmem>>, %arg10: memref<128x1xf32, #tpu.memory_space<vmem>>, %arg11: memref<128x128xf32, #tpu.memory_space<vmem>>) attributes {dimension_semantics = [#tpu.dimension_semantics<parallel>, #tpu.dimension_semantics<arbitrary>], iteration_bounds = array<i64: 1, 1>, scalar_prefetch = 0 : i64, scratch_operands = 3 : i64, tpu.core_type = #tpu.core_type<tc>, window_params = [{transform_indices = @transform_0, window_bounds = array<i64: 128, 128>}, {transform_indices = @transform_1, window_bounds = array<i64: 128, 128>}, {transform_indices = @transform_2, window_bounds = array<i64: 128, 128>}, {transform_indices = @transform_3, window_bounds = array<i64: 1, 128>}, {pipeline_mode = #tpu.pipeline_mode<synchronous>, transform_indices = @transform_4, window_bounds = array<i64: 128, 128>}, {pipeline_mode = #tpu.pipeline_mode<synchronous>, transform_indices = @transform_5, window_bounds = array<i64: 1, 128>}, {transform_indices = @transform_6, window_bounds = array<i64: 128, 128>}]} {
    %c0_i32 = arith.constant 0 : i32
    %0 = arith.cmpi eq, %arg1, %c0_i32 : i32
    %1 = arith.extui %0 : i1 to i32
    %c0_i32_0 = arith.constant 0 : i32
    %2 = arith.cmpi ne, %1, %c0_i32_0 : i32
    scf.if %2 {
      %cst_28 = arith.constant -1.000000e+30 : f32
      %39 = vector.broadcast %cst_28 : f32 to vector<128x1xf32>
      %c0_29 = arith.constant 0 : index
      %c0_30 = arith.constant 0 : index
      %40 = vector.load %arg9[%c0_29, %c0_30] : memref<128x1xf32, #tpu.memory_space<vmem>>, vector<128x1xf32>
      tpu.vector_store %arg9[%c0_29, %c0_30], %39 {strides = array<i32>} : memref<128x1xf32, #tpu.memory_space<vmem>>, vector<128x1xf32>,
      %cst_31 = arith.constant 0.000000e+00 : f32
      %41 = vector.broadcast %cst_31 : f32 to vector<128x1xf32>
      %c0_32 = arith.constant 0 : index
      %c0_33 = arith.constant 0 : index
      %42 = vector.load %arg10[%c0_32, %c0_33] : memref<128x1xf32, #tpu.memory_space<vmem>>, vector<128x1xf32>
      tpu.vector_store %arg10[%c0_32, %c0_33], %41 {strides = array<i32>} : memref<128x1xf32, #tpu.memory_space<vmem>>, vector<128x1xf32>,
      %cst_34 = arith.constant 0.000000e+00 : f32
      %43 = vector.broadcast %cst_34 : f32 to vector<128x128xf32>
      %c0_35 = arith.constant 0 : index
      %c0_36 = arith.constant 0 : index
      %44 = vector.load %arg11[%c0_35, %c0_36] : memref<128x128xf32, #tpu.memory_space<vmem>>, vector<128x128xf32>
      tpu.vector_store %arg11[%c0_35, %c0_36], %43 {strides = array<i32>} : memref<128x128xf32, #tpu.memory_space<vmem>>, vector<128x128xf32>,
    } else {
    }
    %c0 = arith.constant 0 : index
    %c0_1 = arith.constant 0 : index
    %3 = vector.load %arg2[%c0, %c0_1] : memref<128x128xbf16, #tpu.memory_space<vmem>>, vector<128x128xbf16>
    %c0_2 = arith.constant 0 : index
    %c0_3 = arith.constant 0 : index
    %4 = vector.load %arg3[%c0_2, %c0_3] : memref<128x128xbf16, #tpu.memory_space<vmem>>, vector<128x128xbf16>
    %cst = arith.constant dense<0.000000e+00> : vector<128x128xf32>
    %5 = tpu.matmul %3, %4, %cst {dimension_numbers = #tpu.dot_dimension_numbers<[1], [1], [0], [0], [0, 0, 1, 0], [], []>} : vector<128x128xbf16>, vector<128x128xbf16>, vector<128x128xf32> -> vector<128x128xf32>
    %cst_4 = arith.constant 0.176776692 : f32
    %6 = vector.broadcast %cst_4 : f32 to vector<128x128xf32>
    %7 = arith.mulf %5, %6 : vector<128x128xf32>
    %c0_5 = arith.constant 0 : index
    %c0_6 = arith.constant 0 : index
    %8 = vector.load %arg5[%c0_5, %c0_6] : memref<1x128xf32, #tpu.memory_space<vmem>>, vector<1x128xf32>
    %9 = vector.broadcast %8 : vector<1x128xf32> to vector<128x128xf32>
    %10 = arith.addf %7, %9 : vector<128x128xf32>
    %c0_7 = arith.constant 0 : index
    %c0_8 = arith.constant 0 : index
    %11 = vector.load %arg9[%c0_7, %c0_8] : memref<128x1xf32, #tpu.memory_space<vmem>>, vector<128x1xf32>
    %cst_9 = arith.constant dense<0xFF800000> : vector<128xf32>
    %12 = vector.multi_reduction <maximumf>, %10, %cst_9 [1] : vector<128x128xf32> to vector<128xf32>
    %13 = vector.shape_cast %12 : vector<128xf32> to vector<128x1xf32>
    %14 = arith.maximumf %11, %13 : vector<128x1xf32>
    %c0_10 = arith.constant 0 : index
    %c0_11 = arith.constant 0 : index
    %15 = vector.load %arg9[%c0_10, %c0_11] : memref<128x1xf32, #tpu.memory_space<vmem>>, vector<128x1xf32>
    %16 = arith.subf %15, %14 : vector<128x1xf32>
    %17 = math.exp %16 : vector<128x1xf32>
    %18 = vector.broadcast %14 : vector<128x1xf32> to vector<128x128xf32>
    %19 = arith.subf %10, %18 : vector<128x128xf32>
    %20 = math.exp %19 : vector<128x128xf32>
    %c0_12 = arith.constant 0 : index
    %c0_13 = arith.constant 0 : index
    %21 = vector.load %arg10[%c0_12, %c0_13] : memref<128x1xf32, #tpu.memory_space<vmem>>, vector<128x1xf32>
    %22 = arith.mulf %17, %21 : vector<128x1xf32>
    %cst_14 = arith.constant dense<0.000000e+00> : vector<128xf32>
    %23 = vector.multi_reduction <add>, %20, %cst_14 [1] : vector<128x128xf32> to vector<128xf32>
    %24 = vector.shape_cast %23 : vector<128xf32> to vector<128x1xf32>
    %25 = arith.addf %22, %24 : vector<128x1xf32>
    %c0_15 = arith.constant 0 : index
    %c0_16 = arith.constant 0 : index
    %26 = vector.load %arg10[%c0_15, %c0_16] : memref<128x1xf32, #tpu.memory_space<vmem>>, vector<128x1xf32>
    tpu.vector_store %arg10[%c0_15, %c0_16], %25 {strides = array<i32>} : memref<128x1xf32, #tpu.memory_space<vmem>>, vector<128x1xf32>,
    %c0_17 = arith.constant 0 : index
    %c0_18 = arith.constant 0 : index
    %27 = vector.load %arg11[%c0_17, %c0_18] : memref<128x128xf32, #tpu.memory_space<vmem>>, vector<128x128xf32>
    %28 = vector.broadcast %17 : vector<128x1xf32> to vector<128x128xf32>
    %29 = arith.mulf %28, %27 : vector<128x128xf32>
    %30 = arith.truncf %20 : vector<128x128xf32> to vector<128x128xbf16>
    %c0_19 = arith.constant 0 : index
    %c0_20 = arith.constant 0 : index
    %31 = vector.load %arg4[%c0_19, %c0_20] : memref<128x128xbf16, #tpu.memory_space<vmem>>, vector<128x128xbf16>
    %cst_21 = arith.constant dense<0.000000e+00> : vector<128x128xf32>
    %32 = tpu.matmul %30, %31, %cst_21 {dimension_numbers = #tpu.dot_dimension_numbers<[1], [0], [0], [1], [0, 0, 1, 1], [], []>} : vector<128x128xbf16>, vector<128x128xbf16>, vector<128x128xf32> -> vector<128x128xf32>
    %33 = arith.addf %29, %32 : vector<128x128xf32>
    %c0_22 = arith.constant 0 : index
    %c0_23 = arith.constant 0 : index
    %34 = vector.load %arg11[%c0_22, %c0_23] : memref<128x128xf32, #tpu.memory_space<vmem>>, vector<128x128xf32>
    tpu.vector_store %arg11[%c0_22, %c0_23], %33 {strides = array<i32>} : memref<128x128xf32, #tpu.memory_space<vmem>>, vector<128x128xf32>,
    %c0_24 = arith.constant 0 : index
    %c0_25 = arith.constant 0 : index
    %35 = vector.load %arg9[%c0_24, %c0_25] : memref<128x1xf32, #tpu.memory_space<vmem>>, vector<128x1xf32>
    tpu.vector_store %arg9[%c0_24, %c0_25], %14 {strides = array<i32>} : memref<128x1xf32, #tpu.memory_space<vmem>>, vector<128x1xf32>,
    %c0_i32_26 = arith.constant 0 : i32
    %36 = arith.cmpi eq, %arg1, %c0_i32_26 : i32
    %37 = arith.extui %36 : i1 to i32
    %c0_i32_27 = arith.constant 0 : i32
    %38 = arith.cmpi ne, %37, %c0_i32_27 : i32
    scf.if %38 {
      %c0_28 = arith.constant 0 : index
      %c0_29 = arith.constant 0 : index
      %39 = vector.load %arg11[%c0_28, %c0_29] : memref<128x128xf32, #tpu.memory_space<vmem>>, vector<128x128xf32>
      %c0_30 = arith.constant 0 : index
      %c0_31 = arith.constant 0 : index
      %40 = vector.load %arg10[%c0_30, %c0_31] : memref<128x1xf32, #tpu.memory_space<vmem>>, vector<128x1xf32>
      %41 = tpu.reciprocal %40 {approx = true} : vector<128x1xf32> -> vector<128x1xf32>
      %42 = vector.broadcast %41 : vector<128x1xf32> to vector<128x128xf32>
      %43 = arith.mulf %39, %42 : vector<128x128xf32>
      %44 = arith.truncf %43 : vector<128x128xf32> to vector<128x128xbf16>
      %c0_32 = arith.constant 0 : index
      %c0_33 = arith.constant 0 : index
      %45 = vector.load %arg6[%c0_32, %c0_33] : memref<128x128xbf16, #tpu.memory_space<vmem>>, vector<128x128xbf16>
      %cst_34 = arith.constant dense<0.000000e+00> : vector<128x128xf32>
      %46 = tpu.matmul %44, %45, %cst_34 {dimension_numbers = #tpu.dot_dimension_numbers<[1], [0], [0], [1], [0, 0, 1, 1], [], []>} : vector<128x128xbf16>, vector<128x128xbf16>, vector<128x128xf32> -> vector<128x128xf32>
      %c0_35 = arith.constant 0 : index
      %c0_36 = arith.constant 0 : index
      %47 = vector.load %arg7[%c0_35, %c0_36] : memref<1x128xf32, #tpu.memory_space<vmem>>, vector<1x128xf32>
      %48 = vector.broadcast %47 : vector<1x128xf32> to vector<128x128xf32>
      %49 = arith.addf %46, %48 : vector<128x128xf32>
      %c0_37 = arith.constant 0 : index
      %c0_38 = arith.constant 0 : index
      %50 = vector.load %arg8[%c0_37, %c0_38] : memref<128x128xf32, #tpu.memory_space<vmem>>, vector<128x128xf32>
      tpu.vector_store %arg8[%c0_37, %c0_38], %49 {strides = array<i32>} : memref<128x128xf32, #tpu.memory_space<vmem>>, vector<128x128xf32>,
    } else {
    }
    return
  }
  func.func @transform_0(%arg0: i32, %arg1: i32) -> (i32, i32) {
    %c0_i32 = arith.constant 0 : i32
    %c0_i32_0 = arith.constant 0 : i32
    return %arg0, %c0_i32 : i32, i32
  }
  func.func @transform_1(%arg0: i32, %arg1: i32) -> (i32, i32) {
    %c0_i32 = arith.constant 0 : i32
    %c0_i32_0 = arith.constant 0 : i32
    return %arg1, %c0_i32 : i32, i32
  }
  func.func @transform_2(%arg0: i32, %arg1: i32) -> (i32, i32) {
    %c0_i32 = arith.constant 0 : i32
    %c0_i32_0 = arith.constant 0 : i32
    return %arg1, %c0_i32 : i32, i32
  }
  func.func @transform_3(%arg0: i32, %arg1: i32) -> (i32, i32) {
    %c0_i32 = arith.constant 0 : i32
    %c0_i32_0 = arith.constant 0 : i32
    return %c0_i32, %arg1 : i32, i32
  }
  func.func @transform_4(%arg0: i32, %arg1: i32) -> (i32, i32) {
    %c0_i32 = arith.constant 0 : i32
    %c0_i32_0 = arith.constant 0 : i32
    %c0_i32_1 = arith.constant 0 : i32
    return %c0_i32, %c0_i32_0 : i32, i32
  }
  func.func @transform_5(%arg0: i32, %arg1: i32) -> (i32, i32) {
    %c0_i32 = arith.constant 0 : i32
    %c0_i32_0 = arith.constant 0 : i32
    %c0_i32_1 = arith.constant 0 : i32
    return %c0_i32, %c0_i32_0 : i32, i32
  }
  func.func @transform_6(%arg0: i32, %arg1: i32) -> (i32, i32) {
    %c0_i32 = arith.constant 0 : i32
    %c0_i32_0 = arith.constant 0 : i32
    return %arg0, %c0_i32 : i32, i32
  }
}

</mosaic_0001>

<bundles_post_ra>
// kernel: configurable_gnn_forward.10
= control target key start
LH: loop header
LB: loop body
LE: loop exit
PB: predicated region body
PF: predicated region fallthrough
CT: control target
= control target key end

     0   :  { %s583_s1 = inlined_call_operand.vmem [shape: bf16[128,128], index: 1, kind: input, shape index: {}]   ;;  %s584_s0 = inlined_call_operand.vmem [shape: bf16[128,128], index: 0, kind: input, shape index: {}]   ;;  %s585_s2 = inlined_call_operand.vmem [shape: bf16[128,128], index: 2, kind: output, shape index: {}]  }
   0x1   :  { %v480_v0 = vld [vmem:[%s583_s1 + $0x38] sm:$0xff]   ;;  %v481_v1 = vld [vmem:[%s583_s1 + $0x30] sm:$0xff]   ;;  %v482_v2 = vld [vmem:[%s583_s1 + $0x28] sm:$0xff]  }
   0x2   :  { %432 = vmatprep.subr.bf16.mxu0 %v480_v0  ;;  %464 = vmatprep.subr.bf16.mxu1 %v480_v0  ;;  %v483_v3 = vld [vmem:[%s583_s1 + $0x20] sm:$0xff]   ;;  %v484_v6 = vld [vmem:[%s583_s1 + $0x18] sm:$0xff]   ;;  %v485_v7 = vld [vmem:[%s583_s1 + $0x10] sm:$0xff]  }
   0x3   :  { %433 = vmatpush3.bf16.msra.mxu0 %v480_v0  ;;  %472 = vmatpush3.bf16.msra.mxu1 %v480_v0  ;;  %v488_v4 = vld [vmem:[%s584_s0] sm:$0xff]   ;;  %v486_v8 = vld [vmem:[%s583_s1 + $0x8] sm:$0xff]   ;;  %v492_v12 = vld [vmem:[%s584_s0 + $0x10] sm:$0xff]  }
   0x4   :  { %434 = vmatprep.subr.bf16.mxu0 %v481_v1  ;;  %465 = vmatprep.subr.bf16.mxu1 %v481_v1  ;;  %v489_v5 = vld [vmem:[%s584_s0 + $0x20] sm:$0xff]   ;;  %v490_v10 = vld [vmem:[%s584_s0 + $0x8] sm:$0xff]   ;;  %v493_v13 = vld [vmem:[%s584_s0 + $0x30] sm:$0xff]  }
   0x5   :  { %448 = vmatprep.mubr.bf16.mxu0 %v488_v4  ;;  %456 = vmatprep.mubr.bf16.mxu1 %v489_v5  ;;  %v487_v9 = vld [vmem:[%s583_s1] sm:$0xff]   ;;  %v491_v11 = vld [vmem:[%s584_s0 + $0x28] sm:$0xff]   ;;  %v494_v14 = vld [vmem:[%s584_s0 + $0x18] sm:$0xff]  }
   0x6   :  { %v495_v15 = vld [vmem:[%s584_s0 + $0x38] sm:$0xff]  }
   0x7   :  { %435 = vmatpush3.bf16.msra.mxu0 %v481_v1  ;;  %473 = vmatpush3.bf16.msra.mxu1 %v481_v1 }
   0x8   :  { %436 = vmatprep.subr.bf16.mxu0 %v482_v2  ;;  %466 = vmatprep.subr.bf16.mxu1 %v482_v2 }
   0xb   :  { %437 = vmatpush3.bf16.msra.mxu0 %v482_v2  ;;  %474 = vmatpush3.bf16.msra.mxu1 %v482_v2 }
   0xc   :  { %438 = vmatprep.subr.bf16.mxu0 %v483_v3  ;;  %467 = vmatprep.subr.bf16.mxu1 %v483_v3 }
   0xf   :  { %439 = vmatpush3.bf16.msra.mxu0 %v483_v3  ;;  %475 = vmatpush3.bf16.msra.mxu1 %v483_v3 }
  0x10   :  { %440 = vmatprep.subr.bf16.mxu0 %v484_v6  ;;  %468 = vmatprep.subr.bf16.mxu1 %v484_v6 }
  0x13   :  { %441 = vmatpush3.bf16.msra.mxu0 %v484_v6  ;;  %476 = vmatpush3.bf16.msra.mxu1 %v484_v6 }
  0x14   :  { %442 = vmatprep.subr.bf16.mxu0 %v485_v7  ;;  %469 = vmatprep.subr.bf16.mxu1 %v485_v7 }
  0x17   :  { %443 = vmatpush3.bf16.msra.mxu0 %v485_v7  ;;  %477 = vmatpush3.bf16.msra.mxu1 %v485_v7 }
  0x18   :  { %444 = vmatprep.subr.bf16.mxu0 %v486_v8  ;;  %470 = vmatprep.subr.bf16.mxu1 %v486_v8 }
  0x1b   :  { %445 = vmatpush3.bf16.msra.mxu0 %v486_v8  ;;  %478 = vmatpush3.bf16.msra.mxu1 %v486_v8 }
  0x1c   :  { %446 = vmatprep.subr.bf16.mxu0 %v487_v9  ;;  %471 = vmatprep.subr.bf16.mxu1 %v487_v9 }
  0x1f   :  { %447 = vmatpush3.bf16.msra.mxu0 %v487_v9  ;;  %479 = vmatpush3.bf16.msra.mxu1 %v487_v9 }
  0x22   :  { %449 = vmatmul.mubr.bf16.vlgmr.msra.gmra.mxu0 %v490_v10  ;;  %457 = vmatmul.mubr.bf16.vlgmr.msra.gmra.mxu1 %v491_v11 }
  0x23   :  { %452 = vmatprep.mubr.bf16.mxu0 %v492_v12  ;;  %460 = vmatprep.mubr.bf16.mxu1 %v493_v13 }
  0x2a   :  { %453 = vmatmul.mubr.bf16.gmra.mxu0 %v494_v14  ;;  %461 = vmatmul.mubr.bf16.gmra.mxu1 %v495_v15 }
  0xe2   :  { %v450_v16 = vpop.f32.mrf.mxu0  ;;  %v458_v17 = vpop.f32.mrf.mxu1 }
  0xe4   :  { %v174_v18 = vpop.f32.mrf.mxu0  ;;  %v206_v19 = vpop.f32.mrf.mxu1 }
  0xe6   :  { %v451_v20 = vpop.f32.mrf.mxu0  ;;  %v459_v21 = vpop.f32.mrf.mxu1 }
  0xe7   :  { %v377_v22 = vpack.c.bf16 %v451_v20, %v450_v16  ;;  %v397_v23 = vpack.c.bf16 %v459_v21, %v458_v17 }
  0xe8   :  { %v177_v24 = vpop.f32.mrf.mxu0  ;;  %v209_v25 = vpop.f32.mrf.mxu1 }
  0xe9   :  { %409 = vst [vmem:[%s585_s2 + $0x8] sm:$0xff] %v377_v22   ;;  %413 = vst [vmem:[%s585_s2 + $0x28] sm:$0xff] %v397_v23   ;;  %v372_v26 = vpack.c.bf16 %v177_v24, %v174_v18  ;;  %v392_v27 = vpack.c.bf16 %v209_v25, %v206_v19 }
  0xea   :  { %v454_v28 = vpop.f32.mrf.mxu0  ;;  %v462_v29 = vpop.f32.mrf.mxu1 }
  0xeb   :  { %373 = vst [vmem:[%s585_s2] sm:$0xff] %v372_v26   ;;  %412 = vst [vmem:[%s585_s2 + $0x20] sm:$0xff] %v392_v27  }
  0xec   :  { %v190_v30 = vpop.f32.mrf.mxu0  ;;  %v222_v31 = vpop.f32.mrf.mxu1 }
  0xee   :  { %v455_v32 = vpop.f32.mrf.mxu0  ;;  %v463_v33 = vpop.f32.mrf.mxu1 }
  0xef   :  { %v387_v34 = vpack.c.bf16 %v455_v32, %v454_v28  ;;  %v407_v35 = vpack.c.bf16 %v463_v33, %v462_v29 }
  0xf0   :  { %v193_v36 = vpop.f32.mrf.mxu0  ;;  %v225_v37 = vpop.f32.mrf.mxu1 }
  0xf1   :  { %411 = vst [vmem:[%s585_s2 + $0x18] sm:$0xff] %v387_v34   ;;  %415 = vst [vmem:[%s585_s2 + $0x38] sm:$0xff] %v407_v35   ;;  %v382_v38 = vpack.c.bf16 %v193_v36, %v190_v30  ;;  %v402_v39 = vpack.c.bf16 %v225_v37, %v222_v31 }
  0xf3   :  { %410 = vst [vmem:[%s585_s2 + $0x10] sm:$0xff] %v382_v38   ;;  %414 = vst [vmem:[%s585_s2 + $0x30] sm:$0xff] %v402_v39  }

// kernel: configurable_gnn_forward.11
= control target key start
LH: loop header
LB: loop body
LE: loop exit
PB: predicated region body
PF: predicated region fallthrough
CT: control target
= control target key end

     0   :  { %s721_s1 = inlined_call_operand.vmem [shape: bf16[128,128], index: 1, kind: input, shape index: {}]   ;;  %s722_s0 = inlined_call_operand.vmem [shape: bf16[128,128], index: 0, kind: input, shape index: {}]   ;;  %s723_s2 = inlined_call_operand.vmem [shape: f32[1,128], index: 2, kind: input, shape index: {}]   ;;  %s724_s3 = inlined_call_operand.vmem [shape: bf16[128,128], index: 3, kind: output, shape index: {}]  }
   0x1   :  { %v610_v0 = vld [vmem:[%s721_s1 + $0x38] sm:$0xff]   ;;  %v611_v1 = vld [vmem:[%s721_s1 + $0x30] sm:$0xff]   ;;  %v612_v2 = vld [vmem:[%s721_s1 + $0x28] sm:$0xff]  }
   0x2   :  { %562 = vmatprep.subr.bf16.mxu0 %v610_v0  ;;  %594 = vmatprep.subr.bf16.mxu1 %v610_v0  ;;  %v613_v3 = vld [vmem:[%s721_s1 + $0x20] sm:$0xff]   ;;  %v614_v6 = vld [vmem:[%s721_s1 + $0x18] sm:$0xff]   ;;  %v615_v7 = vld [vmem:[%s721_s1 + $0x10] sm:$0xff]  }
   0x3   :  { %563 = vmatpush3.bf16.msra.mxu0 %v610_v0  ;;  %602 = vmatpush3.bf16.msra.mxu1 %v610_v0  ;;  %v618_v4 = vld [vmem:[%s722_s0] sm:$0xff]   ;;  %v616_v8 = vld [vmem:[%s721_s1 + $0x8] sm:$0xff]   ;;  %v622_v12 = vld [vmem:[%s722_s0 + $0x10] sm:$0xff]  }
   0x4   :  { %564 = vmatprep.subr.bf16.mxu0 %v611_v1  ;;  %595 = vmatprep.subr.bf16.mxu1 %v611_v1  ;;  %v619_v5 = vld [vmem:[%s722_s0 + $0x20] sm:$0xff]   ;;  %v620_v10 = vld [vmem:[%s722_s0 + $0x8] sm:$0xff]   ;;  %v623_v13 = vld [vmem:[%s722_s0 + $0x30] sm:$0xff]  }
   0x5   :  { %578 = vmatprep.mubr.bf16.mxu0 %v618_v4  ;;  %586 = vmatprep.mubr.bf16.mxu1 %v619_v5  ;;  %v617_v9 = vld [vmem:[%s721_s1] sm:$0xff]   ;;  %v621_v11 = vld [vmem:[%s722_s0 + $0x28] sm:$0xff]   ;;  %v624_v14 = vld [vmem:[%s722_s0 + $0x18] sm:$0xff]  }
   0x6   :  { %v625_v15 = vld [vmem:[%s722_s0 + $0x38] sm:$0xff]   ;;  %v466_v16 = vld [vmem:[%s723_s2] ss:$0 sm:$0xff] }
   0x7   :  { %565 = vmatpush3.bf16.msra.mxu0 %v611_v1  ;;  %603 = vmatpush3.bf16.msra.mxu1 %v611_v1 }
   0x8   :  { %566 = vmatprep.subr.bf16.mxu0 %v612_v2  ;;  %596 = vmatprep.subr.bf16.mxu1 %v612_v2 }
   0xb   :  { %567 = vmatpush3.bf16.msra.mxu0 %v612_v2  ;;  %604 = vmatpush3.bf16.msra.mxu1 %v612_v2 }
   0xc   :  { %568 = vmatprep.subr.bf16.mxu0 %v613_v3  ;;  %597 = vmatprep.subr.bf16.mxu1 %v613_v3 }
   0xf   :  { %569 = vmatpush3.bf16.msra.mxu0 %v613_v3  ;;  %605 = vmatpush3.bf16.msra.mxu1 %v613_v3 }
  0x10   :  { %570 = vmatprep.subr.bf16.mxu0 %v614_v6  ;;  %598 = vmatprep.subr.bf16.mxu1 %v614_v6 }
  0x13   :  { %571 = vmatpush3.bf16.msra.mxu0 %v614_v6  ;;  %606 = vmatpush3.bf16.msra.mxu1 %v614_v6 }
  0x14   :  { %572 = vmatprep.subr.bf16.mxu0 %v615_v7  ;;  %599 = vmatprep.subr.bf16.mxu1 %v615_v7 }
  0x17   :  { %573 = vmatpush3.bf16.msra.mxu0 %v615_v7  ;;  %607 = vmatpush3.bf16.msra.mxu1 %v615_v7 }
  0x18   :  { %574 = vmatprep.subr.bf16.mxu0 %v616_v8  ;;  %600 = vmatprep.subr.bf16.mxu1 %v616_v8 }
  0x1b   :  { %575 = vmatpush3.bf16.msra.mxu0 %v616_v8  ;;  %608 = vmatpush3.bf16.msra.mxu1 %v616_v8 }
  0x1c   :  { %576 = vmatprep.subr.bf16.mxu0 %v617_v9  ;;  %601 = vmatprep.subr.bf16.mxu1 %v617_v9 }
  0x1f   :  { %577 = vmatpush3.bf16.msra.mxu0 %v617_v9  ;;  %609 = vmatpush3.bf16.msra.mxu1 %v617_v9 }
  0x22   :  { %579 = vmatmul.mubr.bf16.vlgmr.msra.gmra.mxu0 %v620_v10  ;;  %587 = vmatmul.mubr.bf16.vlgmr.msra.gmra.mxu1 %v621_v11 }
  0x23   :  { %582 = vmatprep.mubr.bf16.mxu0 %v622_v12  ;;  %590 = vmatprep.mubr.bf16.mxu1 %v623_v13 }
  0x2a   :  { %583 = vmatmul.mubr.bf16.gmra.mxu0 %v624_v14  ;;  %591 = vmatmul.mubr.bf16.gmra.mxu1 %v625_v15 }
  0xe2   :  { %v580_v17 = vpop.f32.mrf.mxu0  ;;  %v588_v18 = vpop.f32.mrf.mxu1 }
  0xe3   :  { %v336_v19 = vadd.f32 %v580_v17, %v466_v16  ;;  %v344_v20 = vadd.f32 %v588_v18, %v466_v16 }
  0xe4   :  { %v213_v21 = vpop.f32.mrf.mxu0  ;;  %v245_v22 = vpop.f32.mrf.mxu1 }
  0xe5   :  { %v334_v23 = vadd.f32 %v466_v16, %v213_v21  ;;  %v342_v24 = vadd.f32 %v466_v16, %v245_v22  ;;  %v352_v29 = vmax.f32 %v336_v19, 0.0  ;;  %v360_v30 = vmax.f32 %v344_v20, 0.0 }
  0xe6   :  { %v581_v25 = vpop.f32.mrf.mxu0  ;;  %v589_v26 = vpop.f32.mrf.mxu1 }
  0xe7   :  { %v337_v27 = vadd.f32 %v581_v25, %v466_v16  ;;  %v345_v28 = vadd.f32 %v589_v26, %v466_v16  ;;  %v350_v37 = vmax.f32 %v334_v23, 0.0  ;;  %v358_v38 = vmax.f32 %v342_v24, 0.0 }
  0xe8   :  { %v216_v31 = vpop.f32.mrf.mxu0  ;;  %v248_v32 = vpop.f32.mrf.mxu1 }
  0xe9   :  { %v353_v33 = vmax.f32 %v337_v27, 0.0  ;;  %v361_v34 = vmax.f32 %v345_v28, 0.0  ;;  %v335_v35 = vadd.f32 %v466_v16, %v216_v31  ;;  %v343_v36 = vadd.f32 %v466_v16, %v248_v32 }
  0xea   :  { %v584_v39 = vpop.f32.mrf.mxu0  ;;  %v592_v40 = vpop.f32.mrf.mxu1 }
  0xeb   :  { %v507_v41 = vpack.c.bf16 %v353_v33, %v352_v29  ;;  %v527_v42 = vpack.c.bf16 %v361_v34, %v360_v30  ;;  %v351_v43 = vmax.f32 %v335_v35, 0.0  ;;  %v359_v44 = vmax.f32 %v343_v36, 0.0 }
  0xec   :  { %v340_v45 = vadd.f32 %v584_v39, %v466_v16  ;;  %v348_v46 = vadd.f32 %v592_v40, %v466_v16  ;;  %v229_v47 = vpop.f32.mrf.mxu0  ;;  %v261_v48 = vpop.f32.mrf.mxu1 }
  0xed   :  { %539 = vst [vmem:[%s724_s3 + $0x8] sm:$0xff] %v507_v41   ;;  %543 = vst [vmem:[%s724_s3 + $0x28] sm:$0xff] %v527_v42   ;;  %v502_v49 = vpack.c.bf16 %v351_v43, %v350_v37  ;;  %v522_v50 = vpack.c.bf16 %v359_v44, %v358_v38  ;;  %v338_v51 = vadd.f32 %v466_v16, %v229_v47 }
  0xee   :  { %v346_v52 = vadd.f32 %v466_v16, %v261_v48  ;;  %v585_v53 = vpop.f32.mrf.mxu0  ;;  %v593_v54 = vpop.f32.mrf.mxu1  ;;  %v356_v57 = vmax.f32 %v340_v45, 0.0  ;;  %v364_v58 = vmax.f32 %v348_v46, 0.0 }
  0xef   :  { %503 = vst [vmem:[%s724_s3] sm:$0xff] %v502_v49   ;;  %542 = vst [vmem:[%s724_s3 + $0x20] sm:$0xff] %v522_v50   ;;  %v341_v55 = vadd.f32 %v585_v53, %v466_v16  ;;  %v349_v56 = vadd.f32 %v593_v54, %v466_v16  ;;  %v354_v1 = vmax.f32 %v338_v51, 0.0 }
  0xf0   :  { %v232_v59 = vpop.f32.mrf.mxu0  ;;  %v264_v60 = vpop.f32.mrf.mxu1  ;;  %v362_v2 = vmax.f32 %v346_v52, 0.0 }
  0xf1   :  { %v357_v61 = vmax.f32 %v341_v55, 0.0  ;;  %v365_v62 = vmax.f32 %v349_v56, 0.0  ;;  %v339_v63 = vadd.f32 %v466_v16, %v232_v59  ;;  %v347_v0 = vadd.f32 %v466_v16, %v264_v60 }
  0xf3   :  { %v517_v3 = vpack.c.bf16 %v357_v61, %v356_v57  ;;  %v537_v4 = vpack.c.bf16 %v365_v62, %v364_v58  ;;  %v355_v5 = vmax.f32 %v339_v63, 0.0  ;;  %v363_v6 = vmax.f32 %v347_v0, 0.0 }
  0xf5   :  { %541 = vst [vmem:[%s724_s3 + $0x18] sm:$0xff] %v517_v3   ;;  %545 = vst [vmem:[%s724_s3 + $0x38] sm:$0xff] %v537_v4   ;;  %v512_v7 = vpack.c.bf16 %v355_v5, %v354_v1  ;;  %v532_v8 = vpack.c.bf16 %v363_v6, %v362_v2 }
  0xf7   :  { %540 = vst [vmem:[%s724_s3 + $0x10] sm:$0xff] %v512_v7   ;;  %544 = vst [vmem:[%s724_s3 + $0x30] sm:$0xff] %v532_v8  }

// kernel: configurable_gnn_forward.14
= control target key start
LH: loop header
LB: loop body
LE: loop exit
PB: predicated region body
PF: predicated region fallthrough
CT: control target
= control target key end

     0   :  { %vm381_vm0 = vcmask 7168   ;;  %s940_s1 = inlined_call_operand.vmem [shape: bf16[128,128], index: 1, kind: input, shape index: {}]   ;;  %s941_s0 = inlined_call_operand.vmem [shape: bf16[128,128], index: 0, kind: input, shape index: {}]   ;;  %s942_s2 = inlined_call_operand.vmem [shape: f32[1,128], index: 2, kind: input, shape index: {}]   ;;  %s943_s3 = inlined_call_operand.vmem [shape: f32[1,128], index: 3, kind: input, shape index: {}]   ;;  %s944_s4 = inlined_call_operand.vmem [shape: bf16[128,128], index: 4, kind: output, shape index: {0}]   ;;  %s945_s5 = inlined_call_operand.vmem [shape: f32[128,1], index: 5, kind: output, shape index: {1}]   ;;  %s946_s6 = inlined_call_operand.vmem [shape: f32[128,1], index: 6, kind: output, shape index: {2}]  }
   0x1   :  { %v642_v0 = vld [vmem:[%s940_s1 + $0x38] sm:$0xff]   ;;  %v643_v1 = vld [vmem:[%s940_s1 + $0x30] sm:$0xff]   ;;  %v644_v2 = vld [vmem:[%s940_s1 + $0x28] sm:$0xff]  }
   0x2   :  { %594 = vmatprep.subr.bf16.mxu0 %v642_v0  ;;  %626 = vmatprep.subr.bf16.mxu1 %v642_v0  ;;  %v645_v3 = vld [vmem:[%s940_s1 + $0x20] sm:$0xff]   ;;  %v646_v6 = vld [vmem:[%s940_s1 + $0x18] sm:$0xff]   ;;  %v647_v7 = vld [vmem:[%s940_s1 + $0x10] sm:$0xff]  }
   0x3   :  { %595 = vmatpush3.bf16.msra.mxu0 %v642_v0  ;;  %634 = vmatpush3.bf16.msra.mxu1 %v642_v0  ;;  %v650_v4 = vld [vmem:[%s941_s0] sm:$0xff]   ;;  %v648_v8 = vld [vmem:[%s940_s1 + $0x8] sm:$0xff]   ;;  %v654_v12 = vld [vmem:[%s941_s0 + $0x10] sm:$0xff]  }
   0x4   :  { %596 = vmatprep.subr.bf16.mxu0 %v643_v1  ;;  %627 = vmatprep.subr.bf16.mxu1 %v643_v1  ;;  %v651_v5 = vld [vmem:[%s941_s0 + $0x20] sm:$0xff]   ;;  %v652_v10 = vld [vmem:[%s941_s0 + $0x8] sm:$0xff]   ;;  %v656_v13 = vld [vmem:[%s941_s0 + $0x30] sm:$0xff]  }
   0x5   :  { %610 = vmatprep.mubr.bf16.mxu0 %v650_v4  ;;  %618 = vmatprep.mubr.bf16.mxu1 %v651_v5  ;;  %v649_v9 = vld [vmem:[%s940_s1] sm:$0xff]   ;;  %v653_v11 = vld [vmem:[%s941_s0 + $0x28] sm:$0xff]   ;;  %v655_v14 = vld [vmem:[%s941_s0 + $0x18] sm:$0xff]  }
   0x6   :  { %v657_v15 = vld [vmem:[%s941_s0 + $0x38] sm:$0xff]   ;;  %v744_v16 = vld [vmem:[%s942_s2] ss:$0 sm:$0xff] }
   0x7   :  { %597 = vmatpush3.bf16.msra.mxu0 %v643_v1  ;;  %635 = vmatpush3.bf16.msra.mxu1 %v643_v1  ;;  %v751_v23 = vld [vmem:[%s943_s3] ss:$0 sm:$0xff] }
   0x8   :  { %598 = vmatprep.subr.bf16.mxu0 %v644_v2  ;;  %628 = vmatprep.subr.bf16.mxu1 %v644_v2 }
   0xb   :  { %599 = vmatpush3.bf16.msra.mxu0 %v644_v2  ;;  %636 = vmatpush3.bf16.msra.mxu1 %v644_v2 }
   0xc   :  { %600 = vmatprep.subr.bf16.mxu0 %v645_v3  ;;  %629 = vmatprep.subr.bf16.mxu1 %v645_v3 }
   0xf   :  { %601 = vmatpush3.bf16.msra.mxu0 %v645_v3  ;;  %637 = vmatpush3.bf16.msra.mxu1 %v645_v3 }
  0x10   :  { %602 = vmatprep.subr.bf16.mxu0 %v646_v6  ;;  %630 = vmatprep.subr.bf16.mxu1 %v646_v6 }
  0x13   :  { %603 = vmatpush3.bf16.msra.mxu0 %v646_v6  ;;  %638 = vmatpush3.bf16.msra.mxu1 %v646_v6 }
  0x14   :  { %604 = vmatprep.subr.bf16.mxu0 %v647_v7  ;;  %631 = vmatprep.subr.bf16.mxu1 %v647_v7 }
  0x17   :  { %605 = vmatpush3.bf16.msra.mxu0 %v647_v7  ;;  %639 = vmatpush3.bf16.msra.mxu1 %v647_v7 }
  0x18   :  { %606 = vmatprep.subr.bf16.mxu0 %v648_v8  ;;  %632 = vmatprep.subr.bf16.mxu1 %v648_v8 }
  0x1b   :  { %607 = vmatpush3.bf16.msra.mxu0 %v648_v8  ;;  %640 = vmatpush3.bf16.msra.mxu1 %v648_v8 }
  0x1c   :  { %608 = vmatprep.subr.bf16.mxu0 %v649_v9  ;;  %633 = vmatprep.subr.bf16.mxu1 %v649_v9 }
  0x1f   :  { %609 = vmatpush3.bf16.msra.mxu0 %v649_v9  ;;  %641 = vmatpush3.bf16.msra.mxu1 %v649_v9 }
  0x22   :  { %611 = vmatmul.mubr.bf16.vlgmr.msra.gmra.mxu0 %v652_v10  ;;  %619 = vmatmul.mubr.bf16.vlgmr.msra.gmra.mxu1 %v653_v11 }
  0x23   :  { %614 = vmatprep.mubr.bf16.mxu0 %v654_v12  ;;  %622 = vmatprep.mubr.bf16.mxu1 %v656_v13 }
  0x2a   :  { %615 = vmatmul.mubr.bf16.gmra.mxu0 %v655_v14  ;;  %623 = vmatmul.mubr.bf16.gmra.mxu1 %v657_v15 }
  0xe2   :  { %v612_v17 = vpop.f32.mrf.mxu0  ;;  %v620_v18 = vpop.f32.mrf.mxu1 }
  0xe3   :  { %v343_v19 = vmul.f32 %v620_v18, %v744_v16  ;;  %v335_v20 = vmul.f32 %v612_v17, %v744_v16  ;;  %v407_v28 = vmul.f32 %v612_v17, %v751_v23  ;;  %v415_v36 = vmul.f32 %v620_v18, %v751_v23 }
  0xe4   :  { %v183_v21 = vpop.f32.mrf.mxu0  ;;  %v215_v22 = vpop.f32.mrf.mxu1 }
  0xe5   :  { %369 = vadd.xlane.f32.xlu0 %v343_v19  ;;  %353 = vadd.xlane.f32.xlu1 %v335_v20  ;;  %v333_v42 = vmul.f32 %v744_v16, %v183_v21  ;;  %v341_v50 = vmul.f32 %v744_v16, %v215_v22  ;;  %v405_v52 = vmul.f32 %v751_v23, %v183_v21 }
  0xe6   :  { %v613_v24 = vpop.f32.mrf.mxu0  ;;  %v621_v25 = vpop.f32.mrf.mxu1  ;;  %v413_v54 = vmul.f32 %v751_v23, %v215_v22 }
  0xe7   :  { %v539_v26 = vpack.c.bf16 %v613_v24, %v612_v17  ;;  %v559_v27 = vpack.c.bf16 %v621_v25, %v620_v18  ;;  %v336_v29 = vmul.f32 %v613_v24, %v744_v16  ;;  %v344_v37 = vmul.f32 %v621_v25, %v744_v16 }
  0xe8   :  { %v186_v30 = vpop.f32.mrf.mxu0  ;;  %v218_v31 = vpop.f32.mrf.mxu1  ;;  %v408_v43 = vmul.f32 %v613_v24, %v751_v23  ;;  %v416_v51 = vmul.f32 %v621_v25, %v751_v23 }
  0xe9   :  { %571 = vst [vmem:[%s944_s4 + $0x8] sm:$0xff] %v539_v26   ;;  %575 = vst [vmem:[%s944_s4 + $0x28] sm:$0xff] %v559_v27   ;;  %v534_v32 = vpack.c.bf16 %v186_v30, %v183_v21  ;;  %v554_v33 = vpack.c.bf16 %v218_v31, %v215_v22  ;;  %425 = vadd.xlane.f32.xlu0 %v407_v28  ;;  %355 = vadd.xlane.f32.xlu1 %v336_v29 }
  0xea   :  { %v616_v34 = vpop.f32.mrf.mxu0  ;;  %v761_v35 = vpop.f32.mrf.mxu1  ;;  %v342_v53 = vmul.f32 %v744_v16, %v218_v31  ;;  %v406_v55 = vmul.f32 %v751_v23, %v186_v30  ;;  %v414_v56 = vmul.f32 %v751_v23, %v218_v31  ;;  %v334_v57 = vmul.f32 %v744_v16, %v186_v30 }
  0xeb   :  { %535 = vst [vmem:[%s944_s4] sm:$0xff] %v534_v32   ;;  %574 = vst [vmem:[%s944_s4 + $0x20] sm:$0xff] %v554_v33   ;;  %v339_v58 = vmul.f32 %v616_v34, %v744_v16  ;;  %v347_v60 = vmul.f32 %v761_v35, %v744_v16  ;;  %v411_v62 = vmul.f32 %v616_v34, %v751_v23 }
  0xec   :  { %v199_v38 = vpop.f32.mrf.mxu0  ;;  %v231_v39 = vpop.f32.mrf.mxu1  ;;  %v419_v8 = vmul.f32 %v761_v35, %v751_v23 }
  0xed   :  { %441 = vadd.xlane.f32.xlu0 %v415_v36  ;;  %371 = vadd.xlane.f32.xlu1 %v344_v37  ;;  %v337_v0 = vmul.f32 %v744_v16, %v199_v38  ;;  %v345_v2 = vmul.f32 %v744_v16, %v231_v39  ;;  %v409_v4 = vmul.f32 %v751_v23, %v199_v38 }
  0xee   :  { %v617_v40 = vpop.f32.mrf.mxu0  ;;  %v625_v41 = vpop.f32.mrf.mxu1  ;;  %v417_v6 = vmul.f32 %v751_v23, %v231_v39 }
  0xef   :  { %v549_v44 = vpack.c.bf16 %v617_v40, %v616_v34  ;;  %v569_v45 = vpack.c.bf16 %v625_v41, %v761_v35  ;;  %v340_v59 = vmul.f32 %v617_v40, %v744_v16  ;;  %v348_v61 = vmul.f32 %v625_v41, %v744_v16 }
  0xf0   :  { %v202_v46 = vpop.f32.mrf.mxu0  ;;  %v234_v47 = vpop.f32.mrf.mxu1  ;;  %v412_v63 = vmul.f32 %v617_v40, %v751_v23  ;;  %v420_v9 = vmul.f32 %v625_v41, %v751_v23 }
  0xf1   :  { %349 = vadd.xlane.f32.xlu0 %v333_v42  ;;  %427 = vadd.xlane.f32.xlu1 %v408_v43  ;;  %573 = vst [vmem:[%s944_s4 + $0x18] sm:$0xff] %v549_v44   ;;  %v544_v48 = vpack.c.bf16 %v202_v46, %v199_v38  ;;  %577 = vst [vmem:[%s944_s4 + $0x38] sm:$0xff] %v569_v45   ;;  %v564_v49 = vpack.c.bf16 %v234_v47, %v231_v39 }
  0xf2   :  { %v338_v1 = vmul.f32 %v744_v16, %v202_v46  ;;  %v346_v3 = vmul.f32 %v744_v16, %v234_v47  ;;  %v410_v5 = vmul.f32 %v751_v23, %v202_v46  ;;  %v418_v7 = vmul.f32 %v751_v23, %v234_v47 }
  0xf3   :  { %572 = vst [vmem:[%s944_s4 + $0x10] sm:$0xff] %v544_v48   ;;  %576 = vst [vmem:[%s944_s4 + $0x30] sm:$0xff] %v564_v49  }
  0xf5   :  { %365 = vadd.xlane.f32.xlu0 %v341_v50  ;;  %443 = vadd.xlane.f32.xlu1 %v416_v51 }
  0xf9   :  { %421 = vadd.xlane.f32.xlu0 %v405_v52  ;;  %367 = vadd.xlane.f32.xlu1 %v342_v53 }
  0xfd   :  { %437 = vadd.xlane.f32.xlu0 %v413_v54  ;;  %423 = vadd.xlane.f32.xlu1 %v406_v55 }
 0x101   :  { %439 = vadd.xlane.f32.xlu1 %v414_v56  ;;  %351 = vadd.xlane.f32.xlu0 %v334_v57 }
 0x105   :  { %361 = vadd.xlane.f32.xlu0 %v339_v58  ;;  %363 = vadd.xlane.f32.xlu1 %v340_v59 }
 0x109   :  { %377 = vadd.xlane.f32.xlu0 %v347_v60  ;;  %379 = vadd.xlane.f32.xlu1 %v348_v61 }
 0x10d   :  { %433 = vadd.xlane.f32.xlu0 %v411_v62  ;;  %435 = vadd.xlane.f32.xlu1 %v412_v63 }
 0x111   :  { %357 = vadd.xlane.f32.xlu0 %v337_v0  ;;  %359 = vadd.xlane.f32.xlu1 %v338_v1 }
 0x115   :  { %373 = vadd.xlane.f32.xlu0 %v345_v2  ;;  %375 = vadd.xlane.f32.xlu1 %v346_v3 }
 0x119   :  { %429 = vadd.xlane.f32.xlu0 %v409_v4  ;;  %431 = vadd.xlane.f32.xlu1 %v410_v5 }
 0x11d   :  { %445 = vadd.xlane.f32.xlu0 %v417_v6  ;;  %447 = vadd.xlane.f32.xlu1 %v418_v7 }
 0x121   :  { %449 = vadd.xlane.f32.xlu0 %v419_v8  ;;  %451 = vadd.xlane.f32.xlu1 %v420_v9 }
 0x16e   :  { %v370_v10 = vpop.xlane.xlu0 %369  ;;  %v354_v11 = vpop.xlane.xlu1 %353 }
 0x16f   :  { %392 = vst.msk [vmem:[%s945_s5 + $0x50] sm:$0xff] %vm381_vm0, %v370_v10  ;;  %384 = vst.msk [vmem:[%s945_s5 + $0x10] sm:$0xff] %vm381_vm0, %v354_v11 }
 0x172   :  { %v426_v12 = vpop.xlane.xlu0 %425  ;;  %v356_v13 = vpop.xlane.xlu1 %355 }
 0x173   :  { %455 = vst.msk [vmem:[%s946_s6 + $0x10] sm:$0xff] %vm381_vm0, %v426_v12  ;;  %385 = vst.msk [vmem:[%s945_s5 + $0x18] sm:$0xff] %vm381_vm0, %v356_v13 }
 0x176   :  { %v442_v14 = vpop.xlane.xlu0 %441  ;;  %v372_v15 = vpop.xlane.xlu1 %371 }
 0x177   :  { %463 = vst.msk [vmem:[%s946_s6 + $0x50] sm:$0xff] %vm381_vm0, %v442_v14  ;;  %393 = vst.msk [vmem:[%s945_s5 + $0x58] sm:$0xff] %vm381_vm0, %v372_v15 }
 0x17a   :  { %v350_v16 = vpop.xlane.xlu0 %349  ;;  %v428_v17 = vpop.xlane.xlu1 %427 }
 0x17b   :  { %382 = vst.msk [vmem:[%s945_s5] sm:$0xff] %vm381_vm0, %v350_v16  ;;  %456 = vst.msk [vmem:[%s946_s6 + $0x18] sm:$0xff] %vm381_vm0, %v428_v17 }
 0x17e   :  { %v366_v18 = vpop.xlane.xlu0 %365  ;;  %v444_v19 = vpop.xlane.xlu1 %443 }
 0x17f   :  { %390 = vst.msk [vmem:[%s945_s5 + $0x40] sm:$0xff] %vm381_vm0, %v366_v18  ;;  %464 = vst.msk [vmem:[%s946_s6 + $0x58] sm:$0xff] %vm381_vm0, %v444_v19 }
 0x182   :  { %v422_v20 = vpop.xlane.xlu0 %421  ;;  %v368_v21 = vpop.xlane.xlu1 %367 }
 0x183   :  { %453 = vst.msk [vmem:[%s946_s6] sm:$0xff] %vm381_vm0, %v422_v20  ;;  %391 = vst.msk [vmem:[%s945_s5 + $0x48] sm:$0xff] %vm381_vm0, %v368_v21 }
 0x186   :  { %v438_v22 = vpop.xlane.xlu0 %437  ;;  %v424_v23 = vpop.xlane.xlu1 %423 }
 0x187   :  { %461 = vst.msk [vmem:[%s946_s6 + $0x40] sm:$0xff] %vm381_vm0, %v438_v22  ;;  %454 = vst.msk [vmem:[%s946_s6 + $0x8] sm:$0xff] %vm381_vm0, %v424_v23 }
 0x18a   :  { %v440_v24 = vpop.xlane.xlu1 %439  ;;  %v352_v25 = vpop.xlane.xlu0 %351 }
 0x18b   :  { %462 = vst.msk [vmem:[%s946_s6 + $0x48] sm:$0xff] %vm381_vm0, %v440_v24  ;;  %383 = vst.msk [vmem:[%s945_s5 + $0x8] sm:$0xff] %vm381_vm0, %v352_v25 }
 0x18e   :  { %v362_v26 = vpop.xlane.xlu0 %361  ;;  %v364_v27 = vpop.xlane.xlu1 %363 }
 0x18f   :  { %388 = vst.msk [vmem:[%s945_s5 + $0x30] sm:$0xff] %vm381_vm0, %v362_v26  ;;  %389 = vst.msk [vmem:[%s945_s5 + $0x38] sm:$0xff] %vm381_vm0, %v364_v27 }
 0x192   :  { %v378_v28 = vpop.xlane.xlu0 %377  ;;  %v380_v29 = vpop.xlane.xlu1 %379 }
 0x193   :  { %396 = vst.msk [vmem:[%s945_s5 + $0x70] sm:$0xff] %vm381_vm0, %v378_v28  ;;  %397 = vst.msk [vmem:[%s945_s5 + $0x78] sm:$0xff] %vm381_vm0, %v380_v29 }
 0x196   :  { %v434_v30 = vpop.xlane.xlu0 %433  ;;  %v436_v31 = vpop.xlane.xlu1 %435 }
 0x197   :  { %459 = vst.msk [vmem:[%s946_s6 + $0x30] sm:$0xff] %vm381_vm0, %v434_v30  ;;  %460 = vst.msk [vmem:[%s946_s6 + $0x38] sm:$0xff] %vm381_vm0, %v436_v31 }
 0x19a   :  { %v358_v32 = vpop.xlane.xlu0 %357  ;;  %v360_v33 = vpop.xlane.xlu1 %359 }
 0x19b   :  { %386 = vst.msk [vmem:[%s945_s5 + $0x20] sm:$0xff] %vm381_vm0, %v358_v32  ;;  %387 = vst.msk [vmem:[%s945_s5 + $0x28] sm:$0xff] %vm381_vm0, %v360_v33 }
 0x19e   :  { %v374_v34 = vpop.xlane.xlu0 %373  ;;  %v376_v35 = vpop.xlane.xlu1 %375 }
 0x19f   :  { %394 = vst.msk [vmem:[%s945_s5 + $0x60] sm:$0xff] %vm381_vm0, %v374_v34  ;;  %395 = vst.msk [vmem:[%s945_s5 + $0x68] sm:$0xff] %vm381_vm0, %v376_v35 }
 0x1a2   :  { %v430_v36 = vpop.xlane.xlu0 %429  ;;  %v432_v37 = vpop.xlane.xlu1 %431 }
 0x1a3   :  { %457 = vst.msk [vmem:[%s946_s6 + $0x20] sm:$0xff] %vm381_vm0, %v430_v36  ;;  %458 = vst.msk [vmem:[%s946_s6 + $0x28] sm:$0xff] %vm381_vm0, %v432_v37 }
 0x1a6   :  { %v446_v38 = vpop.xlane.xlu0 %445  ;;  %v448_v39 = vpop.xlane.xlu1 %447 }
 0x1a7   :  { %465 = vst.msk [vmem:[%s946_s6 + $0x60] sm:$0xff] %vm381_vm0, %v446_v38  ;;  %466 = vst.msk [vmem:[%s946_s6 + $0x68] sm:$0xff] %vm381_vm0, %v448_v39 }
 0x1aa   :  { %v450_v40 = vpop.xlane.xlu0 %449  ;;  %v452_v41 = vpop.xlane.xlu1 %451 }
 0x1ab   :  { %467 = vst.msk [vmem:[%s946_s6 + $0x70] sm:$0xff] %vm381_vm0, %v450_v40  ;;  %468 = vst.msk [vmem:[%s946_s6 + $0x78] sm:$0xff] %vm381_vm0, %v452_v41 }

// kernel: configurable_gnn_forward.18
= control target key start
LH: loop header
LB: loop body
LE: loop exit
PB: predicated region body
PF: predicated region fallthrough
CT: control target
= control target key end

     0   :  { %s1587_s1 = inlined_call_operand.vmem [shape: bf16[128,128], index: 1, kind: input, shape index: {}]   ;;  %s1588_s3 = inlined_call_operand.vmem [shape: bf16[128,128], index: 3, kind: input, shape index: {}]   ;;  %s1589_s0 = inlined_call_operand.vmem [shape: bf16[128,128], index: 0, kind: input, shape index: {}]   ;;  %s1590_s5 = inlined_call_operand.vmem [shape: bf16[128,128], index: 5, kind: input, shape index: {}]   ;;  %s1591_s2 = inlined_call_operand.vmem [shape: f32[1,128], index: 2, kind: input, shape index: {}]   ;;  %s1592_s4 = inlined_call_operand.vmem [shape: f32[1,128], index: 4, kind: input, shape index: {}]   ;;  %s1593_s7 = inlined_call_operand.vmem [shape: bf16[128,128], index: 7, kind: output, shape index: {0}]   ;;  %s1594_s8 = inlined_call_operand.vmem [shape: bf16[128,128], index: 8, kind: output, shape index: {1}]   ;;  %s1595_s6 = inlined_call_operand.vmem [shape: f32[1,128], index: 6, kind: input, shape index: {}]   ;;  %s1596_s9 = inlined_call_operand.vmem [shape: bf16[128,128], index: 9, kind: output, shape index: {2}]  }
   0x1   :  { %v1282_v0 = vld [vmem:[%s1587_s1 + $0x38] sm:$0xff]   ;;  %v1284_v2 = vld [vmem:[%s1587_s1 + $0x30] sm:$0xff]   ;;  %v1286_v4 = vld [vmem:[%s1587_s1 + $0x28] sm:$0xff]  }
   0x2   :  { %v1283_v1 = vld [vmem:[%s1588_s3 + $0x38] sm:$0xff]   ;;  %1170 = vmatprep.subr.bf16.mxu0 %v1282_v0  ;;  %v1285_v3 = vld [vmem:[%s1588_s3 + $0x30] sm:$0xff]   ;;  %v1287_v5 = vld [vmem:[%s1588_s3 + $0x28] sm:$0xff]  }
   0x3   :  { %1202 = vmatprep.subr.bf16.mxu1 %v1283_v1  ;;  %1171 = vmatpush3.bf16.msra.mxu0 %v1282_v0  ;;  %v1288_v6 = vld [vmem:[%s1587_s1 + $0x20] sm:$0xff]   ;;  %v1290_v8 = vld [vmem:[%s1587_s1 + $0x18] sm:$0xff]   ;;  %v1292_v10 = vld [vmem:[%s1587_s1 + $0x10] sm:$0xff]  }
   0x4   :  { %1203 = vmatpush3.bf16.msra.mxu1 %v1283_v1  ;;  %1172 = vmatprep.subr.bf16.mxu0 %v1284_v2  ;;  %v1289_v7 = vld [vmem:[%s1588_s3 + $0x20] sm:$0xff]   ;;  %v1291_v9 = vld [vmem:[%s1588_s3 + $0x18] sm:$0xff]   ;;  %v1293_v12 = vld [vmem:[%s1588_s3 + $0x10] sm:$0xff]  }
   0x5   :  { %1204 = vmatprep.subr.bf16.mxu1 %v1285_v3  ;;  %v1400_v11 = vld [vmem:[%s1589_s0] sm:$0xff]   ;;  %v1294_v13 = vld [vmem:[%s1587_s1 + $0x8] sm:$0xff]   ;;  %v1300_v17 = vld [vmem:[%s1590_s5 + $0x38] sm:$0xff]  }
   0x6   :  { %1186 = vmatprep.mubr.bf16.mxu0 %v1400_v11  ;;  %1218 = vmatprep.mubr.bf16.mxu1 %v1400_v11  ;;  %v1295_v14 = vld [vmem:[%s1588_s3 + $0x8] sm:$0xff]   ;;  %v1296_v15 = vld [vmem:[%s1587_s1] sm:$0xff]   ;;  %v1301_v19 = vld [vmem:[%s1590_s5 + $0x30] sm:$0xff]  }
   0x7   :  { %1173 = vmatpush3.bf16.msra.mxu0 %v1284_v2  ;;  %v1297_v16 = vld [vmem:[%s1588_s3] sm:$0xff]   ;;  %v1425_v18 = vld [vmem:[%s1589_s0 + $0x8] sm:$0xff]   ;;  %v1302_v20 = vld [vmem:[%s1589_s0 + $0x10] sm:$0xff]  }
   0x8   :  { %1205 = vmatpush3.bf16.msra.mxu1 %v1285_v3  ;;  %1174 = vmatprep.subr.bf16.mxu0 %v1286_v4  ;;  %v1304_v21 = vld [vmem:[%s1590_s5 + $0x28] sm:$0xff]   ;;  %v1303_v22 = vld [vmem:[%s1589_s0 + $0x18] sm:$0xff]   ;;  %v1305_v23 = vld [vmem:[%s1590_s5 + $0x20] sm:$0xff]  }
   0x9   :  { %1206 = vmatprep.subr.bf16.mxu1 %v1287_v5  ;;  %v1306_v24 = vld [vmem:[%s1589_s0 + $0x20] sm:$0xff]   ;;  %v1308_v25 = vld [vmem:[%s1590_s5 + $0x18] sm:$0xff]   ;;  %v1307_v26 = vld [vmem:[%s1589_s0 + $0x28] sm:$0xff]  }
   0xa   :  { %v1309_v27 = vld [vmem:[%s1590_s5 + $0x10] sm:$0xff]   ;;  %v1312_v29 = vld [vmem:[%s1590_s5 + $0x8] sm:$0xff]   ;;  %v1311_v30 = vld [vmem:[%s1589_s0 + $0x38] sm:$0xff]  }
   0xb   :  { %1175 = vmatpush3.bf16.msra.mxu0 %v1286_v4  ;;  %v1310_v28 = vld [vmem:[%s1589_s0 + $0x30] sm:$0xff]   ;;  %v1313_v31 = vld [vmem:[%s1590_s5] sm:$0xff]  }
   0xc   :  { %1207 = vmatpush3.bf16.msra.mxu1 %v1287_v5  ;;  %1176 = vmatprep.subr.bf16.mxu0 %v1288_v6  ;;  %v1473_v34 = vld [vmem:[%s1591_s2] ss:$0 sm:$0xff] }
   0xd   :  { %1208 = vmatprep.subr.bf16.mxu1 %v1289_v7  ;;  %v1478_v36 = vld [vmem:[%s1592_s4] ss:$0 sm:$0xff] }
   0xf   :  { %1177 = vmatpush3.bf16.msra.mxu0 %v1288_v6 }
  0x10   :  { %1209 = vmatpush3.bf16.msra.mxu1 %v1289_v7  ;;  %1178 = vmatprep.subr.bf16.mxu0 %v1290_v8 }
  0x11   :  { %1210 = vmatprep.subr.bf16.mxu1 %v1291_v9 }
  0x13   :  { %1179 = vmatpush3.bf16.msra.mxu0 %v1290_v8 }
  0x14   :  { %1211 = vmatpush3.bf16.msra.mxu1 %v1291_v9  ;;  %1180 = vmatprep.subr.bf16.mxu0 %v1292_v10 }
  0x15   :  { %1212 = vmatprep.subr.bf16.mxu1 %v1293_v12 }
  0x17   :  { %1181 = vmatpush3.bf16.msra.mxu0 %v1292_v10 }
  0x18   :  { %1213 = vmatpush3.bf16.msra.mxu1 %v1293_v12  ;;  %1182 = vmatprep.subr.bf16.mxu0 %v1294_v13 }
  0x19   :  { %1214 = vmatprep.subr.bf16.mxu1 %v1295_v14 }
  0x1b   :  { %1183 = vmatpush3.bf16.msra.mxu0 %v1294_v13 }
  0x1c   :  { %1215 = vmatpush3.bf16.msra.mxu1 %v1295_v14  ;;  %1184 = vmatprep.subr.bf16.mxu0 %v1296_v15 }
  0x1d   :  { %1216 = vmatprep.subr.bf16.mxu1 %v1297_v16 }
  0x1f   :  { %1185 = vmatpush3.bf16.msra.mxu0 %v1296_v15 }
  0x20   :  { %1217 = vmatpush3.bf16.msra.mxu1 %v1297_v16  ;;  %1234 = vmatprep.subr.bf16.mxu0 %v1300_v17 }
  0x21   :  { %1266 = vmatprep.subr.bf16.mxu1 %v1300_v17 }
  0x22   :  { %1187 = vmatmul.mubr.bf16.vlgmr.msra.gmra.mxu0 %v1425_v18 }
  0x23   :  { %1219 = vmatmul.mubr.bf16.vlgmr.msra.gmra.mxu1 %v1425_v18  ;;  %1235 = vmatpush3.bf16.msra.mxu0 %v1300_v17 }
  0x24   :  { %1274 = vmatpush3.bf16.msra.mxu1 %v1300_v17  ;;  %1236 = vmatprep.subr.bf16.mxu0 %v1301_v19 }
  0x25   :  { %1267 = vmatprep.subr.bf16.mxu1 %v1301_v19  ;;  %1190 = vmatprep.mubr.bf16.mxu0 %v1302_v20 }
  0x26   :  { %1222 = vmatprep.mubr.bf16.mxu1 %v1302_v20 }
  0x27   :  { %1237 = vmatpush3.bf16.msra.mxu0 %v1301_v19 }
  0x28   :  { %1275 = vmatpush3.bf16.msra.mxu1 %v1301_v19  ;;  %1238 = vmatprep.subr.bf16.mxu0 %v1304_v21 }
  0x29   :  { %1268 = vmatprep.subr.bf16.mxu1 %v1304_v21 }
  0x2a   :  { %1191 = vmatmul.mubr.bf16.gmra.mxu0 %v1303_v22 }
  0x2b   :  { %1223 = vmatmul.mubr.bf16.gmra.mxu1 %v1303_v22  ;;  %1239 = vmatpush3.bf16.msra.mxu0 %v1304_v21 }
  0x2c   :  { %1276 = vmatpush3.bf16.msra.mxu1 %v1304_v21  ;;  %1240 = vmatprep.subr.bf16.mxu0 %v1305_v23 }
  0x2d   :  { %1269 = vmatprep.subr.bf16.mxu1 %v1305_v23  ;;  %1194 = vmatprep.mubr.bf16.mxu0 %v1306_v24 }
  0x2e   :  { %1226 = vmatprep.mubr.bf16.mxu1 %v1306_v24 }
  0x2f   :  { %1241 = vmatpush3.bf16.msra.mxu0 %v1305_v23 }
  0x30   :  { %1277 = vmatpush3.bf16.msra.mxu1 %v1305_v23  ;;  %1242 = vmatprep.subr.bf16.mxu0 %v1308_v25 }
  0x31   :  { %1270 = vmatprep.subr.bf16.mxu1 %v1308_v25 }
  0x32   :  { %1195 = vmatmul.mubr.bf16.gmra.mxu0 %v1307_v26 }
  0x33   :  { %1227 = vmatmul.mubr.bf16.gmra.mxu1 %v1307_v26  ;;  %1243 = vmatpush3.bf16.msra.mxu0 %v1308_v25 }
  0x34   :  { %1278 = vmatpush3.bf16.msra.mxu1 %v1308_v25  ;;  %1244 = vmatprep.subr.bf16.mxu0 %v1309_v27 }
  0x35   :  { %1271 = vmatprep.subr.bf16.mxu1 %v1309_v27  ;;  %1198 = vmatprep.mubr.bf16.mxu0 %v1310_v28 }
  0x36   :  { %1230 = vmatprep.mubr.bf16.mxu1 %v1310_v28 }
  0x37   :  { %1245 = vmatpush3.bf16.msra.mxu0 %v1309_v27 }
  0x38   :  { %1279 = vmatpush3.bf16.msra.mxu1 %v1309_v27  ;;  %1246 = vmatprep.subr.bf16.mxu0 %v1312_v29 }
  0x39   :  { %1272 = vmatprep.subr.bf16.mxu1 %v1312_v29 }
  0x3a   :  { %1199 = vmatmul.mubr.bf16.gmra.mxu0 %v1311_v30 }
  0x3b   :  { %1231 = vmatmul.mubr.bf16.gmra.mxu1 %v1311_v30  ;;  %1247 = vmatpush3.bf16.msra.mxu0 %v1312_v29 }
  0x3c   :  { %1280 = vmatpush3.bf16.msra.mxu1 %v1312_v29  ;;  %1248 = vmatprep.subr.bf16.mxu0 %v1313_v31 }
  0x3d   :  { %1273 = vmatprep.subr.bf16.mxu1 %v1313_v31  ;;  %1250 = vmatprep.mubr.bf16.mxu0 %v1400_v11 }
  0x3e   :  { %1258 = vmatprep.mubr.bf16.mxu1 %v1306_v24 }
  0x3f   :  { %1249 = vmatpush3.bf16.msra.mxu0 %v1313_v31 }
  0x40   :  { %1281 = vmatpush3.bf16.msra.mxu1 %v1313_v31 }
  0x42   :  { %1251 = vmatmul.mubr.bf16.vlgmr.msra.gmra.mxu0 %v1425_v18 }
  0x43   :  { %1259 = vmatmul.mubr.bf16.vlgmr.msra.gmra.mxu1 %v1307_v26  ;;  %1254 = vmatprep.mubr.bf16.mxu0 %v1302_v20 }
  0x44   :  { %1262 = vmatprep.mubr.bf16.mxu1 %v1310_v28 }
  0x4a   :  { %1255 = vmatmul.mubr.bf16.gmra.mxu0 %v1303_v22 }
  0x4b   :  { %1263 = vmatmul.mubr.bf16.gmra.mxu1 %v1311_v30 }
  0xe2   :  { %v1188_v32 = vpop.f32.mrf.mxu0 }
  0xe3   :  { %v1220_v33 = vpop.f32.mrf.mxu1  ;;  %v208_v39 = vadd.f32 %v1188_v32, %v1473_v34 }
  0xe4   :  { %v199_v35 = vpop.f32.mrf.mxu0  ;;  %v456_v42 = vadd.f32 %v1220_v33, %v1478_v36 }
  0xe5   :  { %v447_v37 = vpop.f32.mrf.mxu1  ;;  %v200_v45 = vadd.f32 %v1473_v34, %v199_v35 }
  0xe6   :  { %v1189_v38 = vpop.f32.mrf.mxu0  ;;  %v448_v49 = vadd.f32 %v1478_v36, %v447_v37 }
  0xe7   :  { %v211_v40 = vadd.f32 %v1189_v38, %v1473_v34  ;;  %v1221_v41 = vpop.f32.mrf.mxu1 }
  0xe8   :  { %v459_v43 = vadd.f32 %v1221_v41, %v1478_v36  ;;  %v202_v44 = vpop.f32.mrf.mxu0 }
  0xe9   :  { %v989_v46 = vpack.c.bf16 %v211_v40, %v208_v39  ;;  %v203_v47 = vadd.f32 %v1473_v34, %v202_v44  ;;  %v450_v48 = vpop.f32.mrf.mxu1 }
  0xea   :  { %v1029_v50 = vpack.c.bf16 %v459_v43, %v456_v42  ;;  %v451_v51 = vadd.f32 %v1478_v36, %v450_v48  ;;  %v1192_v52 = vpop.f32.mrf.mxu0 }
  0xeb   :  { %1101 = vst [vmem:[%s1593_s7 + $0x8] sm:$0xff] %v989_v46   ;;  %v984_v53 = vpack.c.bf16 %v203_v47, %v200_v45  ;;  %v1224_v54 = vpop.f32.mrf.mxu1  ;;  %v224_v59 = vadd.f32 %v1192_v52, %v1473_v34 }
  0xec   :  { %1108 = vst [vmem:[%s1594_s8 + $0x8] sm:$0xff] %v1029_v50   ;;  %v1024_v55 = vpack.c.bf16 %v451_v51, %v448_v49  ;;  %v215_v56 = vpop.f32.mrf.mxu0  ;;  %v472_v62 = vadd.f32 %v1224_v54, %v1478_v36 }
  0xed   :  { %985 = vst [vmem:[%s1593_s7] sm:$0xff] %v984_v53   ;;  %v463_v57 = vpop.f32.mrf.mxu1  ;;  %v216_v1 = vadd.f32 %v1473_v34, %v215_v56 }
  0xee   :  { %1025 = vst [vmem:[%s1594_s8] sm:$0xff] %v1024_v55   ;;  %v1193_v58 = vpop.f32.mrf.mxu0  ;;  %v464_v5 = vadd.f32 %v1478_v36, %v463_v57 }
  0xef   :  { %v227_v60 = vadd.f32 %v1193_v58, %v1473_v34  ;;  %v1225_v61 = vpop.f32.mrf.mxu1 }
  0xf0   :  { %v475_v63 = vadd.f32 %v1225_v61, %v1478_v36  ;;  %v218_v0 = vpop.f32.mrf.mxu0 }
  0xf1   :  { %v999_v2 = vpack.c.bf16 %v227_v60, %v224_v59  ;;  %v219_v3 = vadd.f32 %v1473_v34, %v218_v0  ;;  %v466_v4 = vpop.f32.mrf.mxu1 }
  0xf2   :  { %v1039_v6 = vpack.c.bf16 %v475_v63, %v472_v62  ;;  %v467_v7 = vadd.f32 %v1478_v36, %v466_v4  ;;  %v1196_v8 = vpop.f32.mrf.mxu0 }
  0xf3   :  { %1103 = vst [vmem:[%s1593_s7 + $0x18] sm:$0xff] %v999_v2   ;;  %v994_v9 = vpack.c.bf16 %v219_v3, %v216_v1  ;;  %v1228_v10 = vpop.f32.mrf.mxu1  ;;  %v240_v15 = vadd.f32 %v1196_v8, %v1473_v34 }
  0xf4   :  { %1110 = vst [vmem:[%s1594_s8 + $0x18] sm:$0xff] %v1039_v6   ;;  %v1034_v11 = vpack.c.bf16 %v467_v7, %v464_v5  ;;  %v231_v12 = vpop.f32.mrf.mxu0  ;;  %v488_v18 = vadd.f32 %v1228_v10, %v1478_v36 }
  0xf5   :  { %1102 = vst [vmem:[%s1593_s7 + $0x10] sm:$0xff] %v994_v9   ;;  %v479_v13 = vpop.f32.mrf.mxu1  ;;  %v232_v21 = vadd.f32 %v1473_v34, %v231_v12 }
  0xf6   :  { %1109 = vst [vmem:[%s1594_s8 + $0x10] sm:$0xff] %v1034_v11   ;;  %v1197_v14 = vpop.f32.mrf.mxu0  ;;  %v480_v25 = vadd.f32 %v1478_v36, %v479_v13 }
  0xf7   :  { %v243_v16 = vadd.f32 %v1197_v14, %v1473_v34  ;;  %v1229_v17 = vpop.f32.mrf.mxu1 }
  0xf8   :  { %v491_v19 = vadd.f32 %v1229_v17, %v1478_v36  ;;  %v234_v20 = vpop.f32.mrf.mxu0 }
  0xf9   :  { %v1009_v22 = vpack.c.bf16 %v243_v16, %v240_v15  ;;  %v235_v23 = vadd.f32 %v1473_v34, %v234_v20  ;;  %v482_v24 = vpop.f32.mrf.mxu1 }
  0xfa   :  { %v1049_v26 = vpack.c.bf16 %v491_v19, %v488_v18  ;;  %v483_v27 = vadd.f32 %v1478_v36, %v482_v24  ;;  %v1200_v28 = vpop.f32.mrf.mxu0 }
  0xfb   :  { %1105 = vst [vmem:[%s1593_s7 + $0x28] sm:$0xff] %v1009_v22   ;;  %v1004_v29 = vpack.c.bf16 %v235_v23, %v232_v21  ;;  %v1232_v30 = vpop.f32.mrf.mxu1  ;;  %v256_v37 = vadd.f32 %v1200_v28, %v1473_v34 }
  0xfc   :  { %1112 = vst [vmem:[%s1594_s8 + $0x28] sm:$0xff] %v1049_v26   ;;  %v1044_v31 = vpack.c.bf16 %v483_v27, %v480_v25  ;;  %v247_v32 = vpop.f32.mrf.mxu0  ;;  %v504_v40 = vadd.f32 %v1232_v30, %v1478_v36 }
  0xfd   :  { %1104 = vst [vmem:[%s1593_s7 + $0x20] sm:$0xff] %v1004_v29   ;;  %v495_v33 = vpop.f32.mrf.mxu1  ;;  %v248_v43 = vadd.f32 %v1473_v34, %v247_v32 }
  0xfe   :  { %1111 = vst [vmem:[%s1594_s8 + $0x20] sm:$0xff] %v1044_v31   ;;  %v1201_v35 = vpop.f32.mrf.mxu0  ;;  %v496_v47 = vadd.f32 %v1478_v36, %v495_v33 }
  0xff   :  { %v259_v38 = vadd.f32 %v1201_v35, %v1473_v34  ;;  %v1233_v39 = vpop.f32.mrf.mxu1 }
 0x100   :  { %v507_v41 = vadd.f32 %v1233_v39, %v1478_v36  ;;  %v250_v42 = vpop.f32.mrf.mxu0 }
 0x101   :  { %v1019_v44 = vpack.c.bf16 %v259_v38, %v256_v37  ;;  %v251_v45 = vadd.f32 %v1473_v34, %v250_v42  ;;  %v498_v46 = vpop.f32.mrf.mxu1  ;;  %v908_v34 = vld [vmem:[%s1595_s6] ss:$0 sm:$0xff] }
 0x102   :  { %v1059_v48 = vpack.c.bf16 %v507_v41, %v504_v40  ;;  %v499_v49 = vadd.f32 %v1478_v36, %v498_v46  ;;  %v1252_v50 = vpop.f32.mrf.mxu0 }
 0x103   :  { %1107 = vst [vmem:[%s1593_s7 + $0x38] sm:$0xff] %v1019_v44   ;;  %v1014_v51 = vpack.c.bf16 %v251_v45, %v248_v43  ;;  %v1260_v52 = vpop.f32.mrf.mxu1  ;;  %v704_v56 = vadd.f32 %v1252_v50, %v908_v34 }
 0x104   :  { %1114 = vst [vmem:[%s1594_s8 + $0x38] sm:$0xff] %v1059_v48   ;;  %v1054_v53 = vpack.c.bf16 %v499_v49, %v496_v47  ;;  %v695_v54 = vpop.f32.mrf.mxu0  ;;  %v736_v59 = vadd.f32 %v1260_v52, %v908_v34 }
 0x105   :  { %1106 = vst [vmem:[%s1593_s7 + $0x30] sm:$0xff] %v1014_v51   ;;  %v727_v36 = vpop.f32.mrf.mxu1  ;;  %v696_v62 = vadd.f32 %v908_v34, %v695_v54 }
 0x106   :  { %1113 = vst [vmem:[%s1594_s8 + $0x30] sm:$0xff] %v1054_v53   ;;  %v1253_v55 = vpop.f32.mrf.mxu0  ;;  %v728_v2 = vadd.f32 %v908_v34, %v727_v36 }
 0x107   :  { %v707_v57 = vadd.f32 %v1253_v55, %v908_v34  ;;  %v1261_v58 = vpop.f32.mrf.mxu1 }
 0x108   :  { %v739_v60 = vadd.f32 %v1261_v58, %v908_v34  ;;  %v698_v61 = vpop.f32.mrf.mxu0 }
 0x109   :  { %v1069_v63 = vpack.c.bf16 %v707_v57, %v704_v56  ;;  %v699_v0 = vadd.f32 %v908_v34, %v698_v61  ;;  %v730_v1 = vpop.f32.mrf.mxu1 }
 0x10a   :  { %v1089_v3 = vpack.c.bf16 %v739_v60, %v736_v59  ;;  %v731_v4 = vadd.f32 %v908_v34, %v730_v1  ;;  %v1256_v5 = vpop.f32.mrf.mxu0 }
 0x10b   :  { %1115 = vst [vmem:[%s1596_s9 + $0x8] sm:$0xff] %v1069_v63   ;;  %v1064_v6 = vpack.c.bf16 %v699_v0, %v696_v62  ;;  %v1264_v7 = vpop.f32.mrf.mxu1  ;;  %v720_v12 = vadd.f32 %v1256_v5, %v908_v34 }
 0x10c   :  { %1119 = vst [vmem:[%s1596_s9 + $0x28] sm:$0xff] %v1089_v3   ;;  %v1084_v8 = vpack.c.bf16 %v731_v4, %v728_v2  ;;  %v711_v9 = vpop.f32.mrf.mxu0  ;;  %v752_v15 = vadd.f32 %v1264_v7, %v908_v34 }
 0x10d   :  { %1065 = vst [vmem:[%s1596_s9] sm:$0xff] %v1064_v6   ;;  %v743_v10 = vpop.f32.mrf.mxu1  ;;  %v712_v18 = vadd.f32 %v908_v34, %v711_v9 }
 0x10e   :  { %1118 = vst [vmem:[%s1596_s9 + $0x20] sm:$0xff] %v1084_v8   ;;  %v1257_v11 = vpop.f32.mrf.mxu0  ;;  %v744_v22 = vadd.f32 %v908_v34, %v743_v10 }
 0x10f   :  { %v723_v13 = vadd.f32 %v1257_v11, %v908_v34  ;;  %v1265_v14 = vpop.f32.mrf.mxu1 }
 0x110   :  { %v755_v16 = vadd.f32 %v1265_v14, %v908_v34  ;;  %v714_v17 = vpop.f32.mrf.mxu0 }
 0x111   :  { %v1079_v19 = vpack.c.bf16 %v723_v13, %v720_v12  ;;  %v715_v20 = vadd.f32 %v908_v34, %v714_v17  ;;  %v746_v21 = vpop.f32.mrf.mxu1 }
 0x112   :  { %v1099_v23 = vpack.c.bf16 %v755_v16, %v752_v15  ;;  %v747_v24 = vadd.f32 %v908_v34, %v746_v21 }
 0x113   :  { %1117 = vst [vmem:[%s1596_s9 + $0x18] sm:$0xff] %v1079_v19   ;;  %v1074_v25 = vpack.c.bf16 %v715_v20, %v712_v18 }
 0x114   :  { %1121 = vst [vmem:[%s1596_s9 + $0x38] sm:$0xff] %v1099_v23   ;;  %v1094_v26 = vpack.c.bf16 %v747_v24, %v744_v22 }
 0x115   :  { %1116 = vst [vmem:[%s1596_s9 + $0x10] sm:$0xff] %v1074_v25  }
 0x116   :  { %1120 = vst [vmem:[%s1596_s9 + $0x30] sm:$0xff] %v1094_v26  }

// kernel: configurable_gnn_forward.15
= control target key start
LH: loop header
LB: loop body
LE: loop exit
PB: predicated region body
PF: predicated region fallthrough
CT: control target
= control target key end

     0   :  { %v1565_v0 = vmov 0   ;;  %vm27_vm0 = vcmask 7168   ;;  %v1566_v17 = vmov -1e+30   ;;  %s2265_s1 = inlined_call_operand.vmem [shape: f32[128,1], index: 1, kind: input, shape index: {}]   ;;  %s2266_s0 = inlined_call_operand.vmem [shape: s8[128,128], index: 0, kind: input, shape index: {}]   ;;  %s2267_s2 = inlined_call_operand.vmem [shape: f32[1,128], index: 2, kind: input, shape index: {}]   ;;  %s2268_s3 = inlined_call_operand.vmem [shape: bf16[128,128], index: 3, kind: input, shape index: {}]   ;;  %s2269_s4 = inlined_call_operand.vmem [shape: f32[1,128], index: 4, kind: input, shape index: {}]   ;;  %s2270_s5 = inlined_call_operand.vmem [shape: bf16[128,128], index: 5, kind: output, shape index: {}]  }
   0x1   :  { %1460 = vset.pattern.permute.xlu1 %v1565_v0  ;;  %1459 = vset.pattern.permute.xlu0 %v1565_v0  ;;  %v84_v1 = vld [vmem:[%s2265_s1 + $0x40] sm:$0xff]  ;;  %v85_v3 = vld [vmem:[%s2265_s1 + $0x48] sm:$0xff]  ;;  %v79_v5 = vld [vmem:[%s2265_s1 + $0x18] sm:$0xff]  ;;  %28 = vst.msk [vmem:[#allocation2] sm:$0xff] %vm27_vm0, %v1566_v17 }
   0x2   :  { %v76_v2 = vld [vmem:[%s2265_s1] sm:$0xff]  ;;  %135 = vperm.xlu1 %1460, %v84_v1   ;;  %v77_v4 = vld [vmem:[%s2265_s1 + $0x8] sm:$0xff]  ;;  %v78_v6 = vld [vmem:[%s2265_s1 + $0x10] sm:$0xff]  ;;  %29 = vst.msk [vmem:[#allocation2 + $0x8] sm:$0xff] %vm27_vm0, %v1566_v17 }
   0x3   :  { %95 = vperm.xlu0 %1459, %v76_v2   ;;  %v87_v7 = vld [vmem:[%s2265_s1 + $0x58] sm:$0xff]  ;;  %v86_v8 = vld [vmem:[%s2265_s1 + $0x50] sm:$0xff]  ;;  %v81_v9 = vld [vmem:[%s2265_s1 + $0x28] sm:$0xff]  ;;  %30 = vst.msk [vmem:[#allocation2 + $0x10] sm:$0xff] %vm27_vm0, %v1566_v17 }
   0x4   :  { %v80_v10 = vld [vmem:[%s2265_s1 + $0x20] sm:$0xff]  ;;  %v89_v11 = vld [vmem:[%s2265_s1 + $0x68] sm:$0xff]  ;;  %v83_v13 = vld [vmem:[%s2265_s1 + $0x38] sm:$0xff]  ;;  %31 = vst.msk [vmem:[#allocation2 + $0x18] sm:$0xff] %vm27_vm0, %v1566_v17 }
   0x5   :  { %v88_v12 = vld [vmem:[%s2265_s1 + $0x60] sm:$0xff]  ;;  %v82_v14 = vld [vmem:[%s2265_s1 + $0x30] sm:$0xff]  ;;  %v91_v15 = vld [vmem:[%s2265_s1 + $0x78] sm:$0xff]  ;;  %32 = vst.msk [vmem:[#allocation2 + $0x20] sm:$0xff] %vm27_vm0, %v1566_v17 }
   0x6   :  { %140 = vperm.xlu1 %1460, %v85_v3   ;;  %v90_v16 = vld [vmem:[%s2265_s1 + $0x70] sm:$0xff]  ;;  %33 = vst.msk [vmem:[#allocation2 + $0x28] sm:$0xff] %vm27_vm0, %v1566_v17  ;;  %34 = vst.msk [vmem:[#allocation2 + $0x30] sm:$0xff] %vm27_vm0, %v1566_v17  ;;  %v195_v18 = vld [vmem:[%s2266_s0] sm:$0xff] }
   0x7   :  { %100 = vperm.xlu0 %1459, %v77_v4   ;;  %35 = vst.msk [vmem:[#allocation2 + $0x38] sm:$0xff] %vm27_vm0, %v1566_v17  ;;  %36 = vst.msk [vmem:[#allocation2 + $0x40] sm:$0xff] %vm27_vm0, %v1566_v17  ;;  %vm199_vm1 = vnez %v195_v18  ;;  %v197_v19 = vld [vmem:[%s2266_s0 + $0x10] sm:$0xff]  ;;  %v196_v25 = vld [vmem:[%s2266_s0 + $0x8] sm:$0xff] }
   0x8   :  { %37 = vst.msk [vmem:[#allocation2 + $0x48] sm:$0xff] %vm27_vm0, %v1566_v17  ;;  %38 = vst.msk [vmem:[#allocation2 + $0x50] sm:$0xff] %vm27_vm0, %v1566_v17  ;;  %v235_v20 = vsel %vm199_vm1, 16843009, %v1565_v0  ;;  %vm201_vm2 = vnez %v197_v19  ;;  %vm200_vm3 = vnez %v196_v25  ;;  %v198_v46 = vld [vmem:[%s2266_s0 + $0x18] sm:$0xff] }
   0x9   :  { %39 = vst.msk [vmem:[#allocation2 + $0x58] sm:$0xff] %vm27_vm0, %v1566_v17  ;;  %40 = vst.msk [vmem:[#allocation2 + $0x60] sm:$0xff] %vm27_vm0, %v1566_v17  ;;  %v239_v21 = vunpack.c.0.s8 %v235_v20  ;;  %v237_v22 = vsel %vm201_vm2, 16843009, %v1565_v0  ;;  %v240_v23 = vunpack.c.1.s8 %v235_v20  ;;  %v241_v24 = vunpack.c.2.s8 %v235_v20  ;;  %v1690_v56 = vld [vmem:[%s2267_s2] ss:$0 sm:$0xff] }
   0xa   :  { %110 = vperm.xlu1 %1460, %v79_v5   ;;  %41 = vst.msk [vmem:[#allocation2 + $0x68] sm:$0xff] %vm27_vm0, %v1566_v17  ;;  %42 = vst.msk [vmem:[#allocation2 + $0x70] sm:$0xff] %vm27_vm0, %v1566_v17  ;;  %v247_v27 = vunpack.c.0.s8 %v237_v22  ;;  %v248_v30 = vunpack.c.1.s8 %v237_v22  ;;  %v242_v31 = vunpack.c.3.s8 %v235_v20  ;;  %v249_v34 = vunpack.c.2.s8 %v237_v22 }
   0xb   :  { %105 = vperm.xlu0 %1459, %v78_v6   ;;  %43 = vst.msk [vmem:[#allocation2 + $0x78] sm:$0xff] %vm27_vm0, %v1566_v17  ;;  %v255_v26 = vpack.c.b16 %v239_v21, %v239_v21  ;;  %v257_v28 = vpack.c.b16 %v240_v23, %v240_v23  ;;  %v259_v29 = vpack.c.b16 %v241_v24, %v241_v24  ;;  %v1676_v35 = vsel %vm200_vm3, 16843009, %v1565_v0 }
   0xc   :  { %v271_v33 = vpack.c.b16 %v247_v27, %v247_v27  ;;  %v273_v38 = vpack.c.b16 %v248_v30, %v248_v30  ;;  %v261_v39 = vpack.c.b16 %v242_v31, %v242_v31  ;;  %v275_v41 = vpack.c.b16 %v249_v34, %v249_v34 }
   0xd   :  { %v256_v32 = vpack.c.b8 %v255_v26, %v255_v26  ;;  %v258_v36 = vpack.c.b8 %v257_v28, %v257_v28  ;;  %v260_v37 = vpack.c.b8 %v259_v29, %v259_v29  ;;  %v243_v42 = vunpack.c.0.s8 %v1676_v35 }
   0xe   :  { %150 = vperm.xlu1 %1460, %v87_v7   ;;  %v272_v40 = vpack.c.b8 %v271_v33, %v271_v33  ;;  %v250_v43 = vunpack.c.3.s8 %v237_v22  ;;  %v274_v44 = vpack.c.b8 %v273_v38, %v273_v38  ;;  %v262_v45 = vpack.c.b8 %v261_v39, %v261_v39 }
   0xf   :  { %145 = vperm.xlu0 %1459, %v86_v8   ;;  %vm287_vm4 = vnez %v256_v32  ;;  %vm288_vm5 = vnez %v258_v36  ;;  %vm289_vm6 = vnez %v260_v37  ;;  %v276_v48 = vpack.c.b8 %v275_v41, %v275_v41 }
  0x10   :  { %v303_v47 = vsel %vm287_vm4, 16843009, %v1565_v0  ;;  %vm295_vm7 = vnez %v272_v40  ;;  %v263_v49 = vpack.c.b16 %v243_v42, %v243_v42  ;;  %v304_v50 = vsel %vm288_vm5, 16843009, %v1565_v0 }
  0x11   :  { %v305_v51 = vsel %vm289_vm6, 16843009, %v1565_v0  ;;  %v277_v52 = vpack.c.b16 %v250_v43, %v250_v43  ;;  %vm202_vm8 = vnez %v198_v46  ;;  %v319_v53 = vunpack.c.0.s8 %v303_v47 }
  0x12   :  { %120 = vperm.xlu1 %1460, %v81_v9   ;;  %vm296_vm9 = vnez %v274_v44  ;;  %vm290_vm10 = vnez %v262_v45  ;;  %v244_v54 = vunpack.c.1.s8 %v1676_v35  ;;  %v311_v55 = vsel %vm295_vm7, 16843009, %v1565_v0 }
  0x13   :  { %115 = vperm.xlu0 %1459, %v80_v10   ;;  %v320_v57 = vunpack.c.0.s8 %v304_v50  ;;  %vm297_vm11 = vnez %v276_v48  ;;  %v264_v58 = vpack.c.b8 %v263_v49, %v263_v49  ;;  %v1693_v59 = vsel %vm202_vm8, 16843009, %v1565_v0 }
  0x14   :  { %v321_v60 = vunpack.c.0.s8 %v305_v51  ;;  %v312_v61 = vsel %vm296_vm9, 16843009, %v1565_v0  ;;  %v306_v62 = vsel %vm290_vm10, 16843009, %v1565_v0  ;;  %v278_v63 = vpack.c.b8 %v277_v52, %v277_v52 }
  0x15   :  { %vm1697_vm12 = vcmp.ne.s32.totalorder %v319_v53, 0  ;;  %v327_v4 = vunpack.c.0.s8 %v311_v55  ;;  %v265_v5 = vpack.c.b16 %v244_v54, %v244_v54  ;;  %v245_v6 = vunpack.c.2.s8 %v1676_v35 }
  0x16   :  { %160 = vperm.xlu1 %1460, %v89_v11   ;;  %v313_v9 = vsel %vm297_vm11, 16843009, %v1565_v0  ;;  %v251_v10 = vunpack.c.0.s8 %v1693_v59  ;;  %vm1706_vm13 = vcmp.ne.s32.totalorder %v320_v57, 0  ;;  %vm1710_vm14 = vnez %v264_v58 }
  0x17   :  { %155 = vperm.xlu0 %1459, %v88_v12   ;;  %v328_v12 = vunpack.c.0.s8 %v312_v61  ;;  %vm1714_vm15 = vnez %v278_v63  ;;  %v252_v18 = vunpack.c.1.s8 %v1693_v59  ;;  %vm1719_vm1 = vcmp.ne.s32.totalorder %v327_v4, 0 }
  0x18   :  { %vm1723_vm2 = vcmp.ne.s32.totalorder %v321_v60, 0  ;;  %v329_v23 = vunpack.c.0.s8 %v313_v9  ;;  %v266_v24 = vpack.c.b8 %v265_v5, %v265_v5  ;;  %v267_v25 = vpack.c.b16 %v245_v6, %v245_v6 }
  0x19   :  { %v279_v29 = vpack.c.b16 %v251_v10, %v251_v10  ;;  %vm1729_vm3 = vcmp.ne.s32.totalorder %v328_v12, 0  ;;  %v307_v32 = vsel %vm1710_vm14, 16843009, %v1565_v0  ;;  %v314_v33 = vsel %vm1714_vm15, 16843009, %v1565_v0 }
  0x1a   :  { %130 = vperm.xlu1 %1460, %v83_v13   ;;  %v322_v13 = vunpack.c.0.s8 %v306_v62  ;;  %v281_v39 = vpack.c.b16 %v252_v18, %v252_v18  ;;  %vm1748_vm5 = vcmp.ne.s32.totalorder %v329_v23, 0  ;;  %vm1752_vm6 = vnez %v266_v24 }
  0x1b   :  { %125 = vperm.xlu0 %1459, %v82_v14   ;;  %v268_v44 = vpack.c.b8 %v267_v25, %v267_v25  ;;  %v253_v45 = vunpack.c.2.s8 %v1693_v59  ;;  %v246_v46 = vunpack.c.3.s8 %v1676_v35  ;;  %v280_v50 = vpack.c.b8 %v279_v29, %v279_v29 }
  0x1c   :  { %vm1743_vm4 = vcmp.ne.s32.totalorder %v322_v13, 0  ;;  %v323_v53 = vunpack.c.0.s8 %v307_v32  ;;  %v330_v54 = vunpack.c.0.s8 %v314_v33  ;;  %v282_v35 = vpack.c.b8 %v281_v39, %v281_v39 }
  0x1d   :  { %v308_v62 = vsel %vm1752_vm6, 16843009, %v1565_v0  ;;  %vm1773_vm7 = vnez %v268_v44  ;;  %vm299_vm8 = vnez %v280_v50  ;;  %v254_v9 = vunpack.c.3.s8 %v1693_v59 }
  0x1e   :  { %170 = vperm.xlu1 %1460, %v91_v15   ;;  %vm1783_vm9 = vcmp.ne.s32.totalorder %v323_v53, 0  ;;  %vm300_vm10 = vnez %v282_v35  ;;  %vm1794_vm11 = vcmp.ne.s32.totalorder %v330_v54, 0  ;;  %v324_v59 = vunpack.c.0.s8 %v308_v62 }
  0x1f   :  { %165 = vperm.xlu0 %1459, %v90_v16   ;;  %v316_v24 = vsel %vm300_vm10, 16843009, %v1565_v0  ;;  %v285_v25 = vpack.c.b16 %v254_v9, %v254_v9  ;;  %v309_v33 = vsel %vm1773_vm7, 16843009, %v1565_v0 }
  0x21   :  { %v286_v43 = vpack.c.b8 %v285_v25, %v285_v25  ;;  %v1896_v25 = vld [vmem:[#allocation2 + $0x40] sm:$0xff] }
  0x7d   :  { %v136_v1 = vpop.permute.xlu1 %135 }
  0x7e   :  { %v96_v2 = vpop.permute.xlu0 %95  ;;  %v187_v7 = vadd.f32 %v1690_v56, %v136_v1  ;;  %v283_v1 = vpack.c.b16 %v253_v45, %v253_v45 }
  0x7f   :  { %v179_v8 = vadd.f32 %v1690_v56, %v96_v2  ;;  %v269_v2 = vpack.c.b16 %v246_v46, %v246_v46 }
  0x80   :  { %v211_v15 = vmul.f32 0.2, %v187_v7  ;;  %v284_v21 = vpack.c.b8 %v283_v1, %v283_v1 }
  0x81   :  { %v203_v16 = vmul.f32 0.2, %v179_v8  ;;  %v141_v19 = vpop.permute.xlu1 %140  ;;  %v270_v17 = vpack.c.b8 %v269_v2, %v269_v2 }
  0x82   :  { %v101_v20 = vpop.permute.xlu0 %100  ;;  %v188_v26 = vadd.f32 %v1690_v56, %v141_v19  ;;  %v227_v30 = vmax.f32 %v187_v7, %v211_v15  ;;  %vm301_vm14 = vnez %v284_v21  ;;  %v1461_v21 = vld [vmem:[%s2268_s3 + $0x38] sm:$0xff]  }
  0x83   :  { %v180_v27 = vadd.f32 %v1690_v56, %v101_v20  ;;  %v219_v28 = vmax.f32 %v179_v8, %v203_v16  ;;  %v315_v16 = vsel %vm299_vm8, 16843009, %v1565_v0  ;;  %1408 = vmatprep.subr.bf16.mxu0 %v1461_v21  ;;  %1440 = vmatprep.subr.bf16.mxu1 %v1461_v21 }
  0x84   :  { %v212_v34 = vmul.f32 0.2, %v188_v26  ;;  %v1762_v51 = vsel %vm1719_vm1, %v227_v30, -1e+30  ;;  %v331_v31 = vunpack.c.0.s8 %v315_v16  ;;  %v1567_v16 = vmov 0.0   ;;  %1409 = vmatpush3.bf16.msra.mxu0 %v1461_v21  ;;  %1448 = vmatpush3.bf16.msra.mxu1 %v1461_v21  ;;  %v2007_v21 = vld [vmem:[#allocation2 + $0x30] sm:$0xff] }
  0x85   :  { %v204_v36 = vmul.f32 0.2, %v180_v27  ;;  %v1741_v37 = vsel %vm1697_vm12, %v219_v28, -1e+30  ;;  %v111_v40 = vpop.permute.xlu1 %110  ;;  %vm1812_vm12 = vcmp.ne.s32.totalorder %v324_v59, 0  ;;  %44 = vst.msk [vmem:[#allocation3] sm:$0xff] %vm27_vm0, %v1567_v16 }
  0x86   :  { %v106_v41 = vpop.permute.xlu0 %105  ;;  %383 = vmax.xlane.f32.xlu0 %v1741_v37  ;;  %v182_v47 = vadd.f32 %v1690_v56, %v111_v40  ;;  %v228_v52 = vmax.f32 %v188_v26, %v212_v34  ;;  %v332_v40 = vunpack.c.0.s8 %v316_v24  ;;  %vm347_vm15 = vcmp.ne.s32.totalorder %v331_v31, 0  ;;  %45 = vst.msk [vmem:[#allocation3 + $0x8] sm:$0xff] %vm27_vm0, %v1567_v16  ;;  %46 = vst.msk [vmem:[#allocation3 + $0x10] sm:$0xff] %vm27_vm0, %v1567_v16  ;;  %v1894_v24 = vld [vmem:[#allocation2 + $0x8] sm:$0xff]  ;;  %v1915_v34 = vld [vmem:[#allocation2 + $0x10] sm:$0xff] }
  0x87   :  { %v181_v48 = vadd.f32 %v1690_v56, %v106_v41  ;;  %v220_v49 = vmax.f32 %v180_v27, %v204_v36  ;;  %47 = vst.msk [vmem:[#allocation3 + $0x18] sm:$0xff] %vm27_vm0, %v1567_v16  ;;  %48 = vst.msk [vmem:[#allocation3 + $0x20] sm:$0xff] %vm27_vm0, %v1567_v16 }
  0x88   :  { %v206_v55 = vmul.f32 0.2, %v182_v47  ;;  %v1781_v6 = vsel %vm1729_vm3, %v228_v52, -1e+30  ;;  %vm1845_vm1 = vcmp.ne.s32.totalorder %v332_v40, 0  ;;  %49 = vst.msk [vmem:[#allocation3 + $0x28] sm:$0xff] %vm27_vm0, %v1567_v16 }
  0x89   :  { %v205_v57 = vmul.f32 0.2, %v181_v48  ;;  %v1766_v58 = vsel %vm1706_vm13, %v220_v49, -1e+30  ;;  %v151_v60 = vpop.permute.xlu1 %150  ;;  %vm1819_vm13 = vnez %v270_v17  ;;  %v325_v49 = vunpack.c.0.s8 %v309_v33  ;;  %50 = vst.msk [vmem:[#allocation3 + $0x30] sm:$0xff] %vm27_vm0, %v1567_v16  ;;  %51 = vst.msk [vmem:[#allocation3 + $0x38] sm:$0xff] %vm27_vm0, %v1567_v16 }
  0x8a   :  { %v146_v61 = vpop.permute.xlu0 %145  ;;  %385 = vmax.xlane.f32.xlu1 %v1766_v58  ;;  %399 = vmax.xlane.f32.xlu0 %v1762_v51  ;;  %v190_v3 = vadd.f32 %v1690_v56, %v151_v60  ;;  %v222_v7 = vmax.f32 %v182_v47, %v206_v55  ;;  %v310_v50 = vsel %vm1819_vm13, 16843009, %v1565_v0  ;;  %v317_v55 = vsel %vm301_vm14, 16843009, %v1565_v0  ;;  %52 = vst.msk [vmem:[#allocation3 + $0x40] sm:$0xff] %vm27_vm0, %v1567_v16  ;;  %v1961_v60 = vld [vmem:[#allocation2 + $0x20] sm:$0xff] }
  0x8b   :  { %v189_v4 = vadd.f32 %v1690_v56, %v146_v61  ;;  %v221_v5 = vmax.f32 %v181_v48, %v205_v57  ;;  %vm341_vm3 = vcmp.ne.s32.totalorder %v325_v49, 0  ;;  %53 = vst.msk [vmem:[#allocation3 + $0x48] sm:$0xff] %vm27_vm0, %v1567_v16  ;;  %54 = vst.msk [vmem:[#allocation3 + $0x50] sm:$0xff] %vm27_vm0, %v1567_v16  ;;  %v1464_v49 = vld [vmem:[%s2268_s3 + $0x20] sm:$0xff]  }
  0x8c   :  { %v214_v10 = vmul.f32 0.2, %v190_v3  ;;  %v1803_v22 = vsel %vm1743_vm4, %v222_v7, -1e+30  ;;  %55 = vst.msk [vmem:[#allocation3 + $0x58] sm:$0xff] %vm27_vm0, %v1567_v16  ;;  %56 = vst.msk [vmem:[#allocation3 + $0x60] sm:$0xff] %vm27_vm0, %v1567_v16 }
  0x8d   :  { %v213_v11 = vmul.f32 0.2, %v189_v4  ;;  %v1790_v12 = vsel %vm1723_vm2, %v221_v5, -1e+30  ;;  %v121_v13 = vpop.permute.xlu1 %120  ;;  %vm302_vm2 = vnez %v286_v43  ;;  %57 = vst.msk [vmem:[#allocation3 + $0x68] sm:$0xff] %vm27_vm0, %v1567_v16  ;;  %58 = vst.msk [vmem:[#allocation3 + $0x70] sm:$0xff] %vm27_vm0, %v1567_v16 }
  0x8e   :  { %v116_v14 = vpop.permute.xlu0 %115  ;;  %387 = vmax.xlane.f32.xlu1 %v1790_v12  ;;  %401 = vmax.xlane.f32.xlu0 %v1781_v6  ;;  %v184_v18 = vadd.f32 %v1690_v56, %v121_v13  ;;  %v230_v23 = vmax.f32 %v190_v3, %v214_v10  ;;  %v333_v3 = vunpack.c.0.s8 %v317_v55  ;;  %v318_v9 = vsel %vm302_vm2, 16843009, %v1565_v0  ;;  %59 = vst.msk [vmem:[#allocation3 + $0x78] sm:$0xff] %vm27_vm0, %v1567_v16 }
  0x8f   :  { %v183_v19 = vadd.f32 %v1690_v56, %v116_v14  ;;  %v229_v20 = vmax.f32 %v189_v4, %v213_v11  ;;  %v326_v4 = vunpack.c.0.s8 %v310_v50  ;;  %v334_v0 = vunpack.c.0.s8 %v318_v9  ;;  %v1986_v9 = vld [vmem:[#allocation2 + $0x28] sm:$0xff] }
  0x90   :  { %v208_v26 = vmul.f32 0.2, %v184_v18  ;;  %v1827_v41 = vsel %vm1794_vm11, %v230_v23, -1e+30  ;;  %vm349_vm4 = vcmp.ne.s32.totalorder %v333_v3, 0 }
  0x91   :  { %v207_v27 = vmul.f32 0.2, %v183_v19  ;;  %v1808_v28 = vsel %vm1748_vm5, %v229_v20, -1e+30  ;;  %v161_v29 = vpop.permute.xlu1 %160  ;;  %vm342_vm5 = vcmp.ne.s32.totalorder %v326_v4, 0  ;;  %vm350_vm6 = vcmp.ne.s32.totalorder %v334_v0, 0 }
  0x92   :  { %v156_v30 = vpop.permute.xlu0 %155  ;;  %403 = vmax.xlane.f32.xlu1 %v1808_v28  ;;  %389 = vmax.xlane.f32.xlu0 %v1803_v22  ;;  %v192_v36 = vadd.f32 %v1690_v56, %v161_v29  ;;  %v224_v42 = vmax.f32 %v184_v18, %v208_v26  ;;  %v1889_v20 = vld [vmem:[#allocation2] sm:$0xff] }
  0x93   :  { %v191_v38 = vadd.f32 %v1690_v56, %v156_v30  ;;  %v223_v39 = vmax.f32 %v183_v19, %v207_v27  ;;  %v1462_v27 = vld [vmem:[%s2268_s3 + $0x30] sm:$0xff]  }
  0x94   :  { %v216_v44 = vmul.f32 0.2, %v192_v36  ;;  %v1843_v57 = vsel %vm1812_vm12, %v224_v42, -1e+30  ;;  %1410 = vmatprep.subr.bf16.mxu0 %v1462_v27  ;;  %1441 = vmatprep.subr.bf16.mxu1 %v1462_v27 }
  0x95   :  { %v215_v45 = vmul.f32 0.2, %v191_v38  ;;  %v1831_v46 = vsel %vm1783_vm9, %v223_v39, -1e+30  ;;  %v131_v47 = vpop.permute.xlu1 %130  ;;  %1411 = vmatpush3.bf16.msra.mxu0 %v1462_v27  ;;  %1449 = vmatpush3.bf16.msra.mxu1 %v1462_v27  ;;  %v1467_v27 = vld [vmem:[%s2268_s3 + $0x8] sm:$0xff]  }
  0x96   :  { %v126_v48 = vpop.permute.xlu0 %125  ;;  %391 = vmax.xlane.f32.xlu1 %v1831_v46  ;;  %405 = vmax.xlane.f32.xlu0 %v1827_v41  ;;  %v186_v52 = vadd.f32 %v1690_v56, %v131_v47  ;;  %v232_v35 = vmax.f32 %v192_v36, %v216_v44  ;;  %v1917_v36 = vld [vmem:[#allocation2 + $0x48] sm:$0xff]  ;;  %v1938_v47 = vld [vmem:[#allocation2 + $0x50] sm:$0xff] }
  0x97   :  { %v185_v53 = vadd.f32 %v1690_v56, %v126_v48  ;;  %v231_v54 = vmax.f32 %v191_v38, %v215_v45  ;;  %v1463_v38 = vld [vmem:[%s2268_s3 + $0x28] sm:$0xff]   ;;  %v1940_v48 = vld [vmem:[#allocation2 + $0x18] sm:$0xff] }
  0x98   :  { %v210_v61 = vmul.f32 0.2, %v186_v52  ;;  %v1858_v10 = vsel %vm1845_vm1, %v232_v35, -1e+30  ;;  %1412 = vmatprep.subr.bf16.mxu0 %v1463_v38  ;;  %1442 = vmatprep.subr.bf16.mxu1 %v1463_v38 }
  0x99   :  { %v209_v62 = vmul.f32 0.2, %v185_v53  ;;  %v1849_v63 = vsel %vm347_vm15, %v231_v54, -1e+30  ;;  %v171_v1 = vpop.permute.xlu1 %170  ;;  %1413 = vmatpush3.bf16.msra.mxu0 %v1463_v38  ;;  %1450 = vmatpush3.bf16.msra.mxu1 %v1463_v38 }
  0x9a   :  { %v166_v2 = vpop.permute.xlu0 %165  ;;  %407 = vmax.xlane.f32.xlu1 %v1849_v63  ;;  %393 = vmax.xlane.f32.xlu0 %v1843_v57  ;;  %v194_v5 = vadd.f32 %v1690_v56, %v171_v1  ;;  %v226_v15 = vmax.f32 %v186_v52, %v210_v61  ;;  %v1963_v61 = vld [vmem:[#allocation2 + $0x58] sm:$0xff] }
  0x9b   :  { %v193_v7 = vadd.f32 %v1690_v56, %v166_v2  ;;  %v225_v8 = vmax.f32 %v185_v53, %v209_v62  ;;  %1414 = vmatprep.subr.bf16.mxu0 %v1464_v49  ;;  %1443 = vmatprep.subr.bf16.mxu1 %v1464_v49  ;;  %v1465_v62 = vld [vmem:[%s2268_s3 + $0x18] sm:$0xff]  }
  0x9c   :  { %v218_v11 = vmul.f32 0.2, %v194_v5  ;;  %v1882_v17 = vsel %vm342_vm5, %v226_v15, -1e+30 }
  0x9d   :  { %v217_v13 = vmul.f32 0.2, %v193_v7  ;;  %v1860_v14 = vsel %vm341_vm3, %v225_v8, -1e+30  ;;  %1415 = vmatpush3.bf16.msra.mxu0 %v1464_v49  ;;  %1451 = vmatpush3.bf16.msra.mxu1 %v1464_v49  ;;  %v1984_v8 = vld [vmem:[#allocation2 + $0x60] sm:$0xff] }
  0x9e   :  { %395 = vmax.xlane.f32.xlu1 %v1860_v14  ;;  %409 = vmax.xlane.f32.xlu0 %v1858_v10  ;;  %v234_v18 = vmax.f32 %v194_v5, %v218_v11  ;;  %v1466_v11 = vld [vmem:[%s2268_s3 + $0x10] sm:$0xff]  }
  0x9f   :  { %v233_v56 = vmax.f32 %v193_v7, %v217_v13  ;;  %1416 = vmatprep.subr.bf16.mxu0 %v1465_v62  ;;  %1444 = vmatprep.subr.bf16.mxu1 %v1465_v62 }
  0xa0   :  { %v1886_v19 = vsel %vm350_vm6, %v234_v18, -1e+30 }
  0xa1   :  { %v1880_v59 = vsel %vm349_vm4, %v233_v56, -1e+30  ;;  %1417 = vmatpush3.bf16.msra.mxu0 %v1465_v62  ;;  %1452 = vmatpush3.bf16.msra.mxu1 %v1465_v62  ;;  %v1468_v62 = vld [vmem:[%s2268_s3] sm:$0xff]  }
  0xa2   :  { %411 = vmax.xlane.f32.xlu1 %v1880_v59  ;;  %397 = vmax.xlane.f32.xlu0 %v1882_v17 }
  0xa3   :  { %1418 = vmatprep.subr.bf16.mxu0 %v1466_v11  ;;  %1445 = vmatprep.subr.bf16.mxu1 %v1466_v11 }
  0xa5   :  { %1419 = vmatpush3.bf16.msra.mxu0 %v1466_v11  ;;  %1453 = vmatpush3.bf16.msra.mxu1 %v1466_v11 }
  0xa6   :  { %413 = vmax.xlane.f32.xlu0 %v1886_v19  ;;  %1420 = vmatprep.subr.bf16.mxu0 %v1467_v27 }
  0xa7   :  { %1446 = vmatprep.subr.bf16.mxu1 %v1467_v27 }
  0xa9   :  { %1421 = vmatpush3.bf16.msra.mxu0 %v1467_v27  ;;  %1454 = vmatpush3.bf16.msra.mxu1 %v1467_v27 }
  0xaa   :  { %1422 = vmatprep.subr.bf16.mxu0 %v1468_v62  ;;  %1447 = vmatprep.subr.bf16.mxu1 %v1468_v62 }
  0xad   :  { %1423 = vmatpush3.bf16.msra.mxu0 %v1468_v62  ;;  %1455 = vmatpush3.bf16.msra.mxu1 %v1468_v62 }
 0x10f   :  { %v384_v23 = vpop.xlane.xlu0 %383 }
 0x110   :  { %v1899_v26 = vmax.f32 %v1889_v20, %v384_v23  ;;  %v2009_v23 = vld [vmem:[#allocation2 + $0x68] sm:$0xff] }
 0x112   :  { %v431_v29 = vsub.f32 %v1889_v20, %v1899_v26  ;;  %1017 = vst.msk [vmem:[#allocation2] sm:$0xff] %vm27_vm0, %v1899_v26  ;;  %481 = vperm.xlu1 %1460, %v1899_v26  }
 0x113   :  { %v386_v30 = vpop.xlane.xlu1 %385  ;;  %v400_v31 = vpop.xlane.xlu0 %399 }
 0x114   :  { %v1910_v32 = vmax.f32 %v1894_v24, %v386_v30  ;;  %v1913_v33 = vmax.f32 %v1896_v25, %v400_v31 }
 0x116   :  { %1018 = vst.msk [vmem:[#allocation2 + $0x8] sm:$0xff] %vm27_vm0, %v1910_v32  ;;  %1025 = vst.msk [vmem:[#allocation2 + $0x40] sm:$0xff] %vm27_vm0, %v1913_v33  ;;  %486 = vperm.xlu0 %1459, %v1910_v32   ;;  %521 = vperm.xlu1 %1460, %v1913_v33  }
 0x117   :  { %v388_v42 = vpop.xlane.xlu1 %387  ;;  %v402_v43 = vpop.xlane.xlu0 %401 }
 0x118   :  { %v1933_v44 = vmax.f32 %v1915_v34, %v388_v42  ;;  %v1936_v45 = vmax.f32 %v1917_v36, %v402_v43 }
 0x11a   :  { %1019 = vst.msk [vmem:[#allocation2 + $0x10] sm:$0xff] %vm27_vm0, %v1933_v44  ;;  %1026 = vst.msk [vmem:[#allocation2 + $0x48] sm:$0xff] %vm27_vm0, %v1936_v45  ;;  %491 = vperm.xlu0 %1459, %v1933_v44   ;;  %526 = vperm.xlu1 %1460, %v1936_v45  }
 0x11b   :  { %v404_v53 = vpop.xlane.xlu1 %403  ;;  %v390_v54 = vpop.xlane.xlu0 %389 }
 0x11c   :  { %v1956_v55 = vmax.f32 %v1938_v47, %v404_v53  ;;  %v1959_v35 = vmax.f32 %v1940_v48, %v390_v54  ;;  %v2030_v53 = vld [vmem:[#allocation2 + $0x70] sm:$0xff]  ;;  %v2032_v54 = vld [vmem:[#allocation2 + $0x38] sm:$0xff] }
 0x11e   :  { %1027 = vst.msk [vmem:[#allocation2 + $0x50] sm:$0xff] %vm27_vm0, %v1956_v55  ;;  %1020 = vst.msk [vmem:[#allocation2 + $0x18] sm:$0xff] %vm27_vm0, %v1959_v35  ;;  %531 = vperm.xlu0 %1459, %v1956_v55   ;;  %496 = vperm.xlu1 %1460, %v1959_v35  }
 0x11f   :  { %v392_v3 = vpop.xlane.xlu1 %391  ;;  %v406_v4 = vpop.xlane.xlu0 %405 }
 0x120   :  { %v1979_v5 = vmax.f32 %v1961_v60, %v392_v3  ;;  %v1982_v7 = vmax.f32 %v1963_v61, %v406_v4 }
 0x122   :  { %1021 = vst.msk [vmem:[#allocation2 + $0x20] sm:$0xff] %vm27_vm0, %v1979_v5  ;;  %1028 = vst.msk [vmem:[#allocation2 + $0x58] sm:$0xff] %vm27_vm0, %v1982_v7  ;;  %501 = vperm.xlu0 %1459, %v1979_v5   ;;  %536 = vperm.xlu1 %1460, %v1982_v7   ;;  %v2306_v20 = vsub.f32 %v1961_v60, %v1979_v5  ;;  %v2310_v60 = vsub.f32 %v1896_v25, %v1913_v33 }
 0x123   :  { %v408_v16 = vpop.xlane.xlu1 %407  ;;  %v394_v0 = vpop.xlane.xlu0 %393 }
 0x124   :  { %v2002_v56 = vmax.f32 %v1984_v8, %v408_v16  ;;  %v2005_v18 = vmax.f32 %v1986_v9, %v394_v0  ;;  %v455_v26 = vmul.f32 1.442695, %v2306_v20  ;;  %v463_v5 = vmul.f32 1.442695, %v2310_v60  ;;  %v615_v60 = vld [vmem:[#allocation3 + $0x40] sm:$0xff] }
 0x126   :  { %1029 = vst.msk [vmem:[#allocation2 + $0x60] sm:$0xff] %vm27_vm0, %v2002_v56  ;;  %1022 = vst.msk [vmem:[#allocation2 + $0x28] sm:$0xff] %vm27_vm0, %v2005_v18  ;;  %541 = vperm.xlu0 %1459, %v2002_v56   ;;  %506 = vperm.xlu1 %1460, %v2005_v18  }
 0x127   :  { %v396_v38 = vpop.xlane.xlu1 %395  ;;  %v410_v42 = vpop.xlane.xlu0 %409 }
 0x128   :  { %v2025_v43 = vmax.f32 %v2007_v21, %v396_v38  ;;  %v2028_v49 = vmax.f32 %v2009_v23, %v410_v42  ;;  %v2053_v38 = vld [vmem:[#allocation2 + $0x78] sm:$0xff] }
 0x12a   :  { %1023 = vst.msk [vmem:[#allocation2 + $0x30] sm:$0xff] %vm27_vm0, %v2025_v43  ;;  %1030 = vst.msk [vmem:[#allocation2 + $0x68] sm:$0xff] %vm27_vm0, %v2028_v49  ;;  %511 = vperm.xlu0 %1459, %v2025_v43   ;;  %546 = vperm.xlu1 %1460, %v2028_v49  }
 0x12b   :  { %v412_v11 = vpop.xlane.xlu1 %411  ;;  %v398_v16 = vpop.xlane.xlu0 %397 }
 0x12c   :  { %v2048_v0 = vmax.f32 %v2030_v53, %v412_v11  ;;  %v2051_v27 = vmax.f32 %v2032_v54, %v398_v16 }
 0x12e   :  { %1031 = vst.msk [vmem:[#allocation2 + $0x70] sm:$0xff] %vm27_vm0, %v2048_v0  ;;  %1024 = vst.msk [vmem:[#allocation2 + $0x38] sm:$0xff] %vm27_vm0, %v2051_v27  ;;  %551 = vperm.xlu0 %1459, %v2048_v0   ;;  %516 = vperm.xlu1 %1460, %v2051_v27  }
 0x12f   :  { %v414_v11 = vpop.xlane.xlu0 %413 }
 0x130   :  { %v2066_v62 = vmax.f32 %v2053_v38, %v414_v11 }
 0x132   :  { %1032 = vst.msk [vmem:[#allocation2 + $0x78] sm:$0xff] %vm27_vm0, %v2066_v62  ;;  %556 = vperm.xlu1 %1460, %v2066_v62  }
 0x18d   :  { %v482_v42 = vpop.permute.xlu1 %481 }
 0x18e   :  { %v559_v30 = vsub.f32 %v1741_v37, %v482_v42 }
 0x190   :  { %v575_v15 = vmul.f32 1.442695, %v559_v30 }
 0x191   :  { %v522_v1 = vpop.permute.xlu1 %521  ;;  %v487_v52 = vpop.permute.xlu0 %486 }
 0x192   :  { %1469 = vpow2.f32 %v575_v15  ;;  %v567_v40 = vsub.f32 %v1762_v51, %v522_v1  ;;  %v560_v11 = vsub.f32 %v1766_v58, %v487_v52 }
 0x194   :  { %v577_v4 = vmul.f32 1.442695, %v560_v11  ;;  %v591_v3 = vmul.f32 1.442695, %v567_v40 }
 0x195   :  { %v527_v31 = vpop.permute.xlu1 %526  ;;  %v492_v16 = vpop.permute.xlu0 %491 }
 0x196   :  { %v568_v13 = vsub.f32 %v1781_v6, %v527_v31  ;;  %v561_v2 = vsub.f32 %v1790_v12, %v492_v16  ;;  %1471 = vpow2.f32 %v577_v4 }
 0x197   :  { %1473 = vpow2.f32 %v591_v3 }
 0x198   :  { %v593_v39 = vmul.f32 1.442695, %v568_v13  ;;  %v579_v50 = vmul.f32 1.442695, %v561_v2 }
 0x199   :  { %v497_v37 = vpop.permute.xlu1 %496  ;;  %v532_v30 = vpop.permute.xlu0 %531 }
 0x19a   :  { %1475 = vpow2.f32 %v593_v39  ;;  %v562_v15 = vsub.f32 %v1803_v22, %v497_v37  ;;  %v569_v51 = vsub.f32 %v1808_v28, %v532_v30 }
 0x19b   :  { %1477 = vpow2.f32 %v579_v50 }
 0x19c   :  { %v581_v58 = vmul.f32 1.442695, %v562_v15  ;;  %v595_v40 = vmul.f32 1.442695, %v569_v51 }
 0x19d   :  { %v537_v52 = vpop.permute.xlu1 %536  ;;  %v502_v1 = vpop.permute.xlu0 %501 }
 0x19e   :  { %1479 = vpow2.f32 %v581_v58  ;;  %v570_v6 = vsub.f32 %v1827_v41, %v537_v52  ;;  %v563_v12 = vsub.f32 %v1831_v46, %v502_v1 }
 0x19f   :  { %v1470_v13 = vpop.eup %1469  ;;  %1481 = vpow2.f32 %v595_v40 }
 0x1a0   :  { %v597_v2 = vmul.f32 1.442695, %v570_v6  ;;  %v583_v31 = vmul.f32 1.442695, %v563_v12  ;;  %639 = vadd.xlane.f32.xlu0 %v1470_v13 }
 0x1a1   :  { %v507_v39 = vpop.permute.xlu1 %506  ;;  %v542_v3 = vpop.permute.xlu0 %541 }
 0x1a2   :  { %1483 = vpow2.f32 %v597_v2  ;;  %v564_v22 = vsub.f32 %v1843_v57, %v507_v39  ;;  %v571_v28 = vsub.f32 %v1849_v63, %v542_v3 }
 0x1a3   :  { %1485 = vpow2.f32 %v583_v31  ;;  %v1472_v50 = vpop.eup %1471 }
 0x1a4   :  { %v585_v4 = vmul.f32 1.442695, %v564_v22  ;;  %v599_v42 = vmul.f32 1.442695, %v571_v28  ;;  %641 = vadd.xlane.f32.xlu1 %v1472_v50  ;;  %v816_v46 = vpack.c.bf16 %v1472_v50, %v1470_v13  ;;  %v1474_v11 = vpop.eup %1473 }
 0x1a5   :  { %v547_v41 = vpop.permute.xlu1 %546  ;;  %v512_v16 = vpop.permute.xlu0 %511 }
 0x1a6   :  { %1487 = vpow2.f32 %v585_v4  ;;  %v572_v37 = vsub.f32 %v1858_v10, %v547_v41  ;;  %v565_v30 = vsub.f32 %v1860_v14, %v512_v16  ;;  %1424 = vmatprep.mubr.bf16.mxu0 %v816_v46 }
 0x1a7   :  { %v1476_v15 = vpop.eup %1475  ;;  %1489 = vpow2.f32 %v599_v42 }
 0x1a8   :  { %v1478_v51 = vpop.eup %1477  ;;  %v601_v57 = vmul.f32 1.442695, %v572_v37  ;;  %v587_v58 = vmul.f32 1.442695, %v565_v30  ;;  %v820_v63 = vpack.c.bf16 %v1476_v15, %v1474_v11 }
 0x1a9   :  { %643 = vadd.xlane.f32.xlu0 %v1478_v51  ;;  %v517_v40 = vpop.permute.xlu1 %516  ;;  %v552_v52 = vpop.permute.xlu0 %551 }
 0x1aa   :  { %1491 = vpow2.f32 %v601_v57  ;;  %v566_v1 = vsub.f32 %v1882_v17, %v517_v40  ;;  %v573_v6 = vsub.f32 %v1880_v59, %v552_v52  ;;  %1432 = vmatprep.mubr.bf16.mxu1 %v820_v63  ;;  %v447_v57 = vmul.f32 1.442695, %v431_v29 }
 0x1ab   :  { %v1480_v12 = vpop.eup %1479  ;;  %1493 = vpow2.f32 %v587_v58  ;;  %v2303_v58 = vsub.f32 %v1915_v34, %v1933_v44  ;;  %v2305_v40 = vsub.f32 %v1940_v48, %v1959_v35  ;;  %v2307_v29 = vsub.f32 %v1986_v9, %v2005_v18 }
 0x1ac   :  { %v589_v10 = vmul.f32 1.442695, %v566_v1  ;;  %v817_v14 = vpack.c.bf16 %v1480_v12, %v1478_v51  ;;  %v603_v13 = vmul.f32 1.442695, %v573_v6  ;;  %v1482_v31 = vpop.eup %1481  ;;  %v2309_v44 = vsub.f32 %v2032_v54, %v2051_v27 }
 0x1ad   :  { %645 = vadd.xlane.f32.xlu0 %v1480_v12  ;;  %v557_v2 = vpop.permute.xlu1 %556  ;;  %v453_v52 = vmul.f32 1.442695, %v2305_v40  ;;  %v457_v34 = vmul.f32 1.442695, %v2307_v29  ;;  %v2311_v9 = vsub.f32 %v1917_v36, %v1936_v45  ;;  %v2313_v27 = vsub.f32 %v1963_v61, %v1982_v7 }
 0x1ae   :  { %1495 = vpow2.f32 %v589_v10  ;;  %v574_v39 = vsub.f32 %v1886_v19, %v557_v2  ;;  %1425 = vmatmul.mubr.bf16.vlgmr.msra.gmra.mxu0 %v817_v14  ;;  %v461_v48 = vmul.f32 1.442695, %v2309_v44  ;;  %v2314_v36 = vsub.f32 %v1984_v8, %v2002_v56 }
 0x1af   :  { %v1484_v3 = vpop.eup %1483  ;;  %1497 = vpow2.f32 %v603_v13  ;;  %v465_v18 = vmul.f32 1.442695, %v2311_v9  ;;  %v469_v25 = vmul.f32 1.442695, %v2313_v27  ;;  %v2316_v61 = vsub.f32 %v2030_v53, %v2048_v0 }
 0x1b0   :  { %v1486_v22 = vpop.eup %1485  ;;  %v605_v28 = vmul.f32 1.442695, %v574_v39  ;;  %v821_v50 = vpack.c.bf16 %v1484_v3, %v1482_v31  ;;  %v471_v45 = vmul.f32 1.442695, %v2314_v36  ;;  %v2317_v8 = vsub.f32 %v2053_v38, %v2066_v62 }
 0x1b1   :  { %647 = vadd.xlane.f32.xlu1 %v1486_v22  ;;  %v475_v7 = vmul.f32 1.442695, %v2316_v61 }
 0x1b2   :  { %1499 = vpow2.f32 %v605_v28  ;;  %1433 = vmatmul.mubr.bf16.vlgmr.msra.gmra.mxu1 %v821_v50  ;;  %v477_v56 = vmul.f32 1.442695, %v2317_v8  ;;  %v608_v28 = vld [vmem:[#allocation3 + $0x8] sm:$0xff]  ;;  %v619_v8 = vld [vmem:[#allocation3 + $0x60] sm:$0xff] }
 0x1b3   :  { %v1488_v59 = vpop.eup %1487  ;;  %1501 = vpow2.f32 %v447_v57 }
 0x1b4   :  { %649 = vadd.xlane.f32.xlu0 %v1488_v59  ;;  %v818_v17 = vpack.c.bf16 %v1488_v59, %v1486_v22  ;;  %v1490_v4 = vpop.eup %1489 }
 0x1b6   :  { %1428 = vmatprep.mubr.bf16.mxu0 %v818_v17  ;;  %v609_v17 = vld [vmem:[#allocation3 + $0x10] sm:$0xff] }
 0x1b7   :  { %v1492_v42 = vpop.eup %1491 }
 0x1b8   :  { %v1494_v41 = vpop.eup %1493  ;;  %v822_v16 = vpack.c.bf16 %v1492_v42, %v1490_v4 }
 0x1b9   :  { %651 = vadd.xlane.f32.xlu1 %v1494_v41 }
 0x1ba   :  { %1436 = vmatprep.mubr.bf16.mxu1 %v822_v16  ;;  %v610_v16 = vld [vmem:[#allocation3 + $0x18] sm:$0xff] }
 0x1bb   :  { %v1496_v19 = vpop.eup %1495 }
 0x1bc   :  { %653 = vadd.xlane.f32.xlu0 %v1496_v19  ;;  %v819_v46 = vpack.c.bf16 %v1496_v19, %v1494_v41  ;;  %v1498_v37 = vpop.eup %1497 }
 0x1bd   :  { %655 = vadd.xlane.f32.xlu1 %v1474_v11  ;;  %v451_v11 = vmul.f32 1.442695, %v2303_v58 }
 0x1be   :  { %1429 = vmatmul.mubr.bf16.gmra.mxu0 %v819_v46 }
 0x1bf   :  { %v1500_v30 = vpop.eup %1499  ;;  %1503 = vpow2.f32 %v451_v11 }
 0x1c0   :  { %657 = vadd.xlane.f32.xlu0 %v1476_v15  ;;  %v823_v51 = vpack.c.bf16 %v1500_v30, %v1498_v37  ;;  %v2304_v15 = vsub.f32 %v1894_v24, %v1910_v32  ;;  %v2308_v24 = vsub.f32 %v2007_v21, %v2025_v43  ;;  %v1502_v35 = vpop.eup %1501  ;;  %v2312_v21 = vsub.f32 %v1938_v47, %v1956_v55 }
 0x1c1   :  { %659 = vadd.xlane.f32.xlu1 %v1482_v31  ;;  %v2315_v47 = vsub.f32 %v2009_v23, %v2028_v49  ;;  %v607_v31 = vld [vmem:[#allocation3] sm:$0xff] }
 0x1c2   :  { %1437 = vmatmul.mubr.bf16.gmra.mxu1 %v823_v51  ;;  %v449_v63 = vmul.f32 1.442695, %v2304_v15  ;;  %v459_v32 = vmul.f32 1.442695, %v2308_v24  ;;  %v467_v43 = vmul.f32 1.442695, %v2312_v21  ;;  %v623_v39 = vmul.f32 %v1502_v35, %v607_v31 }
 0x1c3   :  { %v473_v55 = vmul.f32 1.442695, %v2315_v47  ;;  %v611_v51 = vld [vmem:[#allocation3 + $0x20] sm:$0xff]  ;;  %v612_v15 = vld [vmem:[#allocation3 + $0x28] sm:$0xff] }
 0x1c4   :  { %661 = vadd.xlane.f32.xlu0 %v1484_v3  ;;  %1505 = vpow2.f32 %v449_v63 }
 0x1c5   :  { %663 = vadd.xlane.f32.xlu1 %v1490_v4  ;;  %1507 = vpow2.f32 %v453_v52 }
 0x1c6   :  { %1509 = vpow2.f32 %v455_v26 }
 0x1c7   :  { %1511 = vpow2.f32 %v457_v34  ;;  %v613_v34 = vld [vmem:[#allocation3 + $0x30] sm:$0xff] }
 0x1c8   :  { %665 = vadd.xlane.f32.xlu0 %v1492_v42  ;;  %1513 = vpow2.f32 %v459_v32 }
 0x1c9   :  { %667 = vadd.xlane.f32.xlu1 %v1498_v37  ;;  %1515 = vpow2.f32 %v461_v48  ;;  %v614_v48 = vld [vmem:[#allocation3 + $0x38] sm:$0xff] }
 0x1ca   :  { %1517 = vpow2.f32 %v463_v5 }
 0x1cb   :  { %1519 = vpow2.f32 %v465_v18 }
 0x1cc   :  { %669 = vadd.xlane.f32.xlu0 %v1500_v30  ;;  %v1504_v1 = vpop.eup %1503  ;;  %1521 = vpow2.f32 %v467_v43  ;;  %v616_v43 = vld [vmem:[#allocation3 + $0x48] sm:$0xff] }
 0x1cd   :  { %1523 = vpow2.f32 %v469_v25  ;;  %v625_v42 = vmul.f32 %v1504_v1, %v609_v17 }
 0x1ce   :  { %1525 = vpow2.f32 %v471_v45 }
 0x1cf   :  { %1527 = vpow2.f32 %v473_v55 }
 0x1d0   :  { %1529 = vpow2.f32 %v475_v7 }
 0x1d1   :  { %v1506_v54 = vpop.eup %1505  ;;  %1531 = vpow2.f32 %v477_v56 }
 0x1d2   :  { %v1508_v33 = vpop.eup %1507  ;;  %v624_v50 = vmul.f32 %v1506_v54, %v608_v28  ;;  %v621_v28 = vld [vmem:[#allocation3 + $0x70] sm:$0xff] }
 0x1d3   :  { %v1510_v6 = vpop.eup %1509  ;;  %v626_v37 = vmul.f32 %v1508_v33, %v610_v16 }
 0x1d4   :  { %v1512_v12 = vpop.eup %1511  ;;  %v627_v11 = vmul.f32 %v1510_v6, %v611_v51 }
 0x1d5   :  { %v2134_v10 = vpop.eup %1513  ;;  %v628_v52 = vmul.f32 %v1512_v12, %v612_v15 }
 0x1d6   :  { %v2139_v14 = vpop.eup %1515  ;;  %v629_v44 = vmul.f32 %v2134_v10, %v613_v34 }
 0x1d7   :  { %v2143_v23 = vpop.eup %1517  ;;  %v630_v9 = vmul.f32 %v2139_v14, %v614_v48 }
 0x1d8   :  { %v2145_v49 = vpop.eup %1519 }
 0x1d9   :  { %v2149_v53 = vpop.eup %1521 }
 0x1da   :  { %722 = vperm.xlu1 %1460, %v1502_v35   ;;  %v2151_v0 = vpop.eup %1523 }
 0x1db   :  { %v2155_v38 = vpop.eup %1525 }
 0x1dc   :  { %v2157_v62 = vpop.eup %1527 }
 0x1dd   :  { %v2161_v13 = vpop.eup %1529 }
 0x1de   :  { %732 = vperm.xlu1 %1460, %v1504_v1   ;;  %v2163_v2 = vpop.eup %1531  ;;  %v631_v1 = vmul.f32 %v2143_v23, %v615_v60 }
 0x1e2   :  { %737 = vperm.xlu1 %1460, %v1508_v33   ;;  %727 = vperm.xlu0 %1459, %v1506_v54   ;;  %v617_v33 = vld [vmem:[#allocation3 + $0x50] sm:$0xff] }
 0x1e3   :  { %v633_v47 = vmul.f32 %v2149_v53, %v617_v33 }
 0x1e6   :  { %747 = vperm.xlu1 %1460, %v1512_v12   ;;  %742 = vperm.xlu0 %1459, %v1510_v6   ;;  %v632_v6 = vmul.f32 %v2145_v49, %v616_v43  ;;  %v618_v12 = vld [vmem:[#allocation3 + $0x58] sm:$0xff] }
 0x1ea   :  { %757 = vperm.xlu1 %1460, %v2139_v14   ;;  %752 = vperm.xlu0 %1459, %v2134_v10   ;;  %v634_v14 = vmul.f32 %v2151_v0, %v618_v12 }
 0x1ee   :  { %767 = vperm.xlu1 %1460, %v2145_v49   ;;  %762 = vperm.xlu0 %1459, %v2143_v23   ;;  %v635_v49 = vmul.f32 %v2155_v38, %v619_v8 }
 0x1f2   :  { %777 = vperm.xlu1 %1460, %v2151_v0   ;;  %772 = vperm.xlu0 %1459, %v2149_v53  }
 0x1f6   :  { %787 = vperm.xlu1 %1460, %v2157_v62   ;;  %782 = vperm.xlu0 %1459, %v2155_v38   ;;  %v637_v38 = vmul.f32 %v2161_v13, %v621_v28 }
 0x1fa   :  { %797 = vperm.xlu1 %1460, %v2163_v2   ;;  %792 = vperm.xlu0 %1459, %v2161_v13  }
 0x229   :  { %v640_v3 = vpop.xlane.xlu0 %639 }
 0x22a   :  { %v671_v22 = vadd.f32 %v640_v3, %v623_v39  ;;  %v620_v39 = vld [vmem:[#allocation3 + $0x68] sm:$0xff] }
 0x22b   :  { %v636_v17 = vmul.f32 %v2157_v62, %v620_v39 }
 0x22c   :  { %688 = vst.msk [vmem:[#allocation3] sm:$0xff] %vm27_vm0, %v671_v22 }
 0x22d   :  { %v642_v59 = vpop.xlane.xlu1 %641 }
 0x22e   :  { %v672_v4 = vadd.f32 %v642_v59, %v624_v50 }
 0x230   :  { %689 = vst.msk [vmem:[#allocation3 + $0x8] sm:$0xff] %vm27_vm0, %v672_v4 }
 0x232   :  { %v644_v41 = vpop.xlane.xlu0 %643 }
 0x233   :  { %v673_v19 = vadd.f32 %v644_v41, %v625_v42  ;;  %v1052_v46 = vld [vmem:[#allocation3] sm:$0xff]  ;;  %v622_v42 = vld [vmem:[#allocation3 + $0x78] sm:$0xff] }
 0x234   :  { %1533 = vrcp.f32 %v1052_v46 }
 0x235   :  { %690 = vst.msk [vmem:[#allocation3 + $0x10] sm:$0xff] %vm27_vm0, %v673_v19 }
 0x236   :  { %v646_v30 = vpop.xlane.xlu0 %645 }
 0x237   :  { %v674_v57 = vadd.f32 %v646_v30, %v626_v37  ;;  %v1053_v58 = vld [vmem:[#allocation3 + $0x8] sm:$0xff]  ;;  %v638_v30 = vmul.f32 %v2163_v2, %v622_v42 }
 0x238   :  { %1535 = vrcp.f32 %v1053_v58 }
 0x239   :  { %691 = vst.msk [vmem:[#allocation3 + $0x18] sm:$0xff] %vm27_vm0, %v674_v57 }
 0x23a   :  { %v648_v63 = vpop.xlane.xlu1 %647 }
 0x23b   :  { %v675_v40 = vadd.f32 %v648_v63, %v627_v11 }
 0x23c   :  { %v1054_v20 = vld [vmem:[#allocation3 + $0x10] sm:$0xff] }
 0x23d   :  { %692 = vst.msk [vmem:[#allocation3 + $0x20] sm:$0xff] %vm27_vm0, %v675_v40  ;;  %v650_v26 = vpop.xlane.xlu0 %649  ;;  %1537 = vrcp.f32 %v1054_v20 }
 0x23e   :  { %v676_v29 = vadd.f32 %v650_v26, %v628_v52 }
 0x240   :  { %693 = vst.msk [vmem:[#allocation3 + $0x28] sm:$0xff] %vm27_vm0, %v676_v29  ;;  %v1055_v24 = vld [vmem:[#allocation3 + $0x18] sm:$0xff] }
 0x241   :  { %v1534_v32 = vpop.eup %1533  ;;  %1539 = vrcp.f32 %v1055_v24 }
 0x242   :  { %v652_v35 = vpop.xlane.xlu1 %651  ;;  %1086 = vperm.xlu0 %1459, %v1534_v32  }
 0x243   :  { %v677_v5 = vadd.f32 %v652_v35, %v629_v44 }
 0x244   :  { %v1056_v18 = vld [vmem:[#allocation3 + $0x20] sm:$0xff] }
 0x245   :  { %694 = vst.msk [vmem:[#allocation3 + $0x30] sm:$0xff] %vm27_vm0, %v677_v5  ;;  %v654_v21 = vpop.xlane.xlu0 %653  ;;  %1541 = vrcp.f32 %v1056_v18  ;;  %v1536_v54 = vpop.eup %1535 }
 0x246   :  { %v656_v27 = vpop.xlane.xlu1 %655  ;;  %v678_v25 = vadd.f32 %v654_v21, %v630_v9  ;;  %1091 = vperm.xlu1 %1460, %v1536_v54  }
 0x247   :  { %v679_v36 = vadd.f32 %v656_v27, %v631_v1  ;;  %v1057_v45 = vld [vmem:[#allocation3 + $0x28] sm:$0xff] }
 0x248   :  { %695 = vst.msk [vmem:[#allocation3 + $0x38] sm:$0xff] %vm27_vm0, %v678_v25  ;;  %1543 = vrcp.f32 %v1057_v45 }
 0x249   :  { %696 = vst.msk [vmem:[#allocation3 + $0x40] sm:$0xff] %vm27_vm0, %v679_v36  ;;  %v658_v55 = vpop.xlane.xlu0 %657 }
 0x24a   :  { %v1538_v61 = vpop.eup %1537  ;;  %v660_v7 = vpop.xlane.xlu1 %659  ;;  %v680_v10 = vadd.f32 %v658_v55, %v632_v6 }
 0x24b   :  { %v681_v56 = vadd.f32 %v660_v7, %v633_v47  ;;  %1096 = vperm.xlu0 %1459, %v1538_v61  }
 0x24c   :  { %697 = vst.msk [vmem:[#allocation3 + $0x48] sm:$0xff] %vm27_vm0, %v680_v10  ;;  %v1058_v23 = vld [vmem:[#allocation3 + $0x30] sm:$0xff] }
 0x24d   :  { %698 = vst.msk [vmem:[#allocation3 + $0x50] sm:$0xff] %vm27_vm0, %v681_v56  ;;  %v662_v31 = vpop.xlane.xlu0 %661  ;;  %1545 = vrcp.f32 %v1058_v23 }
 0x24e   :  { %v1540_v53 = vpop.eup %1539  ;;  %v664_v3 = vpop.xlane.xlu1 %663  ;;  %v682_v22 = vadd.f32 %v662_v31, %v634_v14 }
 0x24f   :  { %v683_v50 = vadd.f32 %v664_v3, %v635_v49  ;;  %1101 = vperm.xlu1 %1460, %v1540_v53   ;;  %v1059_v59 = vld [vmem:[#allocation3 + $0x38] sm:$0xff]  ;;  %v2214_v49 = vld [vmem:[%s2269_s4] ss:$0 sm:$0xff] }
 0x250   :  { %699 = vst.msk [vmem:[#allocation3 + $0x58] sm:$0xff] %vm27_vm0, %v682_v22  ;;  %v1060_v0 = vld [vmem:[#allocation3 + $0x40] sm:$0xff]  ;;  %1547 = vrcp.f32 %v1059_v59 }
 0x251   :  { %700 = vst.msk [vmem:[#allocation3 + $0x60] sm:$0xff] %vm27_vm0, %v683_v50  ;;  %v666_v4 = vpop.xlane.xlu0 %665  ;;  %1549 = vrcp.f32 %v1060_v0 }
 0x252   :  { %v1542_v41 = vpop.eup %1541  ;;  %v668_v16 = vpop.xlane.xlu1 %667  ;;  %v684_v19 = vadd.f32 %v666_v4, %v636_v17 }
 0x253   :  { %v685_v46 = vadd.f32 %v668_v16, %v637_v38  ;;  %1106 = vperm.xlu0 %1459, %v1542_v41   ;;  %v1061_v37 = vld [vmem:[#allocation3 + $0x48] sm:$0xff] }
 0x254   :  { %701 = vst.msk [vmem:[#allocation3 + $0x68] sm:$0xff] %vm27_vm0, %v684_v19  ;;  %v1062_v62 = vld [vmem:[#allocation3 + $0x50] sm:$0xff]  ;;  %1551 = vrcp.f32 %v1061_v37 }
 0x255   :  { %v1544_v51 = vpop.eup %1543  ;;  %702 = vst.msk [vmem:[#allocation3 + $0x70] sm:$0xff] %vm27_vm0, %v685_v46  ;;  %v670_v57 = vpop.xlane.xlu0 %669  ;;  %1553 = vrcp.f32 %v1062_v62 }
 0x256   :  { %v686_v13 = vadd.f32 %v670_v57, %v638_v30  ;;  %1111 = vperm.xlu1 %1460, %v1544_v51   ;;  %v723_v35 = vpop.permute.xlu1 %722 }
 0x257   :  { %v1063_v58 = vld [vmem:[#allocation3 + $0x58] sm:$0xff]  ;;  %v800_v61 = vmul.f32 0.0, %v723_v35 }
 0x258   :  { %703 = vst.msk [vmem:[#allocation3 + $0x78] sm:$0xff] %vm27_vm0, %v686_v13  ;;  %v1064_v11 = vld [vmem:[#allocation3 + $0x60] sm:$0xff]  ;;  %1555 = vrcp.f32 %v1063_v58 }
 0x259   :  { %1557 = vrcp.f32 %v1064_v11 }
 0x25a   :  { %v1546_v15 = vpop.eup %1545  ;;  %v733_v60 = vpop.permute.xlu1 %732 }
 0x25b   :  { %1116 = vperm.xlu0 %1459, %v1546_v15   ;;  %v1065_v63 = vld [vmem:[#allocation3 + $0x68] sm:$0xff]  ;;  %v802_v3 = vmul.f32 0.0, %v733_v60 }
 0x25c   :  { %v1066_v40 = vld [vmem:[#allocation3 + $0x70] sm:$0xff]  ;;  %1559 = vrcp.f32 %v1065_v63 }
 0x25d   :  { %v1548_v2 = vpop.eup %1547  ;;  %1561 = vrcp.f32 %v1066_v40  ;;  %v728_v5 = vpop.permute.xlu0 %727 }
 0x25e   :  { %v1550_v52 = vpop.eup %1549  ;;  %1121 = vperm.xlu1 %1460, %v1548_v2   ;;  %v738_v9 = vpop.permute.xlu1 %737  ;;  %v801_v14 = vmul.f32 0.0, %v728_v5 }
 0x25f   :  { %1126 = vperm.xlu0 %1459, %v1550_v52   ;;  %v1067_v20 = vld [vmem:[#allocation3 + $0x78] sm:$0xff]  ;;  %v803_v38 = vmul.f32 0.0, %v738_v9 }
 0x260   :  { %1563 = vrcp.f32 %v1067_v20 }
 0x261   :  { %v1552_v26 = vpop.eup %1551  ;;  %v743_v18 = vpop.permute.xlu0 %742 }
 0x262   :  { %v1554_v29 = vpop.eup %1553  ;;  %1131 = vperm.xlu1 %1460, %v1552_v26   ;;  %v748_v1 = vpop.permute.xlu1 %747  ;;  %v804_v62 = vmul.f32 0.0, %v743_v18 }
 0x263   :  { %1136 = vperm.xlu0 %1459, %v1554_v29   ;;  %v805_v63 = vmul.f32 0.0, %v748_v1 }
 0x265   :  { %v1556_v34 = vpop.eup %1555  ;;  %v753_v21 = vpop.permute.xlu0 %752 }
 0x266   :  { %v1558_v24 = vpop.eup %1557  ;;  %1141 = vperm.xlu1 %1460, %v1556_v34   ;;  %v2193_v43 = vpop.permute.xlu1 %757 }
 0x267   :  { %1146 = vperm.xlu0 %1459, %v1558_v24   ;;  %v807_v18 = vmul.f32 0.0, %v2193_v43 }
 0x269   :  { %v1560_v32 = vpop.eup %1559  ;;  %v2195_v54 = vpop.permute.xlu0 %762 }
 0x26a   :  { %v1562_v44 = vpop.eup %1561  ;;  %1151 = vperm.xlu1 %1460, %v1560_v32   ;;  %v2197_v27 = vpop.permute.xlu1 %767 }
 0x26b   :  { %1156 = vperm.xlu0 %1459, %v1562_v44  }
 0x26d   :  { %v1564_v48 = vpop.eup %1563  ;;  %v2199_v25 = vpop.permute.xlu0 %772 }
 0x26e   :  { %1161 = vperm.xlu1 %1460, %v1564_v48   ;;  %v2201_v33 = vpop.permute.xlu1 %777  ;;  %v1426_v36 = vpop.f32.mrf.mxu0  ;;  %v806_v48 = vmul.f32 0.0, %v753_v21 }
 0x26f   :  { %v987_v50 = vadd.f32 %v1426_v36, %v802_v3 }
 0x270   :  { %v922_v6 = vpop.f32.mrf.mxu0 }
 0x271   :  { %v2203_v45 = vpop.permute.xlu0 %782  ;;  %v985_v7 = vadd.f32 %v922_v6, %v800_v61 }
 0x272   :  { %v2205_v47 = vpop.permute.xlu1 %787  ;;  %v1427_v12 = vpop.f32.mrf.mxu0 }
 0x273   :  { %v1434_v4 = vpop.f32.mrf.mxu1  ;;  %v988_v19 = vadd.f32 %v1427_v12, %v803_v38  ;;  %v808_v12 = vmul.f32 0.0, %v2195_v54 }
 0x274   :  { %v925_v8 = vpop.f32.mrf.mxu0 }
 0x275   :  { %v2207_v55 = vpop.permute.xlu0 %792  ;;  %v986_v31 = vadd.f32 %v925_v8, %v801_v14  ;;  %v954_v51 = vpop.f32.mrf.mxu1 }
 0x276   :  { %v2209_v56 = vpop.permute.xlu1 %797  ;;  %v993_v21 = vadd.f32 %v954_v51, %v808_v12 }
 0x277   :  { %v1435_v2 = vpop.f32.mrf.mxu1 }
 0x279   :  { %v957_v35 = vpop.f32.mrf.mxu1 }
 0x27e   :  { %v1430_v39 = vpop.f32.mrf.mxu0 }
 0x27f   :  { %v991_v5 = vadd.f32 %v1430_v39, %v806_v48 }
 0x280   :  { %v938_v59 = vpop.f32.mrf.mxu0 }
 0x281   :  { %v989_v58 = vadd.f32 %v938_v59, %v804_v62 }
 0x282   :  { %v1431_v46 = vpop.f32.mrf.mxu0  ;;  %v1438_v9 = vpop.f32.mrf.mxu1 }
 0x284   :  { %v941_v11 = vpop.f32.mrf.mxu0  ;;  %v970_v8 = vpop.f32.mrf.mxu1 }
 0x285   :  { %v990_v29 = vadd.f32 %v941_v11, %v805_v63  ;;  %v814_v11 = vmul.f32 0.0, %v2207_v55 }
 0x286   :  { %v1439_v59 = vpop.f32.mrf.mxu1 }
 0x2bd   :  { %v1087_v10 = vpop.permute.xlu0 %1086 }
 0x2be   :  { %v1164_v23 = vmul.f32 %v1087_v10, %v985_v7  ;;  %v992_v7 = vadd.f32 %v1431_v46, %v807_v18 }
 0x2c0   :  { %v1187_v22 = vadd.f32 %v2214_v49, %v1164_v23  ;;  %v809_v23 = vmul.f32 0.0, %v2197_v27 }
 0x2c1   :  { %v1092_v53 = vpop.permute.xlu1 %1091 }
 0x2c2   :  { %v1165_v28 = vmul.f32 %v1092_v53, %v986_v31  ;;  %v1203_v42 = vmax.f32 %v1187_v22, 0.0  ;;  %v810_v53 = vmul.f32 0.0, %v2199_v25  ;;  %v994_v54 = vadd.f32 %v957_v35, %v809_v23 }
 0x2c4   :  { %v1188_v17 = vadd.f32 %v2214_v49, %v1165_v28  ;;  %v811_v28 = vmul.f32 0.0, %v2201_v33  ;;  %v973_v33 = vpop.f32.mrf.mxu1 }
 0x2c6   :  { %v1097_v0 = vpop.permute.xlu0 %1096  ;;  %v1204_v41 = vmax.f32 %v1188_v17, 0.0  ;;  %v996_v46 = vadd.f32 %v1435_v2, %v811_v28  ;;  %v815_v2 = vmul.f32 0.0, %v2209_v56 }
 0x2c7   :  { %v1166_v16 = vmul.f32 %v1097_v0, %v987_v50  ;;  %v995_v50 = vadd.f32 %v1434_v4, %v810_v53 }
 0x2c8   :  { %v1348_v37 = vpack.c.bf16 %v1204_v41, %v1203_v42 }
 0x2c9   :  { %v1189_v57 = vadd.f32 %v2214_v49, %v1166_v16  ;;  %v812_v16 = vmul.f32 0.0, %v2203_v45 }
 0x2ca   :  { %v1102_v30 = vpop.permute.xlu1 %1101  ;;  %1349 = vst [vmem:[%s2270_s5] sm:$0xff] %v1348_v37  }
 0x2cb   :  { %v1167_v13 = vmul.f32 %v1102_v30, %v988_v19  ;;  %v1205_v52 = vmax.f32 %v1189_v57, 0.0  ;;  %v813_v30 = vmul.f32 0.0, %v2205_v47  ;;  %v997_v62 = vadd.f32 %v970_v8, %v812_v16 }
 0x2cd   :  { %v1190_v15 = vadd.f32 %v2214_v49, %v1167_v13  ;;  %v998_v63 = vadd.f32 %v973_v33, %v813_v30 }
 0x2ce   :  { %v1107_v40 = vpop.permute.xlu0 %1106 }
 0x2cf   :  { %v1206_v20 = vmax.f32 %v1190_v15, 0.0  ;;  %v1168_v26 = vmul.f32 %v1107_v40, %v989_v58 }
 0x2d1   :  { %v1353_v34 = vpack.c.bf16 %v1206_v20, %v1205_v52  ;;  %v1112_v24 = vpop.permute.xlu1 %1111  ;;  %v1191_v32 = vadd.f32 %v2214_v49, %v1168_v26  ;;  %v999_v52 = vadd.f32 %v1438_v9, %v814_v11 }
 0x2d2   :  { %v1169_v44 = vmul.f32 %v1112_v24, %v990_v29 }
 0x2d3   :  { %1385 = vst [vmem:[%s2270_s5 + $0x8] sm:$0xff] %v1353_v34   ;;  %v1207_v1 = vmax.f32 %v1191_v32, 0.0 }
 0x2d4   :  { %v1192_v60 = vadd.f32 %v2214_v49, %v1169_v44  ;;  %v1000_v44 = vadd.f32 %v1439_v59, %v815_v2 }
 0x2d6   :  { %v1208_v36 = vmax.f32 %v1192_v60, 0.0  ;;  %v1117_v6 = vpop.permute.xlu0 %1116 }
 0x2d7   :  { %v1170_v61 = vmul.f32 %v1117_v6, %v991_v5 }
 0x2d8   :  { %v1358_v10 = vpack.c.bf16 %v1208_v36, %v1207_v1 }
 0x2d9   :  { %v1122_v14 = vpop.permute.xlu1 %1121  ;;  %v1193_v31 = vadd.f32 %v2214_v49, %v1170_v61 }
 0x2da   :  { %1386 = vst [vmem:[%s2270_s5 + $0x10] sm:$0xff] %v1358_v10   ;;  %v1171_v43 = vmul.f32 %v1122_v14, %v992_v7  ;;  %v1127_v39 = vpop.permute.xlu0 %1126 }
 0x2db   :  { %v1172_v3 = vmul.f32 %v1127_v39, %v993_v21  ;;  %v1209_v27 = vmax.f32 %v1193_v31, 0.0 }
 0x2dc   :  { %v1194_v22 = vadd.f32 %v2214_v49, %v1171_v43 }
 0x2dd   :  { %v1132_v17 = vpop.permute.xlu1 %1131  ;;  %v1195_v38 = vadd.f32 %v2214_v49, %v1172_v3 }
 0x2de   :  { %v1210_v0 = vmax.f32 %v1194_v22, 0.0  ;;  %v1173_v42 = vmul.f32 %v1132_v17, %v994_v54  ;;  %v1137_v41 = vpop.permute.xlu0 %1136 }
 0x2df   :  { %v1174_v19 = vmul.f32 %v1137_v41, %v995_v50  ;;  %v1211_v51 = vmax.f32 %v1195_v38, 0.0 }
 0x2e0   :  { %v1363_v25 = vpack.c.bf16 %v1210_v0, %v1209_v27  ;;  %v1196_v37 = vadd.f32 %v2214_v49, %v1173_v42 }
 0x2e1   :  { %v1142_v4 = vpop.permute.xlu1 %1141  ;;  %v1197_v13 = vadd.f32 %v2214_v49, %v1174_v19 }
 0x2e2   :  { %1387 = vst [vmem:[%s2270_s5 + $0x18] sm:$0xff] %v1363_v25   ;;  %v1212_v57 = vmax.f32 %v1196_v37, 0.0  ;;  %v1175_v58 = vmul.f32 %v1142_v4, %v996_v46  ;;  %v1147_v45 = vpop.permute.xlu0 %1146 }
 0x2e3   :  { %v1176_v15 = vmul.f32 %v1147_v45, %v997_v62  ;;  %v1213_v26 = vmax.f32 %v1197_v13, 0.0 }
 0x2e4   :  { %v1368_v40 = vpack.c.bf16 %v1212_v57, %v1211_v51  ;;  %v1198_v47 = vadd.f32 %v2214_v49, %v1175_v58 }
 0x2e5   :  { %v1152_v20 = vpop.permute.xlu1 %1151  ;;  %v1199_v34 = vadd.f32 %v2214_v49, %v1176_v15 }
 0x2e6   :  { %1388 = vst [vmem:[%s2270_s5 + $0x20] sm:$0xff] %v1368_v40   ;;  %v1214_v29 = vmax.f32 %v1198_v47, 0.0  ;;  %v1177_v24 = vmul.f32 %v1152_v20, %v998_v63  ;;  %v1157_v32 = vpop.permute.xlu0 %1156 }
 0x2e7   :  { %v1178_v55 = vmul.f32 %v1157_v32, %v999_v52  ;;  %v1215_v56 = vmax.f32 %v1199_v34, 0.0 }
 0x2e8   :  { %v1373_v48 = vpack.c.bf16 %v1214_v29, %v1213_v26  ;;  %v1200_v35 = vadd.f32 %v2214_v49, %v1177_v24 }
 0x2e9   :  { %v1162_v60 = vpop.permute.xlu1 %1161  ;;  %v1201_v9 = vadd.f32 %v2214_v49, %v1178_v55 }
 0x2ea   :  { %1389 = vst [vmem:[%s2270_s5 + $0x28] sm:$0xff] %v1373_v48   ;;  %v1216_v5 = vmax.f32 %v1200_v35, 0.0  ;;  %v1179_v18 = vmul.f32 %v1162_v60, %v1000_v44 }
 0x2eb   :  { %v1217_v6 = vmax.f32 %v1201_v9, 0.0 }
 0x2ec   :  { %v1378_v1 = vpack.c.bf16 %v1216_v5, %v1215_v56  ;;  %v1202_v36 = vadd.f32 %v2214_v49, %v1179_v18 }
 0x2ee   :  { %1390 = vst [vmem:[%s2270_s5 + $0x30] sm:$0xff] %v1378_v1   ;;  %v1218_v12 = vmax.f32 %v1202_v36, 0.0 }
 0x2f0   :  { %v1383_v61 = vpack.c.bf16 %v1218_v12, %v1217_v6 }
 0x2f2   :  { %1391 = vst [vmem:[%s2270_s5 + $0x38] sm:$0xff] %v1383_v61  }

// kernel: configurable_gnn_forward.19
= control target key start
LH: loop header
LB: loop body
LE: loop exit
PB: predicated region body
PF: predicated region fallthrough
CT: control target
= control target key end

     0   :  { %vm28_vm0 = vcmask 7168   ;;  %v1661_v16 = vmov -1e+30   ;;  %v1662_v41 = vmov 0   ;;  %v1663_v59 = vmov 0.0   ;;  %s2241_s1 = inlined_call_operand.vmem [shape: bf16[128,128], index: 1, kind: input, shape index: {}]   ;;  %s2242_s0 = inlined_call_operand.vmem [shape: bf16[128,128], index: 0, kind: input, shape index: {}]   ;;  %s2243_s3 = inlined_call_operand.vmem [shape: f32[1,128], index: 3, kind: input, shape index: {}]   ;;  %s2244_s2 = inlined_call_operand.vmem [shape: bf16[128,128], index: 2, kind: input, shape index: {}]   ;;  %s2245_s4 = inlined_call_operand.vmem [shape: bf16[128,128], index: 4, kind: input, shape index: {}]   ;;  %s2246_s5 = inlined_call_operand.vmem [shape: f32[1,128], index: 5, kind: input, shape index: {}]   ;;  %s2247_s6 = inlined_call_operand.vmem [shape: f32[128,128], index: 6, kind: output, shape index: {}]  }
   0x1   :  { %v1533_v0 = vld [vmem:[%s2241_s1 + $0x38] sm:$0xff]   ;;  %v1534_v1 = vld [vmem:[%s2241_s1 + $0x30] sm:$0xff]   ;;  %v1535_v2 = vld [vmem:[%s2241_s1 + $0x28] sm:$0xff]   ;;  %31 = vst.msk [vmem:[#allocation2 + $0x10] sm:$0xff] %vm28_vm0, %v1661_v16  ;;  %1532 = vset.pattern.permute.xlu1 %v1662_v41  ;;  %1531 = vset.pattern.permute.xlu0 %v1662_v41 }
   0x2   :  { %1432 = vmatprep.subr.bf16.mxu0 %v1533_v0  ;;  %v1541_v3 = vld [vmem:[%s2242_s0] sm:$0xff]   ;;  %v1537_v5 = vld [vmem:[%s2241_s1 + $0x18] sm:$0xff]   ;;  %v1538_v6 = vld [vmem:[%s2241_s1 + $0x10] sm:$0xff]   ;;  %29 = vst.msk [vmem:[#allocation2] sm:$0xff] %vm28_vm0, %v1661_v16 }
   0x3   :  { %1433 = vmatpush3.bf16.xpose.msra.mxu0 %v1533_v0  ;;  %1448 = vmatprep.mubr.bf16.mxu0 %v1541_v3  ;;  %v1536_v4 = vld [vmem:[%s2241_s1 + $0x20] sm:$0xff]   ;;  %v1539_v7 = vld [vmem:[%s2241_s1 + $0x8] sm:$0xff]   ;;  %v1543_v10 = vld [vmem:[%s2242_s0 + $0x10] sm:$0xff]   ;;  %30 = vst.msk [vmem:[#allocation2 + $0x8] sm:$0xff] %vm28_vm0, %v1661_v16 }
   0x4   :  { %1434 = vmatprep.subr.bf16.mxu0 %v1534_v1  ;;  %v1540_v8 = vld [vmem:[%s2241_s1] sm:$0xff]   ;;  %v1542_v9 = vld [vmem:[%s2242_s0 + $0x8] sm:$0xff]   ;;  %v1544_v11 = vld [vmem:[%s2242_s0 + $0x18] sm:$0xff]   ;;  %32 = vst.msk [vmem:[#allocation2 + $0x18] sm:$0xff] %vm28_vm0, %v1661_v16 }
   0x5   :  { %v1545_v12 = vld [vmem:[%s2242_s0 + $0x20] sm:$0xff]   ;;  %v1546_v13 = vld [vmem:[%s2242_s0 + $0x28] sm:$0xff]   ;;  %v1547_v14 = vld [vmem:[%s2242_s0 + $0x30] sm:$0xff]   ;;  %33 = vst.msk [vmem:[#allocation2 + $0x20] sm:$0xff] %vm28_vm0, %v1661_v16 }
   0x6   :  { %v1548_v15 = vld [vmem:[%s2242_s0 + $0x38] sm:$0xff]   ;;  %34 = vst.msk [vmem:[#allocation2 + $0x28] sm:$0xff] %vm28_vm0, %v1661_v16  ;;  %35 = vst.msk [vmem:[#allocation2 + $0x30] sm:$0xff] %vm28_vm0, %v1661_v16  ;;  %v1766_v18 = vld [vmem:[%s2243_s3] ss:$0 sm:$0xff] }
   0x7   :  { %36 = vst.msk [vmem:[#allocation2 + $0x38] sm:$0xff] %vm28_vm0, %v1661_v16  ;;  %37 = vst.msk [vmem:[#allocation2 + $0x40] sm:$0xff] %vm28_vm0, %v1661_v16  ;;  %v1554_v41 = vld [vmem:[%s2244_s2 + $0x10] sm:$0xff]  }
   0x8   :  { %38 = vst.msk [vmem:[#allocation2 + $0x48] sm:$0xff] %vm28_vm0, %v1661_v16  ;;  %39 = vst.msk [vmem:[#allocation2 + $0x50] sm:$0xff] %vm28_vm0, %v1661_v16 }
   0x9   :  { %40 = vst.msk [vmem:[#allocation2 + $0x58] sm:$0xff] %vm28_vm0, %v1661_v16  ;;  %41 = vst.msk [vmem:[#allocation2 + $0x60] sm:$0xff] %vm28_vm0, %v1661_v16 }
   0xa   :  { %42 = vst.msk [vmem:[#allocation2 + $0x68] sm:$0xff] %vm28_vm0, %v1661_v16  ;;  %43 = vst.msk [vmem:[#allocation2 + $0x70] sm:$0xff] %vm28_vm0, %v1661_v16 }
   0xb   :  { %1435 = vmatpush3.bf16.xpose.msra.mxu0 %v1534_v1  ;;  %44 = vst.msk [vmem:[#allocation2 + $0x78] sm:$0xff] %vm28_vm0, %v1661_v16  ;;  %45 = vst.msk [vmem:[#allocation3] sm:$0xff] %vm28_vm0, %v1663_v59  ;;  %v1874_v16 = vld [vmem:[#allocation2 + $0x8] sm:$0xff] }
   0xc   :  { %1436 = vmatprep.subr.bf16.mxu0 %v1535_v2  ;;  %46 = vst.msk [vmem:[#allocation3 + $0x8] sm:$0xff] %vm28_vm0, %v1663_v59  ;;  %47 = vst.msk [vmem:[#allocation3 + $0x10] sm:$0xff] %vm28_vm0, %v1663_v59 }
   0xd   :  { %48 = vst.msk [vmem:[#allocation3 + $0x18] sm:$0xff] %vm28_vm0, %v1663_v59  ;;  %49 = vst.msk [vmem:[#allocation3 + $0x20] sm:$0xff] %vm28_vm0, %v1663_v59 }
   0xe   :  { %50 = vst.msk [vmem:[#allocation3 + $0x28] sm:$0xff] %vm28_vm0, %v1663_v59  ;;  %51 = vst.msk [vmem:[#allocation3 + $0x30] sm:$0xff] %vm28_vm0, %v1663_v59 }
   0xf   :  { %52 = vst.msk [vmem:[#allocation3 + $0x38] sm:$0xff] %vm28_vm0, %v1663_v59  ;;  %53 = vst.msk [vmem:[#allocation3 + $0x40] sm:$0xff] %vm28_vm0, %v1663_v59 }
  0x10   :  { %54 = vst.msk [vmem:[#allocation3 + $0x48] sm:$0xff] %vm28_vm0, %v1663_v59  ;;  %55 = vst.msk [vmem:[#allocation3 + $0x50] sm:$0xff] %vm28_vm0, %v1663_v59 }
  0x11   :  { %56 = vst.msk [vmem:[#allocation3 + $0x58] sm:$0xff] %vm28_vm0, %v1663_v59  ;;  %57 = vst.msk [vmem:[#allocation3 + $0x60] sm:$0xff] %vm28_vm0, %v1663_v59 }
  0x12   :  { %58 = vst.msk [vmem:[#allocation3 + $0x68] sm:$0xff] %vm28_vm0, %v1663_v59  ;;  %59 = vst.msk [vmem:[#allocation3 + $0x70] sm:$0xff] %vm28_vm0, %v1663_v59 }
  0x13   :  { %1437 = vmatpush3.bf16.xpose.msra.mxu0 %v1535_v2  ;;  %60 = vst.msk [vmem:[#allocation3 + $0x78] sm:$0xff] %vm28_vm0, %v1663_v59 }
  0x14   :  { %1438 = vmatprep.subr.bf16.mxu0 %v1536_v4 }
  0x1b   :  { %1439 = vmatpush3.bf16.xpose.msra.mxu0 %v1536_v4  ;;  %v1549_v4 = vld [vmem:[%s2244_s2 + $0x38] sm:$0xff]  }
  0x1c   :  { %1440 = vmatprep.subr.bf16.mxu0 %v1537_v5  ;;  %1464 = vmatprep.subr.bf16.mxu1 %v1549_v4 }
  0x1d   :  { %1465 = vmatpush3.bf16.msra.mxu1 %v1549_v4  ;;  %v1963_v4 = vld [vmem:[#allocation2 + $0x48] sm:$0xff] }
  0x23   :  { %1441 = vmatpush3.bf16.xpose.msra.mxu0 %v1537_v5  ;;  %v1851_v5 = vld [vmem:[#allocation2 + $0x10] sm:$0xff] }
  0x24   :  { %1442 = vmatprep.subr.bf16.mxu0 %v1538_v6 }
  0x2b   :  { %1443 = vmatpush3.bf16.xpose.msra.mxu0 %v1538_v6  ;;  %v1550_v6 = vld [vmem:[%s2244_s2 + $0x30] sm:$0xff]  }
  0x2c   :  { %1444 = vmatprep.subr.bf16.mxu0 %v1539_v7  ;;  %1466 = vmatprep.subr.bf16.mxu1 %v1550_v6 }
  0x2d   :  { %1467 = vmatpush3.bf16.msra.mxu1 %v1550_v6  ;;  %v1556_v6 = vld [vmem:[%s2244_s2] sm:$0xff]  }
  0x33   :  { %1445 = vmatpush3.bf16.xpose.msra.mxu0 %v1539_v7 }
  0x34   :  { %1446 = vmatprep.subr.bf16.mxu0 %v1540_v8 }
  0x3b   :  { %1447 = vmatpush3.bf16.xpose.msra.mxu0 %v1540_v8  ;;  %v1856_v8 = vld [vmem:[#allocation2] sm:$0xff] }
  0x42   :  { %1449 = vmatmul.mubr.bf16.vlgmr.msra.gmra.mxu0 %v1542_v9 }
  0x43   :  { %1452 = vmatprep.mubr.bf16.mxu0 %v1543_v10 }
  0x4a   :  { %1453 = vmatmul.mubr.bf16.gmra.mxu0 %v1544_v11  ;;  %v1861_v11 = vld [vmem:[#allocation2 + $0x18] sm:$0xff] }
  0x4b   :  { %1456 = vmatprep.mubr.bf16.mxu0 %v1545_v12  ;;  %v1551_v12 = vld [vmem:[%s2244_s2 + $0x28] sm:$0xff]  }
  0x4c   :  { %1468 = vmatprep.subr.bf16.mxu1 %v1551_v12 }
  0x4d   :  { %1469 = vmatpush3.bf16.msra.mxu1 %v1551_v12 }
  0x52   :  { %1457 = vmatmul.mubr.bf16.gmra.mxu0 %v1546_v13 }
  0x53   :  { %1460 = vmatprep.mubr.bf16.mxu0 %v1547_v14 }
  0x5a   :  { %1461 = vmatmul.mubr.bf16.gmra.mxu0 %v1548_v15 }
 0x102   :  { %v1450_v17 = vpop.f32.mrf.mxu0 }
 0x103   :  { %v304_v19 = vmul.f32 0.17677669, %v1450_v17 }
 0x104   :  { %v239_v20 = vpop.f32.mrf.mxu0 }
 0x105   :  { %v302_v21 = vmul.f32 0.17677669, %v239_v20  ;;  %v1769_v22 = vadd.f32 %v1766_v18, %v304_v19  ;;  %v1552_v20 = vld [vmem:[%s2244_s2 + $0x20] sm:$0xff]  }
 0x106   :  { %v1451_v23 = vpop.f32.mrf.mxu0  ;;  %1470 = vmatprep.subr.bf16.mxu1 %v1552_v20 }
 0x107   :  { %v305_v24 = vmul.f32 0.17677669, %v1451_v23  ;;  %361 = vmax.xlane.f32.xlu1 %v1769_v22  ;;  %v1773_v25 = vadd.f32 %v1766_v18, %v302_v21  ;;  %1471 = vmatpush3.bf16.msra.mxu1 %v1552_v20 }
 0x108   :  { %v242_v26 = vpop.f32.mrf.mxu0 }
 0x109   :  { %v303_v27 = vmul.f32 0.17677669, %v242_v26  ;;  %357 = vmax.xlane.f32.xlu0 %v1773_v25  ;;  %v1777_v28 = vadd.f32 %v1766_v18, %v305_v24  ;;  %v1895_v24 = vld [vmem:[#allocation2 + $0x20] sm:$0xff] }
 0x10a   :  { %v1454_v29 = vpop.f32.mrf.mxu0 }
 0x10b   :  { %363 = vmax.xlane.f32.xlu1 %v1777_v28  ;;  %v1781_v30 = vadd.f32 %v1766_v18, %v303_v27  ;;  %v308_v34 = vmul.f32 0.17677669, %v1454_v29  ;;  %v1901_v29 = vld [vmem:[#allocation2 + $0x38] sm:$0xff] }
 0x10c   :  { %v255_v31 = vpop.f32.mrf.mxu0 }
 0x10d   :  { %v306_v32 = vmul.f32 0.17677669, %v255_v31  ;;  %359 = vmax.xlane.f32.xlu0 %v1781_v30  ;;  %v1793_v42 = vadd.f32 %v1766_v18, %v308_v34  ;;  %v1553_v31 = vld [vmem:[%s2244_s2 + $0x18] sm:$0xff]   ;;  %v1910_v34 = vld [vmem:[#allocation2 + $0x30] sm:$0xff] }
 0x10e   :  { %v1455_v33 = vpop.f32.mrf.mxu0  ;;  %1472 = vmatprep.subr.bf16.mxu1 %v1553_v31 }
 0x10f   :  { %v309_v35 = vmul.f32 0.17677669, %v1455_v33  ;;  %v1785_v36 = vadd.f32 %v1766_v18, %v306_v32  ;;  %1473 = vmatpush3.bf16.msra.mxu1 %v1553_v31  ;;  %v1985_v31 = vld [vmem:[#allocation2 + $0x78] sm:$0xff] }
 0x110   :  { %v258_v37 = vpop.f32.mrf.mxu0  ;;  %1474 = vmatprep.subr.bf16.mxu1 %v1554_v41 }
 0x111   :  { %v307_v38 = vmul.f32 0.17677669, %v258_v37  ;;  %365 = vmax.xlane.f32.xlu0 %v1785_v36  ;;  %v1789_v39 = vadd.f32 %v1766_v18, %v309_v35 }
 0x112   :  { %v1458_v40 = vpop.f32.mrf.mxu0 }
 0x113   :  { %371 = vmax.xlane.f32.xlu1 %v1789_v39  ;;  %v312_v44 = vmul.f32 0.17677669, %v1458_v40  ;;  %v1797_v46 = vadd.f32 %v1766_v18, %v307_v38  ;;  %v1919_v40 = vld [vmem:[#allocation2 + $0x28] sm:$0xff]  ;;  %1475 = vmatpush3.bf16.msra.mxu1 %v1554_v41 }
 0x114   :  { %v271_v43 = vpop.f32.mrf.mxu0 }
 0x115   :  { %v310_v45 = vmul.f32 0.17677669, %v271_v43  ;;  %369 = vmax.xlane.f32.xlu0 %v1793_v42  ;;  %v1808_v53 = vadd.f32 %v1766_v18, %v312_v44 }
 0x116   :  { %v1459_v47 = vpop.f32.mrf.mxu0 }
 0x117   :  { %v313_v48 = vmul.f32 0.17677669, %v1459_v47  ;;  %367 = vmax.xlane.f32.xlu1 %v1797_v46  ;;  %v1801_v49 = vadd.f32 %v1766_v18, %v310_v45  ;;  %v1931_v47 = vld [vmem:[#allocation2 + $0x40] sm:$0xff] }
 0x118   :  { %v274_v50 = vpop.f32.mrf.mxu0 }
 0x119   :  { %v311_v51 = vmul.f32 0.17677669, %v274_v50  ;;  %373 = vmax.xlane.f32.xlu0 %v1801_v49  ;;  %v1805_v52 = vadd.f32 %v1766_v18, %v313_v48 }
 0x11a   :  { %v1462_v54 = vpop.f32.mrf.mxu0 }
 0x11b   :  { %379 = vmax.xlane.f32.xlu1 %v1805_v52  ;;  %v316_v56 = vmul.f32 0.17677669, %v1462_v54  ;;  %v1813_v58 = vadd.f32 %v1766_v18, %v311_v51  ;;  %v1941_v54 = vld [vmem:[#allocation2 + $0x58] sm:$0xff] }
 0x11c   :  { %v287_v55 = vpop.f32.mrf.mxu0 }
 0x11d   :  { %v314_v57 = vmul.f32 0.17677669, %v287_v55  ;;  %377 = vmax.xlane.f32.xlu0 %v1808_v53  ;;  %v1840_v2 = vadd.f32 %v1766_v18, %v316_v56  ;;  %v1555_v55 = vld [vmem:[%s2244_s2 + $0x8] sm:$0xff]  }
 0x11e   :  { %v1463_v60 = vpop.f32.mrf.mxu0  ;;  %1476 = vmatprep.subr.bf16.mxu1 %v1555_v55 }
 0x11f   :  { %v317_v61 = vmul.f32 0.17677669, %v1463_v60  ;;  %375 = vmax.xlane.f32.xlu1 %v1813_v58  ;;  %v1833_v62 = vadd.f32 %v1766_v18, %v314_v57  ;;  %v1953_v60 = vld [vmem:[#allocation2 + $0x50] sm:$0xff]  ;;  %1477 = vmatpush3.bf16.msra.mxu1 %v1555_v55 }
 0x120   :  { %v290_v63 = vpop.f32.mrf.mxu0  ;;  %1478 = vmatprep.subr.bf16.mxu1 %v1556_v6 }
 0x121   :  { %v315_v0 = vmul.f32 0.17677669, %v290_v63  ;;  %381 = vmax.xlane.f32.xlu0 %v1833_v62  ;;  %v1837_v1 = vadd.f32 %v1766_v18, %v317_v61 }
 0x123   :  { %387 = vmax.xlane.f32.xlu1 %v1837_v1  ;;  %v1845_v3 = vadd.f32 %v1766_v18, %v315_v0  ;;  %1479 = vmatpush3.bf16.msra.mxu1 %v1556_v6 }
 0x125   :  { %385 = vmax.xlane.f32.xlu0 %v1840_v2 }
 0x127   :  { %383 = vmax.xlane.f32.xlu1 %v1845_v3 }
 0x190   :  { %v362_v7 = vpop.xlane.xlu1 %361 }
 0x191   :  { %v1859_v9 = vmax.f32 %v1851_v5, %v362_v7 }
 0x192   :  { %v358_v10 = vpop.xlane.xlu0 %357 }
 0x193   :  { %993 = vst.msk [vmem:[#allocation2 + $0x10] sm:$0xff] %vm28_vm0, %v1859_v9  ;;  %v1871_v14 = vmax.f32 %v1856_v8, %v358_v10  ;;  %465 = vperm.xlu1 %1532, %v1859_v9  }
 0x194   :  { %v364_v15 = vpop.xlane.xlu1 %363 }
 0x195   :  { %v405_v17 = vsub.f32 %v1856_v8, %v1871_v14  ;;  %991 = vst.msk [vmem:[#allocation2] sm:$0xff] %vm28_vm0, %v1871_v14  ;;  %v1881_v18 = vmax.f32 %v1861_v11, %v364_v15  ;;  %455 = vperm.xlu0 %1531, %v1871_v14   ;;  %v1975_v15 = vld [vmem:[#allocation2 + $0x60] sm:$0xff] }
 0x196   :  { %v360_v19 = vpop.xlane.xlu0 %359 }
 0x197   :  { %994 = vst.msk [vmem:[#allocation2 + $0x18] sm:$0xff] %vm28_vm0, %v1881_v18  ;;  %v1892_v23 = vmax.f32 %v1874_v16, %v360_v19  ;;  %470 = vperm.xlu1 %1532, %v1881_v18  }
 0x199   :  { %v406_v26 = vsub.f32 %v1874_v16, %v1892_v23  ;;  %992 = vst.msk [vmem:[#allocation2 + $0x8] sm:$0xff] %vm28_vm0, %v1892_v23 }
 0x19a   :  { %v366_v27 = vpop.xlane.xlu0 %365 }
 0x19b   :  { %v1907_v32 = vmax.f32 %v1895_v24, %v366_v27  ;;  %460 = vperm.xlu1 %1532, %v1892_v23  }
 0x19c   :  { %v372_v33 = vpop.xlane.xlu1 %371 }
 0x19d   :  { %995 = vst.msk [vmem:[#allocation2 + $0x20] sm:$0xff] %vm28_vm0, %v1907_v32  ;;  %v1917_v37 = vmax.f32 %v1901_v29, %v372_v33  ;;  %v2250_v16 = vsub.f32 %v1895_v24, %v1907_v32 }
 0x19e   :  { %v370_v38 = vpop.xlane.xlu0 %369 }
 0x19f   :  { %998 = vst.msk [vmem:[#allocation2 + $0x38] sm:$0xff] %vm28_vm0, %v1917_v37  ;;  %v1929_v44 = vmax.f32 %v1910_v34, %v370_v38  ;;  %v429_v23 = vmul.f32 1.442695, %v2250_v16 }
 0x1a0   :  { %v368_v45 = vpop.xlane.xlu1 %367 }
 0x1a1   :  { %997 = vst.msk [vmem:[#allocation2 + $0x30] sm:$0xff] %vm28_vm0, %v1929_v44  ;;  %v1938_v50 = vmax.f32 %v1919_v40, %v368_v45  ;;  %485 = vperm.xlu1 %1532, %v1929_v44   ;;  %v1995_v45 = vld [vmem:[#allocation2 + $0x70] sm:$0xff] }
 0x1a2   :  { %v374_v51 = vpop.xlane.xlu0 %373 }
 0x1a3   :  { %996 = vst.msk [vmem:[#allocation2 + $0x28] sm:$0xff] %vm28_vm0, %v1938_v50  ;;  %v1951_v57 = vmax.f32 %v1931_v47, %v374_v51  ;;  %v2251_v8 = vsub.f32 %v1919_v40, %v1938_v50 }
 0x1a4   :  { %v380_v59 = vpop.xlane.xlu1 %379 }
 0x1a5   :  { %999 = vst.msk [vmem:[#allocation2 + $0x40] sm:$0xff] %vm28_vm0, %v1951_v57  ;;  %v1960_v63 = vmax.f32 %v1941_v54, %v380_v59  ;;  %475 = vperm.xlu1 %1532, %v1907_v32   ;;  %v431_v14 = vmul.f32 1.442695, %v2251_v8 }
 0x1a6   :  { %v378_v0 = vpop.xlane.xlu0 %377 }
 0x1a7   :  { %1002 = vst.msk [vmem:[#allocation2 + $0x58] sm:$0xff] %vm28_vm0, %v1960_v63  ;;  %v1973_v10 = vmax.f32 %v1953_v60, %v378_v0  ;;  %v2005_v0 = vld [vmem:[#allocation2 + $0x68] sm:$0xff] }
 0x1a8   :  { %v376_v12 = vpop.xlane.xlu1 %375 }
 0x1a9   :  { %1001 = vst.msk [vmem:[#allocation2 + $0x50] sm:$0xff] %vm28_vm0, %v1973_v10  ;;  %v1982_v20 = vmax.f32 %v1963_v4, %v376_v12  ;;  %480 = vperm.xlu1 %1532, %v1938_v50  }
 0x1aa   :  { %v382_v27 = vpop.xlane.xlu0 %381 }
 0x1ab   :  { %1000 = vst.msk [vmem:[#allocation2 + $0x48] sm:$0xff] %vm28_vm0, %v1982_v20  ;;  %v1992_v38 = vmax.f32 %v1975_v15, %v382_v27  ;;  %500 = vperm.xlu0 %1531, %v1982_v20   ;;  %v2255_v32 = vsub.f32 %v1963_v4, %v1982_v20 }
 0x1ac   :  { %v388_v41 = vpop.xlane.xlu1 %387 }
 0x1ad   :  { %1003 = vst.msk [vmem:[#allocation2 + $0x60] sm:$0xff] %vm28_vm0, %v1992_v38  ;;  %v2002_v55 = vmax.f32 %v1985_v31, %v388_v41  ;;  %490 = vperm.xlu1 %1532, %v1917_v37   ;;  %v439_v40 = vmul.f32 1.442695, %v2255_v32  ;;  %v2258_v4 = vsub.f32 %v1975_v15, %v1992_v38 }
 0x1ae   :  { %v386_v59 = vpop.xlane.xlu0 %385 }
 0x1af   :  { %1006 = vst.msk [vmem:[#allocation2 + $0x78] sm:$0xff] %vm28_vm0, %v2002_v55  ;;  %v2012_v12 = vmax.f32 %v1995_v45, %v386_v59  ;;  %510 = vperm.xlu0 %1531, %v1960_v63   ;;  %v445_v20 = vmul.f32 1.442695, %v2258_v4  ;;  %v2260_v8 = vsub.f32 %v1985_v31, %v2002_v55  ;;  %v592_v4 = vld [vmem:[#allocation3 + $0x58] sm:$0xff] }
 0x1b0   :  { %v384_v27 = vpop.xlane.xlu1 %383 }
 0x1b1   :  { %1005 = vst.msk [vmem:[#allocation2 + $0x70] sm:$0xff] %vm28_vm0, %v2012_v12  ;;  %v2020_v51 = vmax.f32 %v2005_v0, %v384_v27  ;;  %495 = vperm.xlu1 %1532, %v1951_v57  }
 0x1b3   :  { %1004 = vst.msk [vmem:[#allocation2 + $0x68] sm:$0xff] %vm28_vm0, %v2020_v51  ;;  %520 = vperm.xlu0 %1531, %v2020_v51  }
 0x1b5   :  { %505 = vperm.xlu1 %1532, %v1973_v10  }
 0x1b7   :  { %530 = vperm.xlu0 %1531, %v2002_v55  }
 0x1b9   :  { %515 = vperm.xlu1 %1532, %v1992_v38  }
 0x1bd   :  { %525 = vperm.xlu1 %1532, %v2012_v12  }
 0x20e   :  { %v466_v59 = vpop.permute.xlu1 %465 }
 0x20f   :  { %v535_v33 = vsub.f32 %v1769_v22, %v466_v59 }
 0x210   :  { %v456_v27 = vpop.permute.xlu0 %455 }
 0x211   :  { %v533_v41 = vsub.f32 %v1773_v25, %v456_v27  ;;  %v553_v56 = vmul.f32 1.442695, %v535_v33 }
 0x212   :  { %v471_v7 = vpop.permute.xlu1 %470 }
 0x213   :  { %v549_v19 = vmul.f32 1.442695, %v533_v41  ;;  %v536_v6 = vsub.f32 %v1777_v28, %v471_v7 }
 0x215   :  { %1565 = vpow2.f32 %v549_v19  ;;  %v555_v61 = vmul.f32 1.442695, %v536_v6 }
 0x216   :  { %v461_v43 = vpop.permute.xlu1 %460 }
 0x217   :  { %v534_v48 = vsub.f32 %v1781_v30, %v461_v43  ;;  %1567 = vpow2.f32 %v555_v61 }
 0x219   :  { %v551_v35 = vmul.f32 1.442695, %v534_v48 }
 0x21b   :  { %1569 = vpow2.f32 %v551_v35 }
 0x21c   :  { %1571 = vpow2.f32 %v553_v56  ;;  %v486_v21 = vpop.permute.xlu1 %485 }
 0x21d   :  { %v539_v13 = vsub.f32 %v1793_v42, %v486_v21 }
 0x21f   :  { %v561_v22 = vmul.f32 1.442695, %v539_v13 }
 0x220   :  { %v476_v25 = vpop.permute.xlu1 %475 }
 0x221   :  { %v537_v41 = vsub.f32 %v1785_v36, %v476_v25 }
 0x222   :  { %v1566_v27 = vpop.eup %1565 }
 0x223   :  { %v557_v28 = vmul.f32 1.442695, %v537_v41  ;;  %613 = vadd.xlane.f32.xlu1 %v1566_v27 }
 0x224   :  { %v481_v7 = vpop.permute.xlu1 %480  ;;  %v1568_v30 = vpop.eup %1567 }
 0x225   :  { %1573 = vpow2.f32 %v557_v28  ;;  %v538_v19 = vsub.f32 %v1797_v46, %v481_v7 }
 0x226   :  { %v501_v43 = vpop.permute.xlu0 %500  ;;  %1575 = vpow2.f32 %v561_v22 }
 0x227   :  { %v559_v61 = vmul.f32 1.442695, %v538_v19  ;;  %619 = vadd.xlane.f32.xlu1 %v1568_v30  ;;  %v542_v48 = vsub.f32 %v1813_v58, %v501_v43 }
 0x228   :  { %v1570_v35 = vpop.eup %1569  ;;  %v491_v42 = vpop.permute.xlu1 %490 }
 0x229   :  { %v1572_v21 = vpop.eup %1571  ;;  %1577 = vpow2.f32 %v559_v61  ;;  %v540_v36 = vsub.f32 %v1789_v39, %v491_v42  ;;  %615 = vadd.xlane.f32.xlu0 %v1570_v35  ;;  %v790_v56 = vpack.c.bf16 %v1570_v35, %v1566_v27  ;;  %v567_v46 = vmul.f32 1.442695, %v542_v48 }
 0x22a   :  { %v511_v13 = vpop.permute.xlu0 %510  ;;  %v791_v33 = vpack.c.bf16 %v1568_v30, %v1572_v21 }
 0x22b   :  { %v563_v6 = vmul.f32 1.442695, %v540_v36  ;;  %1480 = vmatprep.mubr.bf16.mxu1 %v790_v56  ;;  %v544_v59 = vsub.f32 %v1805_v52, %v511_v13 }
 0x22c   :  { %1481 = vmatmul.mubr.bf16.vlgmr.msra.gmra.mxu1 %v791_v33  ;;  %v496_v25 = vpop.permute.xlu1 %495 }
 0x22d   :  { %1579 = vpow2.f32 %v563_v6  ;;  %v541_v41 = vsub.f32 %v1801_v49, %v496_v25  ;;  %617 = vadd.xlane.f32.xlu0 %v1572_v21  ;;  %v571_v22 = vmul.f32 1.442695, %v544_v59 }
 0x22e   :  { %v521_v58 = vpop.permute.xlu0 %520  ;;  %1581 = vpow2.f32 %v567_v46 }
 0x22f   :  { %v565_v28 = vmul.f32 1.442695, %v541_v41  ;;  %v546_v39 = vsub.f32 %v1845_v3, %v521_v58 }
 0x230   :  { %v506_v27 = vpop.permute.xlu1 %505 }
 0x231   :  { %1583 = vpow2.f32 %v565_v28  ;;  %v543_v7 = vsub.f32 %v1808_v53, %v506_v27  ;;  %v575_v52 = vmul.f32 1.442695, %v546_v39 }
 0x232   :  { %v1574_v19 = vpop.eup %1573  ;;  %v531_v30 = vpop.permute.xlu0 %530  ;;  %1585 = vpow2.f32 %v571_v22 }
 0x233   :  { %v569_v43 = vmul.f32 1.442695, %v543_v7  ;;  %621 = vadd.xlane.f32.xlu0 %v1574_v19  ;;  %v548_v61 = vsub.f32 %v1837_v1, %v531_v30  ;;  %v1576_v35 = vpop.eup %1575  ;;  %v423_v7 = vmul.f32 1.442695, %v406_v26  ;;  %v2248_v30 = vsub.f32 %v1851_v5, %v1859_v9 }
 0x234   :  { %v516_v49 = vpop.permute.xlu1 %515  ;;  %v2252_v5 = vsub.f32 %v1910_v34, %v1929_v44  ;;  %v2257_v44 = vsub.f32 %v1941_v54, %v1960_v63 }
 0x235   :  { %1587 = vpow2.f32 %v569_v43  ;;  %v545_v48 = vsub.f32 %v1833_v62, %v516_v49  ;;  %v579_v36 = vmul.f32 1.442695, %v548_v61  ;;  %v425_v43 = vmul.f32 1.442695, %v2248_v30 }
 0x236   :  { %v1578_v42 = vpop.eup %1577  ;;  %1589 = vpow2.f32 %v575_v52  ;;  %v2249_v52 = vsub.f32 %v1861_v11, %v1881_v18  ;;  %v433_v9 = vmul.f32 1.442695, %v2252_v5  ;;  %v2254_v18 = vsub.f32 %v1931_v47, %v1951_v57 }
 0x237   :  { %v573_v21 = vmul.f32 1.442695, %v545_v48  ;;  %625 = vadd.xlane.f32.xlu0 %v1576_v35  ;;  %v792_v3 = vpack.c.bf16 %v1578_v42, %v1574_v19  ;;  %v421_v19 = vmul.f32 1.442695, %v405_v17  ;;  %v2253_v17 = vsub.f32 %v1901_v29, %v1917_v37 }
 0x238   :  { %v526_v53 = vpop.permute.xlu1 %525  ;;  %v427_v61 = vmul.f32 1.442695, %v2249_v52  ;;  %v437_v24 = vmul.f32 1.442695, %v2254_v18  ;;  %v2256_v29 = vsub.f32 %v1953_v60, %v1973_v10  ;;  %v443_v47 = vmul.f32 1.442695, %v2257_v44 }
 0x239   :  { %1591 = vpow2.f32 %v573_v21  ;;  %v547_v56 = vsub.f32 %v1840_v2, %v526_v53  ;;  %1484 = vmatprep.mubr.bf16.mxu1 %v792_v3  ;;  %v435_v11 = vmul.f32 1.442695, %v2253_v17  ;;  %v2259_v60 = vsub.f32 %v2005_v0, %v2020_v51  ;;  %v1557_v21 = vld [vmem:[%s2245_s4 + $0x38] sm:$0xff]   ;;  %v1558_v3 = vld [vmem:[%s2245_s4 + $0x30] sm:$0xff]   ;;  %v1560_v53 = vld [vmem:[%s2245_s4 + $0x20] sm:$0xff]  }
 0x23a   :  { %v1580_v13 = vpop.eup %1579  ;;  %1593 = vpow2.f32 %v579_v36  ;;  %v441_v34 = vmul.f32 1.442695, %v2256_v29  ;;  %1496 = vmatprep.subr.bf16.mxu1 %v1557_v21  ;;  %v1559_v36 = vld [vmem:[%s2245_s4 + $0x28] sm:$0xff]   ;;  %v2261_v5 = vsub.f32 %v1995_v45, %v2012_v12  ;;  %v588_v18 = vld [vmem:[#allocation3 + $0x38] sm:$0xff]  ;;  %v589_v45 = vld [vmem:[#allocation3 + $0x40] sm:$0xff] }
 0x23b   :  { %v577_v33 = vmul.f32 1.442695, %v547_v56  ;;  %627 = vadd.xlane.f32.xlu1 %v1580_v13  ;;  %v793_v1 = vpack.c.bf16 %v1580_v13, %v1576_v35  ;;  %v1582_v6 = vpop.eup %1581  ;;  %v447_v10 = vmul.f32 1.442695, %v2259_v60  ;;  %1497 = vmatpush3.bf16.msra.mxu1 %v1557_v21  ;;  %v1561_v56 = vld [vmem:[%s2245_s4 + $0x18] sm:$0xff]   ;;  %v581_v13 = vld [vmem:[#allocation3] sm:$0xff] }
 0x23c   :  { %1498 = vmatprep.subr.bf16.mxu1 %v1558_v3  ;;  %v586_v12 = vld [vmem:[#allocation3 + $0x28] sm:$0xff] }
 0x23d   :  { %1595 = vpow2.f32 %v577_v33  ;;  %1485 = vmatmul.mubr.bf16.gmra.mxu1 %v793_v1 }
 0x23e   :  { %v1584_v62 = vpop.eup %1583  ;;  %1597 = vpow2.f32 %v423_v7 }
 0x23f   :  { %623 = vadd.xlane.f32.xlu1 %v1578_v42  ;;  %629 = vadd.xlane.f32.xlu0 %v1584_v62  ;;  %v794_v46 = vpack.c.bf16 %v1582_v6, %v1584_v62  ;;  %v1586_v59 = vpop.eup %1585  ;;  %1599 = vpow2.f32 %v421_v19  ;;  %v585_v19 = vld [vmem:[#allocation3 + $0x20] sm:$0xff] }
 0x240   :  { %1601 = vpow2.f32 %v425_v43  ;;  %1499 = vmatpush3.bf16.msra.mxu1 %v1558_v3 }
 0x241   :  { %1488 = vmatprep.mubr.bf16.mxu1 %v794_v46  ;;  %1603 = vpow2.f32 %v427_v61  ;;  %1500 = vmatprep.subr.bf16.mxu1 %v1559_v36  ;;  %v582_v46 = vld [vmem:[#allocation3 + $0x8] sm:$0xff]  ;;  %v587_v61 = vld [vmem:[#allocation3 + $0x30] sm:$0xff] }
 0x242   :  { %v1588_v25 = vpop.eup %1587  ;;  %1605 = vpow2.f32 %v429_v23 }
 0x243   :  { %635 = vadd.xlane.f32.xlu1 %v1586_v59  ;;  %633 = vadd.xlane.f32.xlu0 %v1588_v25  ;;  %v795_v41 = vpack.c.bf16 %v1586_v59, %v1588_v25  ;;  %v1590_v2 = vpop.eup %1589  ;;  %1607 = vpow2.f32 %v431_v14  ;;  %v451_v14 = vmul.f32 1.442695, %v2260_v8 }
 0x244   :  { %1609 = vpow2.f32 %v433_v9  ;;  %1501 = vmatpush3.bf16.msra.mxu1 %v1559_v36  ;;  %v449_v9 = vmul.f32 1.442695, %v2261_v5  ;;  %v593_v36 = vld [vmem:[#allocation3 + $0x60] sm:$0xff] }
 0x245   :  { %1489 = vmatmul.mubr.bf16.gmra.mxu1 %v795_v41  ;;  %1611 = vpow2.f32 %v435_v11  ;;  %1502 = vmatprep.subr.bf16.mxu1 %v1560_v53 }
 0x246   :  { %v1592_v58 = vpop.eup %1591  ;;  %1613 = vpow2.f32 %v437_v24 }
 0x247   :  { %631 = vadd.xlane.f32.xlu1 %v1582_v6  ;;  %637 = vadd.xlane.f32.xlu0 %v1592_v58  ;;  %v796_v28 = vpack.c.bf16 %v1590_v2, %v1592_v58  ;;  %v1594_v22 = vpop.eup %1593  ;;  %1615 = vpow2.f32 %v439_v40  ;;  %v584_v6 = vld [vmem:[#allocation3 + $0x18] sm:$0xff] }
 0x248   :  { %1617 = vpow2.f32 %v441_v34  ;;  %1503 = vmatpush3.bf16.msra.mxu1 %v1560_v53  ;;  %v590_v53 = vld [vmem:[#allocation3 + $0x48] sm:$0xff] }
 0x249   :  { %1492 = vmatprep.mubr.bf16.mxu1 %v796_v28  ;;  %1619 = vpow2.f32 %v443_v47  ;;  %1504 = vmatprep.subr.bf16.mxu1 %v1561_v56  ;;  %v583_v28 = vld [vmem:[#allocation3 + $0x10] sm:$0xff] }
 0x24a   :  { %v1596_v39 = vpop.eup %1595  ;;  %1621 = vpow2.f32 %v445_v20 }
 0x24b   :  { %643 = vadd.xlane.f32.xlu1 %v1594_v22  ;;  %641 = vadd.xlane.f32.xlu0 %v1596_v39  ;;  %v797_v27 = vpack.c.bf16 %v1594_v22, %v1596_v39  ;;  %v2075_v26 = vpop.eup %1597  ;;  %1623 = vpow2.f32 %v447_v10 }
 0x24c   :  { %v1600_v50 = vpop.eup %1599  ;;  %1505 = vmatpush3.bf16.msra.mxu1 %v1561_v56 }
 0x24d   :  { %1493 = vmatmul.mubr.bf16.gmra.mxu1 %v797_v27  ;;  %v2084_v37 = vpop.eup %1601  ;;  %v597_v33 = vmul.f32 %v1600_v50, %v581_v13 }
 0x24e   :  { %v1604_v57 = vpop.eup %1603  ;;  %v599_v39 = vmul.f32 %v2084_v37, %v583_v28 }
 0x24f   :  { %639 = vadd.xlane.f32.xlu1 %v1590_v2  ;;  %v1606_v49 = vpop.eup %1605  ;;  %v600_v59 = vmul.f32 %v1604_v57, %v584_v6  ;;  %v598_v2 = vmul.f32 %v2075_v26, %v582_v46 }
 0x250   :  { %v2096_v35 = vpop.eup %1607  ;;  %v601_v43 = vmul.f32 %v1606_v49, %v585_v19  ;;  %v594_v19 = vld [vmem:[#allocation3 + $0x68] sm:$0xff] }
 0x251   :  { %v2099_v54 = vpop.eup %1609  ;;  %v602_v34 = vmul.f32 %v2096_v35, %v586_v12 }
 0x252   :  { %v2101_v63 = vpop.eup %1611  ;;  %v603_v17 = vmul.f32 %v2099_v54, %v587_v61 }
 0x253   :  { %v2105_v15 = vpop.eup %1613  ;;  %v604_v31 = vmul.f32 %v2101_v63, %v588_v18 }
 0x254   :  { %v2107_v38 = vpop.eup %1615  ;;  %v605_v29 = vmul.f32 %v2105_v15, %v589_v45 }
 0x255   :  { %v2111_v51 = vpop.eup %1617  ;;  %v606_v6 = vmul.f32 %v2107_v38, %v590_v53 }
 0x256   :  { %v2113_v0 = vpop.eup %1619 }
 0x257   :  { %v2117_v48 = vpop.eup %1621 }
 0x258   :  { %v2119_v42 = vpop.eup %1623 }
 0x260   :  { %701 = vperm.xlu1 %1532, %v2075_v26  }
 0x261   :  { %696 = vperm.xlu0 %1531, %v1600_v50   ;;  %v1562_v50 = vld [vmem:[%s2245_s4 + $0x10] sm:$0xff]  }
 0x262   :  { %1506 = vmatprep.subr.bf16.mxu1 %v1562_v50 }
 0x263   :  { %1507 = vmatpush3.bf16.msra.mxu1 %v1562_v50 }
 0x264   :  { %706 = vperm.xlu1 %1532, %v2084_v37  }
 0x265   :  { %711 = vperm.xlu0 %1531, %v1604_v57   ;;  %v591_v57 = vld [vmem:[#allocation3 + $0x50] sm:$0xff] }
 0x266   :  { %v607_v10 = vmul.f32 %v2111_v51, %v591_v57 }
 0x268   :  { %716 = vperm.xlu1 %1532, %v1606_v49  }
 0x269   :  { %721 = vperm.xlu0 %1531, %v2096_v35  }
 0x26c   :  { %726 = vperm.xlu1 %1532, %v2099_v54   ;;  %v608_v54 = vmul.f32 %v2113_v0, %v592_v4 }
 0x26d   :  { %731 = vperm.xlu0 %1531, %v2101_v63   ;;  %v1563_v63 = vld [vmem:[%s2245_s4 + $0x8] sm:$0xff]  }
 0x26e   :  { %1508 = vmatprep.subr.bf16.mxu1 %v1563_v63 }
 0x26f   :  { %1509 = vmatpush3.bf16.msra.mxu1 %v1563_v63 }
 0x270   :  { %736 = vperm.xlu1 %1532, %v2105_v15  }
 0x271   :  { %741 = vperm.xlu0 %1531, %v2107_v38  }
 0x274   :  { %746 = vperm.xlu1 %1532, %v2111_v51  }
 0x275   :  { %751 = vperm.xlu0 %1531, %v2113_v0  }
 0x278   :  { %756 = vperm.xlu1 %1532, %v2117_v48  }
 0x279   :  { %761 = vperm.xlu0 %1531, %v2119_v42  }
 0x2ac   :  { %v614_v1 = vpop.xlane.xlu1 %613 }
 0x2ad   :  { %v645_v62 = vadd.f32 %v614_v1, %v597_v33  ;;  %v609_v1 = vmul.f32 %v2117_v48, %v593_v36 }
 0x2af   :  { %662 = vst.msk [vmem:[#allocation3] sm:$0xff] %vm28_vm0, %v645_v62  ;;  %v1564_v62 = vld [vmem:[%s2245_s4] sm:$0xff]  }
 0x2b0   :  { %v620_v25 = vpop.xlane.xlu1 %619  ;;  %1510 = vmatprep.subr.bf16.mxu1 %v1564_v62 }
 0x2b1   :  { %v648_v41 = vadd.f32 %v620_v25, %v600_v59  ;;  %1511 = vmatpush3.bf16.msra.mxu1 %v1564_v62 }
 0x2b2   :  { %v616_v58 = vpop.xlane.xlu0 %615 }
 0x2b3   :  { %665 = vst.msk [vmem:[#allocation3 + $0x18] sm:$0xff] %vm28_vm0, %v648_v41  ;;  %v646_v22 = vadd.f32 %v616_v58, %v598_v2  ;;  %v595_v41 = vld [vmem:[#allocation3 + $0x70] sm:$0xff]  ;;  %v596_v2 = vld [vmem:[#allocation3 + $0x78] sm:$0xff] }
 0x2b5   :  { %663 = vst.msk [vmem:[#allocation3 + $0x8] sm:$0xff] %vm28_vm0, %v646_v22 }
 0x2b6   :  { %v618_v27 = vpop.xlane.xlu0 %617  ;;  %v1026_v32 = vld [vmem:[#allocation3] sm:$0xff] }
 0x2b7   :  { %v647_v7 = vadd.f32 %v618_v27, %v599_v39 }
 0x2b9   :  { %664 = vst.msk [vmem:[#allocation3 + $0x10] sm:$0xff] %vm28_vm0, %v647_v7 }
 0x2ba   :  { %v1029_v30 = vld [vmem:[#allocation3 + $0x18] sm:$0xff] }
 0x2bb   :  { %1625 = vrcp.f32 %v1029_v30 }
 0x2bc   :  { %v622_v52 = vpop.xlane.xlu0 %621  ;;  %v1027_v16 = vld [vmem:[#allocation3 + $0x8] sm:$0xff] }
 0x2bd   :  { %v649_v23 = vadd.f32 %v622_v52, %v601_v43  ;;  %1627 = vrcp.f32 %v1027_v16  ;;  %v610_v16 = vmul.f32 %v2119_v42, %v594_v19 }
 0x2bf   :  { %666 = vst.msk [vmem:[#allocation3 + $0x20] sm:$0xff] %vm28_vm0, %v649_v23 }
 0x2c0   :  { %v626_v11 = vpop.xlane.xlu0 %625  ;;  %v1028_v24 = vld [vmem:[#allocation3 + $0x10] sm:$0xff] }
 0x2c1   :  { %v651_v26 = vadd.f32 %v626_v11, %v603_v17  ;;  %1629 = vrcp.f32 %v1028_v24 }
 0x2c2   :  { %1631 = vpow2.f32 %v451_v14 }
 0x2c3   :  { %1633 = vpow2.f32 %v449_v9  ;;  %668 = vst.msk [vmem:[#allocation3 + $0x30] sm:$0xff] %vm28_vm0, %v651_v26 }
 0x2c4   :  { %v628_v55 = vpop.xlane.xlu1 %627  ;;  %1635 = vrcp.f32 %v1026_v32 }
 0x2c5   :  { %v652_v40 = vadd.f32 %v628_v55, %v604_v31 }
 0x2c6   :  { %v1030_v35 = vld [vmem:[#allocation3 + $0x20] sm:$0xff] }
 0x2c7   :  { %669 = vst.msk [vmem:[#allocation3 + $0x38] sm:$0xff] %vm28_vm0, %v652_v40 }
 0x2c8   :  { %v1626_v37 = vpop.eup %1625  ;;  %v630_v44 = vpop.xlane.xlu0 %629 }
 0x2c9   :  { %v624_v47 = vpop.xlane.xlu1 %623  ;;  %v653_v20 = vadd.f32 %v630_v44, %v605_v29  ;;  %1075 = vperm.xlu0 %1531, %v1626_v37  }
 0x2ca   :  { %v650_v49 = vadd.f32 %v624_v47, %v602_v34  ;;  %v1032_v60 = vld [vmem:[#allocation3 + $0x30] sm:$0xff]  ;;  %v1628_v15 = vpop.eup %1627 }
 0x2cb   :  { %670 = vst.msk [vmem:[#allocation3 + $0x40] sm:$0xff] %vm28_vm0, %v653_v20  ;;  %1637 = vrcp.f32 %v1032_v60 }
 0x2cc   :  { %667 = vst.msk [vmem:[#allocation3 + $0x28] sm:$0xff] %vm28_vm0, %v650_v49  ;;  %v634_v21 = vpop.xlane.xlu0 %633  ;;  %1639 = vrcp.f32 %v1030_v35 }
 0x2cd   :  { %v636_v3 = vpop.xlane.xlu1 %635  ;;  %v655_v56 = vadd.f32 %v634_v21, %v607_v10  ;;  %1065 = vperm.xlu0 %1531, %v1628_v15  }
 0x2ce   :  { %v656_v13 = vadd.f32 %v636_v3, %v608_v54  ;;  %v1630_v33 = vpop.eup %1629  ;;  %v1033_v51 = vld [vmem:[#allocation3 + $0x38] sm:$0xff] }
 0x2cf   :  { %v2167_v0 = vpop.eup %1631  ;;  %672 = vst.msk [vmem:[#allocation3 + $0x50] sm:$0xff] %vm28_vm0, %v655_v56  ;;  %1070 = vperm.xlu1 %1532, %v1630_v33   ;;  %1641 = vrcp.f32 %v1033_v51 }
 0x2d0   :  { %673 = vst.msk [vmem:[#allocation3 + $0x58] sm:$0xff] %vm28_vm0, %v656_v13  ;;  %v1634_v46 = vpop.eup %1633  ;;  %v638_v59 = vpop.xlane.xlu0 %637  ;;  %v612_v48 = vmul.f32 %v2167_v0, %v596_v2 }
 0x2d1   :  { %v632_v25 = vpop.xlane.xlu1 %631  ;;  %v657_v58 = vadd.f32 %v638_v59, %v609_v1  ;;  %v1636_v22 = vpop.eup %1635  ;;  %v611_v38 = vmul.f32 %v1634_v46, %v595_v41 }
 0x2d2   :  { %v654_v28 = vadd.f32 %v632_v25, %v606_v6  ;;  %v1034_v23 = vld [vmem:[#allocation3 + $0x40] sm:$0xff] }
 0x2d3   :  { %v1031_v39 = vld [vmem:[#allocation3 + $0x28] sm:$0xff]  ;;  %674 = vst.msk [vmem:[#allocation3 + $0x60] sm:$0xff] %vm28_vm0, %v657_v58  ;;  %1060 = vperm.xlu1 %1532, %v1636_v22  }
 0x2d4   :  { %671 = vst.msk [vmem:[#allocation3 + $0x48] sm:$0xff] %vm28_vm0, %v654_v28  ;;  %1643 = vrcp.f32 %v1031_v39  ;;  %v642_v27 = vpop.xlane.xlu0 %641 }
 0x2d5   :  { %v644_v7 = vpop.xlane.xlu1 %643  ;;  %v659_v30 = vadd.f32 %v642_v27, %v611_v38 }
 0x2d6   :  { %v660_v43 = vadd.f32 %v644_v7, %v612_v48  ;;  %v1036_v52 = vld [vmem:[#allocation3 + $0x50] sm:$0xff] }
 0x2d7   :  { %v1037_v61 = vld [vmem:[#allocation3 + $0x58] sm:$0xff]  ;;  %676 = vst.msk [vmem:[#allocation3 + $0x70] sm:$0xff] %vm28_vm0, %v659_v30  ;;  %1645 = vrcp.f32 %v1036_v52 }
 0x2d8   :  { %677 = vst.msk [vmem:[#allocation3 + $0x78] sm:$0xff] %vm28_vm0, %v660_v43  ;;  %v1638_v8 = vpop.eup %1637  ;;  %1647 = vrcp.f32 %v1037_v61 }
 0x2d9   :  { %v640_v14 = vpop.xlane.xlu1 %639  ;;  %1090 = vperm.xlu1 %1532, %v1638_v8   ;;  %1649 = vrcp.f32 %v1034_v23  ;;  %v1640_v17 = vpop.eup %1639 }
 0x2da   :  { %v658_v5 = vadd.f32 %v640_v14, %v610_v16  ;;  %v1038_v18 = vld [vmem:[#allocation3 + $0x60] sm:$0xff] }
 0x2db   :  { %v1035_v9 = vld [vmem:[#allocation3 + $0x48] sm:$0xff] }
 0x2dc   :  { %675 = vst.msk [vmem:[#allocation3 + $0x68] sm:$0xff] %vm28_vm0, %v658_v5  ;;  %1651 = vrcp.f32 %v1035_v9  ;;  %v1642_v11 = vpop.eup %1641  ;;  %v697_v37 = vpop.permute.xlu0 %696 }
 0x2dd   :  { %1080 = vperm.xlu1 %1532, %v1640_v17   ;;  %1095 = vperm.xlu0 %1531, %v1642_v11   ;;  %1653 = vrcp.f32 %v1038_v18  ;;  %v702_v44 = vpop.permute.xlu1 %701 }
 0x2de   :  { %v1040_v32 = vld [vmem:[#allocation3 + $0x70] sm:$0xff]  ;;  %v775_v59 = vmul.f32 0.0, %v702_v44 }
 0x2df   :  { %v1041_v55 = vld [vmem:[#allocation3 + $0x78] sm:$0xff] }
 0x2e0   :  { %v712_v47 = vpop.permute.xlu0 %711 }
 0x2e1   :  { %v1644_v24 = vpop.eup %1643  ;;  %v707_v57 = vpop.permute.xlu1 %706  ;;  %v777_v25 = vmul.f32 0.0, %v712_v47 }
 0x2e2   :  { %1085 = vperm.xlu0 %1531, %v1644_v24   ;;  %v776_v6 = vmul.f32 0.0, %v707_v57 }
 0x2e3   :  { %v1039_v42 = vld [vmem:[#allocation3 + $0x68] sm:$0xff] }
 0x2e4   :  { %1655 = vrcp.f32 %v1039_v42  ;;  %v1646_v26 = vpop.eup %1645  ;;  %v722_v4 = vpop.permute.xlu0 %721 }
 0x2e5   :  { %v1648_v31 = vpop.eup %1647  ;;  %1110 = vperm.xlu1 %1532, %v1646_v26   ;;  %1657 = vrcp.f32 %v1040_v32  ;;  %v717_v20 = vpop.permute.xlu1 %716  ;;  %v779_v14 = vmul.f32 0.0, %v722_v4 }
 0x2e6   :  { %1115 = vperm.xlu0 %1531, %v1648_v31   ;;  %v1650_v45 = vpop.eup %1649  ;;  %1659 = vrcp.f32 %v1041_v55  ;;  %v778_v5 = vmul.f32 0.0, %v717_v20 }
 0x2e8   :  { %v732_v60 = vpop.permute.xlu0 %731 }
 0x2e9   :  { %v1652_v12 = vpop.eup %1651  ;;  %1100 = vperm.xlu1 %1532, %v1650_v45   ;;  %v727_v54 = vpop.permute.xlu1 %726  ;;  %v781_v23 = vmul.f32 0.0, %v732_v60 }
 0x2ea   :  { %1105 = vperm.xlu0 %1531, %v1652_v12   ;;  %v1654_v40 = vpop.eup %1653  ;;  %v780_v17 = vmul.f32 0.0, %v727_v54 }
 0x2ec   :  { %v1482_v49 = vpop.f32.mrf.mxu1  ;;  %v742_v35 = vpop.permute.xlu0 %741 }
 0x2ed   :  { %766 = vperm.xlu1 %1532, %v1634_v46   ;;  %v737_v15 = vpop.permute.xlu1 %736  ;;  %v774_v46 = vmul.f32 0.0, %v697_v37  ;;  %v961_v41 = vadd.f32 %v1482_v49, %v776_v6  ;;  %v783_v20 = vmul.f32 0.0, %v742_v35 }
 0x2ee   :  { %771 = vperm.xlu0 %1531, %v2167_v0   ;;  %v896_v10 = vpop.f32.mrf.mxu1  ;;  %v782_v37 = vmul.f32 0.0, %v737_v15 }
 0x2ef   :  { %v959_v58 = vadd.f32 %v896_v10, %v774_v46 }
 0x2f0   :  { %v1483_v63 = vpop.f32.mrf.mxu1  ;;  %v752_v3 = vpop.permute.xlu0 %751 }
 0x2f1   :  { %v1656_v50 = vpop.eup %1655  ;;  %1120 = vperm.xlu1 %1532, %v1654_v40   ;;  %v747_v53 = vpop.permute.xlu1 %746  ;;  %v962_v39 = vadd.f32 %v1483_v63, %v777_v25  ;;  %v785_v44 = vmul.f32 0.0, %v752_v3 }
 0x2f2   :  { %1125 = vperm.xlu0 %1531, %v1656_v50   ;;  %v1658_v29 = vpop.eup %1657  ;;  %v899_v21 = vpop.f32.mrf.mxu1  ;;  %v784_v47 = vmul.f32 0.0, %v747_v53 }
 0x2f3   :  { %v1660_v34 = vpop.eup %1659  ;;  %v960_v28 = vadd.f32 %v899_v21, %v775_v59 }
 0x2f4   :  { %v2184_v13 = vpop.permute.xlu0 %761 }
 0x2f5   :  { %1130 = vperm.xlu1 %1532, %v1658_v29   ;;  %v2186_v51 = vpop.permute.xlu1 %756  ;;  %v787_v35 = vmul.f32 0.0, %v2184_v13  ;;  %v1375_v13 = vld [vmem:[%s2246_s5] ss:$0 sm:$0xff] }
 0x2f6   :  { %1135 = vperm.xlu0 %1531, %v1660_v34   ;;  %v786_v3 = vmul.f32 0.0, %v2186_v51 }
 0x2fd   :  { %v1486_v36 = vpop.f32.mrf.mxu1 }
 0x2fe   :  { %v965_v26 = vadd.f32 %v1486_v36, %v780_v17 }
 0x2ff   :  { %v912_v56 = vpop.f32.mrf.mxu1 }
 0x300   :  { %v963_v24 = vadd.f32 %v912_v56, %v778_v5 }
 0x301   :  { %v1487_v33 = vpop.f32.mrf.mxu1 }
 0x302   :  { %v966_v11 = vadd.f32 %v1487_v33, %v781_v23 }
 0x303   :  { %v915_v1 = vpop.f32.mrf.mxu1 }
 0x304   :  { %v964_v42 = vadd.f32 %v915_v1, %v779_v14 }
 0x305   :  { %v1490_v22 = vpop.f32.mrf.mxu1 }
 0x306   :  { %v969_v49 = vadd.f32 %v1490_v22, %v784_v47 }
 0x307   :  { %v928_v30 = vpop.f32.mrf.mxu1 }
 0x308   :  { %v967_v60 = vadd.f32 %v928_v30, %v782_v37 }
 0x309   :  { %v1491_v16 = vpop.f32.mrf.mxu1 }
 0x30a   :  { %v970_v10 = vadd.f32 %v1491_v16, %v785_v44 }
 0x30b   :  { %v931_v9 = vpop.f32.mrf.mxu1 }
 0x30c   :  { %v968_v54 = vadd.f32 %v931_v9, %v783_v20 }
 0x30d   :  { %v1494_v55 = vpop.f32.mrf.mxu1 }
 0x30f   :  { %v944_v57 = vpop.f32.mrf.mxu1 }
 0x310   :  { %v971_v59 = vadd.f32 %v944_v57, %v786_v3 }
 0x311   :  { %v1495_v21 = vpop.f32.mrf.mxu1 }
 0x313   :  { %v947_v53 = vpop.f32.mrf.mxu1 }
 0x344   :  { %v1076_v0 = vpop.permute.xlu0 %1075 }
 0x345   :  { %v1141_v19 = vmul.f32 %v1076_v0, %v962_v39 }
 0x348   :  { %v1066_v2 = vpop.permute.xlu0 %1065 }
 0x349   :  { %v1139_v27 = vmul.f32 %v1066_v2, %v960_v28 }
 0x34a   :  { %v1071_v62 = vpop.permute.xlu1 %1070 }
 0x34b   :  { %v1140_v38 = vmul.f32 %v1071_v62, %v961_v41  ;;  %v972_v41 = vadd.f32 %v947_v53, %v787_v35 }
 0x34d   :  { %v1155_v52 = vpack.c.bf16 %v1141_v19, %v1140_v38 }
 0x34e   :  { %v1061_v48 = vpop.permute.xlu1 %1060 }
 0x34f   :  { %v1138_v7 = vmul.f32 %v1061_v48, %v959_v58 }
 0x351   :  { %v1154_v43 = vpack.c.bf16 %v1139_v27, %v1138_v7 }
 0x353   :  { %1512 = vmatprep.mubr.bf16.mxu1 %v1154_v43 }
 0x354   :  { %1513 = vmatmul.mubr.bf16.vlgmr.msra.gmra.mxu1 %v1155_v52  ;;  %v1091_v61 = vpop.permute.xlu1 %1090 }
 0x355   :  { %v1144_v40 = vmul.f32 %v1091_v61, %v965_v26 }
 0x358   :  { %v1096_v8 = vpop.permute.xlu0 %1095  ;;  %v1081_v18 = vpop.permute.xlu1 %1080 }
 0x359   :  { %v1145_v32 = vmul.f32 %v1096_v8, %v966_v11  ;;  %v1142_v45 = vmul.f32 %v1081_v18, %v963_v24 }
 0x35b   :  { %v1157_v29 = vpack.c.bf16 %v1145_v32, %v1144_v40 }
 0x35d   :  { %v1086_v31 = vpop.permute.xlu0 %1085 }
 0x35e   :  { %v1143_v12 = vmul.f32 %v1086_v31, %v964_v42 }
 0x360   :  { %v1156_v50 = vpack.c.bf16 %v1143_v12, %v1142_v45  ;;  %v1111_v34 = vpop.permute.xlu1 %1110 }
 0x361   :  { %v1116_v4 = vpop.permute.xlu0 %1115  ;;  %v1148_v56 = vmul.f32 %v1111_v34, %v969_v49 }
 0x362   :  { %1516 = vmatprep.mubr.bf16.mxu1 %v1156_v50  ;;  %v1149_v36 = vmul.f32 %v1116_v4, %v970_v10 }
 0x363   :  { %1517 = vmatmul.mubr.bf16.gmra.mxu1 %v1157_v29 }
 0x364   :  { %v1101_v63 = vpop.permute.xlu1 %1100  ;;  %v1159_v62 = vpack.c.bf16 %v1149_v36, %v1148_v56 }
 0x365   :  { %v1106_v33 = vpop.permute.xlu0 %1105  ;;  %v1146_v0 = vmul.f32 %v1101_v63, %v967_v60 }
 0x366   :  { %v1147_v1 = vmul.f32 %v1106_v33, %v968_v54 }
 0x368   :  { %v1158_v6 = vpack.c.bf16 %v1147_v1, %v1146_v0  ;;  %v767_v15 = vpop.permute.xlu1 %766 }
 0x369   :  { %v772_v46 = vpop.permute.xlu0 %771  ;;  %v788_v25 = vmul.f32 0.0, %v767_v15 }
 0x36a   :  { %1520 = vmatprep.mubr.bf16.mxu1 %v1158_v6  ;;  %v789_v2 = vmul.f32 0.0, %v772_v46 }
 0x36b   :  { %1521 = vmatmul.mubr.bf16.gmra.mxu1 %v1159_v62  ;;  %v973_v38 = vadd.f32 %v1494_v55, %v788_v25 }
 0x36c   :  { %v1121_v58 = vpop.permute.xlu1 %1120  ;;  %v974_v27 = vadd.f32 %v1495_v21, %v789_v2 }
 0x36d   :  { %v1126_v28 = vpop.permute.xlu0 %1125  ;;  %v1150_v22 = vmul.f32 %v1121_v58, %v971_v59 }
 0x36e   :  { %v1151_v39 = vmul.f32 %v1126_v28, %v972_v41 }
 0x370   :  { %v1160_v48 = vpack.c.bf16 %v1151_v39, %v1150_v22  ;;  %v1131_v7 = vpop.permute.xlu1 %1130 }
 0x371   :  { %v1136_v51 = vpop.permute.xlu0 %1135  ;;  %v1152_v19 = vmul.f32 %v1131_v7, %v973_v38 }
 0x372   :  { %v1153_v30 = vmul.f32 %v1136_v51, %v974_v27  ;;  %1524 = vmatprep.mubr.bf16.mxu1 %v1160_v48 }
 0x374   :  { %v1161_v43 = vpack.c.bf16 %v1153_v30, %v1152_v19 }
 0x376   :  { %1525 = vmatmul.mubr.bf16.gmra.mxu1 %v1161_v43 }
 0x414   :  { %v1514_v52 = vpop.f32.mrf.mxu1 }
 0x415   :  { %v1276_v61 = vadd.f32 %v1514_v52, %v1375_v13 }
 0x416   :  { %v1267_v16 = vpop.f32.mrf.mxu1 }
 0x417   :  { %1332 = vst [vmem:[%s2247_s6 + $0x10] sm:$0xff] %v1276_v61  ;;  %v1268_v23 = vadd.f32 %v1375_v13, %v1267_v16 }
 0x418   :  { %v1515_v8 = vpop.f32.mrf.mxu1 }
 0x419   :  { %1330 = vst [vmem:[%s2247_s6] sm:$0xff] %v1268_v23  ;;  %v1279_v14 = vadd.f32 %v1515_v8, %v1375_v13 }
 0x41a   :  { %v1270_v5 = vpop.f32.mrf.mxu1 }
 0x41b   :  { %1333 = vst [vmem:[%s2247_s6 + $0x18] sm:$0xff] %v1279_v14  ;;  %v1271_v9 = vadd.f32 %v1375_v13, %v1270_v5 }
 0x41d   :  { %1331 = vst [vmem:[%s2247_s6 + $0x8] sm:$0xff] %v1271_v9 }
 0x423   :  { %v1518_v17 = vpop.f32.mrf.mxu1 }
 0x424   :  { %v1292_v11 = vadd.f32 %v1518_v17, %v1375_v13 }
 0x425   :  { %v1283_v18 = vpop.f32.mrf.mxu1 }
 0x426   :  { %1336 = vst [vmem:[%s2247_s6 + $0x30] sm:$0xff] %v1292_v11  ;;  %v1284_v24 = vadd.f32 %v1375_v13, %v1283_v18 }
 0x427   :  { %v1519_v42 = vpop.f32.mrf.mxu1 }
 0x428   :  { %1334 = vst [vmem:[%s2247_s6 + $0x20] sm:$0xff] %v1284_v24  ;;  %v1295_v26 = vadd.f32 %v1519_v42, %v1375_v13 }
 0x429   :  { %v1286_v32 = vpop.f32.mrf.mxu1 }
 0x42a   :  { %1337 = vst [vmem:[%s2247_s6 + $0x38] sm:$0xff] %v1295_v26  ;;  %v1287_v31 = vadd.f32 %v1375_v13, %v1286_v32 }
 0x42b   :  { %v1522_v55 = vpop.f32.mrf.mxu1 }
 0x42c   :  { %1335 = vst [vmem:[%s2247_s6 + $0x28] sm:$0xff] %v1287_v31  ;;  %v1308_v45 = vadd.f32 %v1522_v55, %v1375_v13 }
 0x42d   :  { %v1299_v12 = vpop.f32.mrf.mxu1 }
 0x42e   :  { %1340 = vst [vmem:[%s2247_s6 + $0x50] sm:$0xff] %v1308_v45  ;;  %v1300_v40 = vadd.f32 %v1375_v13, %v1299_v12 }
 0x42f   :  { %v1523_v50 = vpop.f32.mrf.mxu1 }
 0x430   :  { %1338 = vst [vmem:[%s2247_s6 + $0x40] sm:$0xff] %v1300_v40  ;;  %v1311_v29 = vadd.f32 %v1523_v50, %v1375_v13 }
 0x431   :  { %v1302_v34 = vpop.f32.mrf.mxu1 }
 0x432   :  { %1341 = vst [vmem:[%s2247_s6 + $0x58] sm:$0xff] %v1311_v29  ;;  %v1303_v37 = vadd.f32 %v1375_v13, %v1302_v34 }
 0x434   :  { %1339 = vst [vmem:[%s2247_s6 + $0x48] sm:$0xff] %v1303_v37 }
 0x436   :  { %v1526_v44 = vpop.f32.mrf.mxu1 }
 0x437   :  { %v1324_v47 = vadd.f32 %v1526_v44, %v1375_v13 }
 0x438   :  { %v1315_v57 = vpop.f32.mrf.mxu1 }
 0x439   :  { %1344 = vst [vmem:[%s2247_s6 + $0x70] sm:$0xff] %v1324_v47  ;;  %v1316_v4 = vadd.f32 %v1375_v13, %v1315_v57 }
 0x43a   :  { %v1527_v20 = vpop.f32.mrf.mxu1 }
 0x43b   :  { %1342 = vst [vmem:[%s2247_s6 + $0x60] sm:$0xff] %v1316_v4  ;;  %v1327_v49 = vadd.f32 %v1527_v20, %v1375_v13 }
 0x43c   :  { %v1318_v60 = vpop.f32.mrf.mxu1 }
 0x43d   :  { %1345 = vst [vmem:[%s2247_s6 + $0x78] sm:$0xff] %v1327_v49  ;;  %v1319_v10 = vadd.f32 %v1375_v13, %v1318_v60 }
 0x43f   :  { %1343 = vst [vmem:[%s2247_s6 + $0x68] sm:$0xff] %v1319_v10 }

</bundles_post_ra>
